<compile_context>
chip_gen: v5e
topology: v5e:2x2
jax: 0.10.0
libtpu: 0.0.40
codegen_flags: <defaults>
</compile_context>

<pallas_src>
import functools

import jax
import jax.numpy as jnp
from jax import lax
from jax.experimental import pallas as pl
from jax.experimental.pallas import tpu as pltpu


_LN_EPS = 1e-5  # nn.LayerNorm default


def _layernorm(x, gamma, beta, eps=_LN_EPS):
    mu = jnp.mean(x, axis=-1, keepdims=True)
    var = jnp.mean((x - mu) ** 2, axis=-1, keepdims=True)
    return (x - mu) * lax.rsqrt(var + eps) * gamma + beta


def _spec(shape, index_map, *, buffers=None):
    """BlockSpec helper.

    buffers=1  -> constant-index block (weights/LN/bias): the block index never
                  changes so there is no DMA to overlap; single-buffering
                  halves its VMEM footprint (matters on v7x's 64 MiB).
    buffers>=3 -> deeper pipelining for streamed blocks (v5e alibi DMA).
    """
    if buffers is None:
        return pl.BlockSpec(shape, index_map)
    return pl.BlockSpec(shape, index_map, pipeline_mode=pl.Buffered(buffers))


def _pick_tile(n, cap, *, mult, min_units=1):
    """Largest t <= cap with n % t == 0, (t % mult == 0 or t == n) and, when
    achievable, n // t >= min_units grid steps."""
    def search(units):
        for cand in range(min(n, cap), 0, -1):
            if n % cand:
                continue
            if cand != n and cand % mult:
                continue
            if n // cand < units:
                continue
            return cand
        return None
    return search(min_units) or search(1) or n


def _vmem_limit_bytes():
    # ~75% of physical VMEM: 96 MiB on v5e/v6e (128 MiB), 48 MiB on v7x
    # (64 MiB) -- leaves headroom for Mosaic internal scratch.
    try:
        cap = pltpu.get_tpu_info().vmem_capacity_bytes
    except Exception:
        cap = 64 * 1024 * 1024
    return min(int(cap * 3 // 4), 100 * 1024 * 1024)


def _is_v5e():
    try:
        kind = jax.devices()[0].device_kind.lower()
    except Exception:
        return False
    return ("v5 lite" in kind) or ("v5e" in kind) or ("v5litepod" in kind)


# ----------------------------------------------------------------------------
# KV projection kernel: ln(context) @ Wk / Wv, stored head-major bf16.
# Runs once per (b, k-tile) -- removes the per-q-tile recompute from the
# attention kernel's inner loop.
# ----------------------------------------------------------------------------
def _kv_proj_kernel(ctx_ref, gamma_ref, beta_ref, wk_ref, wv_ref,
                    k_ref, v_ref, *, heads):
    TK = ctx_ref.shape[1]
    D = ctx_ref.shape[2]
    dh = D // heads
    cn = _layernorm(ctx_ref[0], gamma_ref[0], beta_ref[0]).astype(jnp.bfloat16)
    k = jnp.dot(cn, wk_ref[...], preferred_element_type=jnp.float32)   # (TK, D)
    v = jnp.dot(cn, wv_ref[...], preferred_element_type=jnp.float32)   # (TK, D)
    # 'n (h d) -> h n d' once per k-tile (NOT once per (q-tile, k-tile)).
    k_ref[0] = k.reshape(TK, heads, dh).transpose(1, 0, 2).astype(jnp.bfloat16)
    v_ref[0] = v.reshape(TK, heads, dh).transpose(1, 0, 2).astype(jnp.bfloat16)


def _project_kv(context, gamma, beta, wk_b, wv_b, heads, *, tk, vmem_limit):
    B, Nk, D = context.shape
    dh = D // heads
    out_shape = jax.ShapeDtypeStruct((B, heads, Nk, dh), jnp.bfloat16)
    out_spec = pl.BlockSpec((1, heads, tk, dh), lambda b, ki: (b, 0, ki, 0))
    return pl.pallas_call(
        functools.partial(_kv_proj_kernel, heads=heads),
        out_shape=(out_shape, out_shape),
        grid=(B, Nk // tk),
        in_specs=[
            pl.BlockSpec((1, tk, D), lambda b, ki: (b, ki, 0)),   # context
            _spec((1, D), lambda b, ki: (0, 0), buffers=1),       # ln gamma
            _spec((1, D), lambda b, ki: (0, 0), buffers=1),       # ln beta
            _spec((D, D), lambda b, ki: (0, 0), buffers=1),       # wk
            _spec((D, D), lambda b, ki: (0, 0), buffers=1),       # wv
        ],
        out_specs=(out_spec, out_spec),
        compiler_params=pltpu.CompilerParams(
            dimension_semantics=("parallel", "parallel"),
            vmem_limit_bytes=vmem_limit),
    )(context, gamma, beta, wk_b, wv_b)


# ----------------------------------------------------------------------------
# Flash-style cross-attention kernel: grid = (B, Nq/tq, Nk/tk); Nk streamed
# with an online-softmax accumulator; Q projected once per q-tile at ki == 0.
# ----------------------------------------------------------------------------
def _attention_kernel(x_ref, k_ref, v_ref, alibi_ref,
                      gamma_ref, beta_ref, wq_ref, wo_ref, bo_ref,
                      o_ref,
                      q_sc, m_sc, l_sc, acc_sc,
                      *, scale):
    H, TQ, dh = acc_sc.shape
    D = H * dh
    ki = pl.program_id(2)

    # -- per-(batch, q-tile) init: LayerNorm + Q projection + softmax state --
    @pl.when(ki == 0)
    def _init():
        xn = _layernorm(x_ref[0], gamma_ref[0], beta_ref[0])          # (TQ, D)
        q = jnp.dot(xn.astype(jnp.bfloat16), wq_ref[...],
                    preferred_element_type=jnp.float32) * scale        # (TQ, D)
        q_sc[...] = (q.reshape(TQ, H, dh)
                       .transpose(1, 0, 2)
                       .astype(jnp.bfloat16))                          # (H, TQ, dh)
        m_sc[...] = jnp.full(m_sc.shape, -jnp.inf, dtype=m_sc.dtype)
        l_sc[...] = jnp.zeros(l_sc.shape, dtype=l_sc.dtype)
        acc_sc[...] = jnp.zeros(acc_sc.shape, dtype=acc_sc.dtype)

    # -- K / V for this key tile: precomputed head-major bf16, just load --
    kh = k_ref[0]                                                      # (H, TK, dh)
    vh = v_ref[0]                                                      # (H, TK, dh)

    # -- scores for ALL heads in one batched MXU op (scale folded into q) --
    s = lax.dot_general(q_sc[...], kh, (((2,), (2,)), ((0,), (0,))),
                        preferred_element_type=jnp.float32)            # (H, TQ, TK)
    s = s + alibi_ref[0].astype(jnp.float32)

    # -- online softmax update over the streamed Nk axis --
    m_prev = m_sc[...]
    m_new = jnp.maximum(m_prev, jnp.max(s, axis=-1, keepdims=True))
    # Mask-safe: a key-tile whose scores are all -inf for some row must not
    # inject NaNs into the running accumulator.
    m_safe = jnp.where(m_new == -jnp.inf, 0.0, m_new)
    alpha = jnp.exp(m_prev - m_safe)
    p = jnp.exp(s - m_safe)
    l_sc[...] = alpha * l_sc[...] + jnp.sum(p, axis=-1, keepdims=True)
    pv = lax.dot_general(p.astype(jnp.bfloat16), vh,
                         (((2,), (1,)), ((0,), (0,))),
                         preferred_element_type=jnp.float32)           # (H, TQ, dh)
    acc_sc[...] = alpha * acc_sc[...] + pv
    m_sc[...] = m_new

    # -- finalize: normalize (exact divide), merge heads, output projection --
    @pl.when(ki == pl.num_programs(2) - 1)
    def _finalize():
        out = acc_sc[...] / l_sc[...]                                  # (H, TQ, dh)
        out = out.transpose(1, 0, 2).reshape(TQ, D)                    # 'h n d -> n (h d)'
        y = jnp.dot(out.astype(jnp.bfloat16), wo_ref[...],
                    preferred_element_type=jnp.float32) + bo_ref[0]
        o_ref[0] = y.astype(o_ref.dtype)


def cross_attention(x, context, alibi, params, heads, *, tq=None, tk=None):
    """Forward pass of CrossAttention.  params = (gamma, beta, wq, wk, wv, wo,
    bo) with weights in (in, out) layout (i.e. y = x @ w)."""
    gamma, beta, wq, wk, wv, wo, bo = params
    B, Nq, D = x.shape
    Nk = context.shape[1]
    H = heads
    assert D % H == 0
    dh = D // H
    # Head-major scratch / K / V layouts assume a lane-friendly head size.
    # TODO(synk): for dh < 64, use a lane-concatenated (tq, D) accumulator.
    scale = float(dh ** -0.5)

    # 256^2 tiles fill the v6e/v7x MXU; keep >= 2 parallel (b, qi) units so
    # v7x's two TensorCores both get work when B == 1.
    if tq is None:
        tq = _pick_tile(Nq, 256, mult=8, min_units=2 if B == 1 else 1)
    if tk is None:
        tk = _pick_tile(Nk, 256, mult=128)
    assert Nq % tq == 0 and Nk % tk == 0, "sequence lengths must divide tiles"

    vmem_limit = _vmem_limit_bytes()
    # v5e: per-step compute is short relative to the alibi DMA -> deepen its
    # pipeline; elsewhere the default double buffer is enough.
    alibi_buffers = 3 if _is_v5e() else None

    # bf16 weights & alibi: half the HBM/VMEM traffic; accumulation stays f32.
    wq_b, wk_b, wv_b, wo_b = (w.astype(jnp.bfloat16) for w in (wq, wk, wv, wo))
    alibi_b = alibi.astype(jnp.bfloat16)

    # Hoisted K/V: ln(context) @ Wk / Wv, head-major bf16, computed once.
    k_hm, v_hm = _project_kv(context, gamma, beta, wk_b, wv_b, H,
                             tk=tk, vmem_limit=vmem_limit)

    kernel = functools.partial(_attention_kernel, scale=scale)
    return pl.pallas_call(
        kernel,
        out_shape=jax.ShapeDtypeStruct((B, Nq, D), x.dtype),
        grid=(B, Nq // tq, Nk // tk),
        in_specs=[
            pl.BlockSpec((1, tq, D), lambda b, qi, ki: (b, qi, 0)),            # x
            pl.BlockSpec((1, H, tk, dh), lambda b, qi, ki: (b, 0, ki, 0)),     # K (head-major bf16)
            pl.BlockSpec((1, H, tk, dh), lambda b, qi, ki: (b, 0, ki, 0)),     # V (head-major bf16)
            _spec((1, H, tq, tk), lambda b, qi, ki: (b, 0, qi, ki),
                  buffers=alibi_buffers),                                      # alibi (bf16)
            _spec((1, D), lambda b, qi, ki: (0, 0), buffers=1),                # ln gamma
            _spec((1, D), lambda b, qi, ki: (0, 0), buffers=1),                # ln beta
            _spec((D, D), lambda b, qi, ki: (0, 0), buffers=1),                # wq
            _spec((D, D), lambda b, qi, ki: (0, 0), buffers=1),                # wo
            _spec((1, D), lambda b, qi, ki: (0, 0), buffers=1),                # bo
        ],
        out_specs=pl.BlockSpec((1, tq, D), lambda b, qi, ki: (b, qi, 0)),
        scratch_shapes=[
            pltpu.VMEM((H, tq, dh), jnp.bfloat16),   # cached pre-scaled Q
            pltpu.VMEM((H, tq, 1), jnp.float32),     # running max  m
            pltpu.VMEM((H, tq, 1), jnp.float32),     # running sum  l
            pltpu.VMEM((H, tq, dh), jnp.float32),    # output accumulator
        ],
        compiler_params=pltpu.CompilerParams(
            dimension_semantics=("parallel", "parallel", "arbitrary"),
            vmem_limit_bytes=vmem_limit),
    )(x, k_hm, v_hm, alibi_b, gamma, beta, wq_b, wo_b, bo)


def cross_attention_reference(x, context, alibi, params, heads):
    """Pure-JAX (f32) reference mirroring the PyTorch module."""
    gamma, beta, wq, wk, wv, wo, bo = params

    def ln(t):
        mu = t.mean(-1, keepdims=True)
        var = ((t - mu) ** 2).mean(-1, keepdims=True)
        return (t - mu) / jnp.sqrt(var + _LN_EPS) * gamma[0] + beta[0]

    xn, cn = ln(x), ln(context)
    q, k, v = xn @ wq, cn @ wk, cn @ wv
    B, Nq, D = x.shape
    H = heads
    dh = D // H
    q = q.reshape(B, Nq, H, dh).transpose(0, 2, 1, 3)
    k = k.reshape(B, -1, H, dh).transpose(0, 2, 1, 3)
    v = v.reshape(B, -1, H, dh).transpose(0, 2, 1, 3)
    s = jnp.einsum('bhid,bhjd->bhij', q, k) * (dh ** -0.5) + alibi
    a = jax.nn.softmax(s, axis=-1)
    o = jnp.einsum('bhij,bhjd->bhid', a, v)
    o = o.transpose(0, 2, 1, 3).reshape(B, Nq, D)
    return o @ wo + bo[0]


if __name__ == "__main__":
    # Small but TPU-shaped: D = 256 (lane-dense output), dh = 64 (lane-friendly
    # heads), 2 q-tiles x 2 streamed k-tiles x 2 batches -> exercises the
    # init / accumulate / finalize paths and the hoisted KV projection.
    B, Nq, Nk, D, H = 2, 128, 256, 256, 4
    key = jax.random.PRNGKey(0)
    keys = jax.random.split(key, 10)

    x = jax.random.normal(keys[0], (B, Nq, D), jnp.float32)
    context = jax.random.normal(keys[1], (B, Nk, D), jnp.float32)
    alibi = 0.5 * jax.random.normal(keys[2], (B, H, Nq, Nk), jnp.float32)

    # Deterministic synthetic parameters (shapes from the module's __init__).
    gamma = 1.0 + 0.1 * jax.random.normal(keys[3], (1, D), jnp.float32)
    beta = 0.1 * jax.random.normal(keys[4], (1, D), jnp.float32)
    w_scale = D ** -0.5
    wq = w_scale * jax.random.normal(keys[5], (D, D), jnp.float32)  # (in, out)
    wk = w_scale * jax.random.normal(keys[6], (D, D), jnp.float32)
    wv = w_scale * jax.random.normal(keys[7], (D, D), jnp.float32)
    wo = w_scale * jax.random.normal(keys[8], (D, D), jnp.float32)
    bo = 0.1 * jax.random.normal(keys[9], (1, D), jnp.float32)

    params = (gamma, beta, wq, wk, wv, wo, bo)

    # Explicit small tiles so the streamed-Nk (online softmax) path and
    # multiple q-tiles are exercised at these small shapes.
    out = cross_attention(x, context, alibi, params, H, tq=64, tk=128)
    out = jax.block_until_ready(out)

    ref = cross_attention_reference(x, context, alibi, params, H)
    assert out.shape == (B, Nq, D)
    max_err = jnp.max(jnp.abs(out - ref))
    # bf16 MXU operands + bf16 alibi (f32 accumulation) -> loose tolerance.
    assert jnp.allclose(out, ref, atol=3e-2, rtol=3e-2), (
        f"max abs err = {max_err}")

    print("KERNEL_OK")
</pallas_src>

<mosaic_0001>
module attributes {stable_mosaic.version = 11 : i64} {
  func.func @_kv_proj_kernel(%arg0: i32, %arg1: i32, %arg2: memref<1x128x256xf32, #tpu.memory_space<vmem>>, %arg3: memref<1x256xf32, #tpu.memory_space<vmem>>, %arg4: memref<1x256xf32, #tpu.memory_space<vmem>>, %arg5: memref<256x256xbf16, #tpu.memory_space<vmem>>, %arg6: memref<256x256xbf16, #tpu.memory_space<vmem>>, %arg7: memref<1x4x128x64xbf16, #tpu.memory_space<vmem>>, %arg8: memref<1x4x128x64xbf16, #tpu.memory_space<vmem>>) attributes {dimension_semantics = [#tpu.dimension_semantics<parallel>, #tpu.dimension_semantics<parallel>], iteration_bounds = array<i64: 2, 2>, scalar_prefetch = 0 : i64, scratch_operands = 0 : i64, tpu.core_type = #tpu.core_type<tc>, window_params = [{transform_indices = @transform_0, window_bounds = array<i64: 1, 128, 256>}, {pipeline_mode = #tpu.pipeline_mode<synchronous>, transform_indices = @transform_1, window_bounds = array<i64: 1, 256>}, {pipeline_mode = #tpu.pipeline_mode<synchronous>, transform_indices = @transform_2, window_bounds = array<i64: 1, 256>}, {pipeline_mode = #tpu.pipeline_mode<synchronous>, transform_indices = @transform_3, window_bounds = array<i64: 256, 256>}, {pipeline_mode = #tpu.pipeline_mode<synchronous>, transform_indices = @transform_4, window_bounds = array<i64: 256, 256>}, {transform_indices = @transform_5, window_bounds = array<i64: 1, 4, 128, 64>}, {transform_indices = @transform_6, window_bounds = array<i64: 1, 4, 128, 64>}]} {
    %c0 = arith.constant 0 : index
    %c0_0 = arith.constant 0 : index
    %c0_1 = arith.constant 0 : index
    %0 = vector.load %arg2[%c0, %c0_0, %c0_1] : memref<1x128x256xf32, #tpu.memory_space<vmem>>, vector<1x128x256xf32>
    %1 = vector.shape_cast %0 : vector<1x128x256xf32> to vector<128x256xf32>
    %c0_2 = arith.constant 0 : index
    %c0_3 = arith.constant 0 : index
    %2 = vector.load %arg3[%c0_2, %c0_3] : memref<1x256xf32, #tpu.memory_space<vmem>>, vector<1x256xf32>
    %3 = vector.shape_cast %2 : vector<1x256xf32> to vector<256xf32>
    %c0_4 = arith.constant 0 : index
    %c0_5 = arith.constant 0 : index
    %4 = vector.load %arg4[%c0_4, %c0_5] : memref<1x256xf32, #tpu.memory_space<vmem>>, vector<1x256xf32>
    %5 = vector.shape_cast %4 : vector<1x256xf32> to vector<256xf32>
    %cst = arith.constant dense<0.000000e+00> : vector<128xf32>
    %6 = vector.multi_reduction <add>, %1, %cst [1] : vector<128x256xf32> to vector<128xf32>
    %7 = vector.shape_cast %6 : vector<128xf32> to vector<128x1xf32>
    %cst_6 = arith.constant 2.560000e+02 : f32
    %8 = vector.broadcast %cst_6 : f32 to vector<128x1xf32>
    %9 = arith.divf %7, %8 : vector<128x1xf32>
    %10 = vector.broadcast %9 : vector<128x1xf32> to vector<128x256xf32>
    %11 = arith.subf %1, %10 : vector<128x256xf32>
    %12 = arith.mulf %11, %11 : vector<128x256xf32>
    %cst_7 = arith.constant dense<0.000000e+00> : vector<128xf32>
    %13 = vector.multi_reduction <add>, %12, %cst_7 [1] : vector<128x256xf32> to vector<128xf32>
    %14 = vector.shape_cast %13 : vector<128xf32> to vector<128x1xf32>
    %cst_8 = arith.constant 2.560000e+02 : f32
    %15 = vector.broadcast %cst_8 : f32 to vector<128x1xf32>
    %16 = arith.divf %14, %15 : vector<128x1xf32>
    %17 = vector.broadcast %9 : vector<128x1xf32> to vector<128x256xf32>
    %18 = arith.subf %1, %17 : vector<128x256xf32>
    %cst_9 = arith.constant 9.99999974E-6 : f32
    %19 = vector.broadcast %cst_9 : f32 to vector<128x1xf32>
    %20 = arith.addf %16, %19 : vector<128x1xf32>
    %21 = math.rsqrt %20 : vector<128x1xf32>
    %22 = vector.broadcast %21 : vector<128x1xf32> to vector<128x256xf32>
    %23 = arith.mulf %18, %22 : vector<128x256xf32>
    %24 = vector.shape_cast %3 : vector<256xf32> to vector<1x256xf32>
    %25 = vector.broadcast %24 : vector<1x256xf32> to vector<128x256xf32>
    %26 = arith.mulf %23, %25 : vector<128x256xf32>
    %27 = vector.shape_cast %5 : vector<256xf32> to vector<1x256xf32>
    %28 = vector.broadcast %27 : vector<1x256xf32> to vector<128x256xf32>
    %29 = arith.addf %26, %28 : vector<128x256xf32>
    %30 = arith.truncf %29 : vector<128x256xf32> to vector<128x256xbf16>
    %c0_10 = arith.constant 0 : index
    %c0_11 = arith.constant 0 : index
    %31 = vector.load %arg5[%c0_10, %c0_11] : memref<256x256xbf16, #tpu.memory_space<vmem>>, vector<256x256xbf16>
    %cst_12 = arith.constant dense<0.000000e+00> : vector<128x256xf32>
    %32 = tpu.matmul %30, %31, %cst_12 {dimension_numbers = #tpu.dot_dimension_numbers<[1], [0], [0], [1], [0, 0, 1, 1], [], []>} : vector<128x256xbf16>, vector<256x256xbf16>, vector<128x256xf32> -> vector<128x256xf32>
    %c0_13 = arith.constant 0 : index
    %c0_14 = arith.constant 0 : index
    %33 = vector.load %arg6[%c0_13, %c0_14] : memref<256x256xbf16, #tpu.memory_space<vmem>>, vector<256x256xbf16>
    %cst_15 = arith.constant dense<0.000000e+00> : vector<128x256xf32>
    %34 = tpu.matmul %30, %33, %cst_15 {dimension_numbers = #tpu.dot_dimension_numbers<[1], [0], [0], [1], [0, 0, 1, 1], [], []>} : vector<128x256xbf16>, vector<256x256xbf16>, vector<128x256xf32> -> vector<128x256xf32>
    %35 = vector.shape_cast %32 : vector<128x256xf32> to vector<128x4x64xf32>
    %36 = tpu.transpose %35, [1, 0, 2] : vector<128x4x64xf32> -> vector<4x128x64xf32>
    %37 = arith.truncf %36 : vector<4x128x64xf32> to vector<4x128x64xbf16>
    %c0_16 = arith.constant 0 : index
    %c0_17 = arith.constant 0 : index
    %c0_18 = arith.constant 0 : index
    %c0_19 = arith.constant 0 : index
    %38 = vector.load %arg7[%c0_16, %c0_17, %c0_18, %c0_19] : memref<1x4x128x64xbf16, #tpu.memory_space<vmem>>, vector<1x4x128x64xbf16>
    %39 = vector.shape_cast %38 : vector<1x4x128x64xbf16> to vector<4x128x64xbf16>
    %40 = vector.shape_cast %37 : vector<4x128x64xbf16> to vector<1x4x128x64xbf16>
    tpu.vector_store %arg7[%c0_16, %c0_17, %c0_18, %c0_19], %40 {strides = array<i32>} : memref<1x4x128x64xbf16, #tpu.memory_space<vmem>>, vector<1x4x128x64xbf16>,
    %41 = vector.shape_cast %34 : vector<128x256xf32> to vector<128x4x64xf32>
    %42 = tpu.transpose %41, [1, 0, 2] : vector<128x4x64xf32> -> vector<4x128x64xf32>
    %43 = arith.truncf %42 : vector<4x128x64xf32> to vector<4x128x64xbf16>
    %c0_20 = arith.constant 0 : index
    %c0_21 = arith.constant 0 : index
    %c0_22 = arith.constant 0 : index
    %c0_23 = arith.constant 0 : index
    %44 = vector.load %arg8[%c0_20, %c0_21, %c0_22, %c0_23] : memref<1x4x128x64xbf16, #tpu.memory_space<vmem>>, vector<1x4x128x64xbf16>
    %45 = vector.shape_cast %44 : vector<1x4x128x64xbf16> to vector<4x128x64xbf16>
    %46 = vector.shape_cast %43 : vector<4x128x64xbf16> to vector<1x4x128x64xbf16>
    tpu.vector_store %arg8[%c0_20, %c0_21, %c0_22, %c0_23], %46 {strides = array<i32>} : memref<1x4x128x64xbf16, #tpu.memory_space<vmem>>, vector<1x4x128x64xbf16>,
    return
  }
  func.func @transform_0(%arg0: i32, %arg1: i32) -> (i32, i32, i32) {
    %c0_i32 = arith.constant 0 : i32
    %c0_i32_0 = arith.constant 0 : i32
    return %arg0, %arg1, %c0_i32 : i32, i32, i32
  }
  func.func @transform_1(%arg0: i32, %arg1: i32) -> (i32, i32) {
    %c0_i32 = arith.constant 0 : i32
    %c0_i32_0 = arith.constant 0 : i32
    %c0_i32_1 = arith.constant 0 : i32
    return %c0_i32, %c0_i32_0 : i32, i32
  }
  func.func @transform_2(%arg0: i32, %arg1: i32) -> (i32, i32) {
    %c0_i32 = arith.constant 0 : i32
    %c0_i32_0 = arith.constant 0 : i32
    %c0_i32_1 = arith.constant 0 : i32
    return %c0_i32, %c0_i32_0 : i32, i32
  }
  func.func @transform_3(%arg0: i32, %arg1: i32) -> (i32, i32) {
    %c0_i32 = arith.constant 0 : i32
    %c0_i32_0 = arith.constant 0 : i32
    %c0_i32_1 = arith.constant 0 : i32
    return %c0_i32, %c0_i32_0 : i32, i32
  }
  func.func @transform_4(%arg0: i32, %arg1: i32) -> (i32, i32) {
    %c0_i32 = arith.constant 0 : i32
    %c0_i32_0 = arith.constant 0 : i32
    %c0_i32_1 = arith.constant 0 : i32
    return %c0_i32, %c0_i32_0 : i32, i32
  }
  func.func @transform_5(%arg0: i32, %arg1: i32) -> (i32, i32, i32, i32) {
    %c0_i32 = arith.constant 0 : i32
    %c0_i32_0 = arith.constant 0 : i32
    %c0_i32_1 = arith.constant 0 : i32
    return %arg0, %c0_i32, %arg1, %c0_i32_0 : i32, i32, i32, i32
  }
  func.func @transform_6(%arg0: i32, %arg1: i32) -> (i32, i32, i32, i32) {
    %c0_i32 = arith.constant 0 : i32
    %c0_i32_0 = arith.constant 0 : i32
    %c0_i32_1 = arith.constant 0 : i32
    return %arg0, %c0_i32, %arg1, %c0_i32_0 : i32, i32, i32, i32
  }
}

</mosaic_0001>

<bundles_post_ra>
// kernel: tpu_custom_call.1
= control target key start
LH: loop header
LB: loop body
LE: loop exit
PB: predicated region body
PF: predicated region fallthrough
CT: control target
= control target key end

     0   :  { %s10718_s0 = inlined_call_operand.hbm [shape: f32[2,256,256], index: 0, kind: input, shape index: {}]   ;;  %s10719_s1 = inlined_call_operand.hbm [shape: f32[1,256], index: 1, kind: input, shape index: {}]   ;;  %s10720_s2 = inlined_call_operand.hbm [shape: f32[1,256], index: 2, kind: input, shape index: {}]   ;;  %s10721_s3 = inlined_call_operand.hbm [shape: bf16[256,256], index: 3, kind: input, shape index: {}]   ;;  %s10722_s4 = inlined_call_operand.hbm [shape: bf16[256,256], index: 4, kind: input, shape index: {}]   ;;  %s10723_s5 = inlined_call_operand.vmem [shape: bf16[2,4,256,64], index: 5, kind: output, shape index: {0}]   ;;  %s10724_s6 = inlined_call_operand.vmem [shape: bf16[2,4,256,64], index: 6, kind: output, shape index: {1}]  }
   0x1   :  { %10728 = sst [smem:[#allocation17_spill]] %s10719_s1 }
   0x2   :  { %10729 = sst [smem:[#allocation18_spill]] %s10720_s2 }
   0x3   :  { %10730 = sst [smem:[#allocation19_spill]] %s10721_s3 }
   0x4   :  { %10731 = sst [smem:[#allocation20_spill]] %s10722_s4 }
   0x5   :  { %10732 = sst [smem:[#allocation21_spill]] %s10724_s6 }
   0x6   :  { %12 = vsyncpa [#allocation3], 0 }
   0x7   :  { %14 = vsyncpa [#allocation3 + $0x1], 0 }
   0x8   :  { %15 = vsyncpa [#allocation5], 0 }
   0x9   :  { %16 = vsyncpa [#allocation8], 0  ;;  %s7399_s21 = smov 0   ;;  %s7401_s22 = smov 0  }
   0xa   :  { %s7403_s23 = smov 0   ;;  %s7405_s24 = smov 0  }
   0xb   :  { %s7407_s25 = smov 0   ;;  %s7409_s26 = smov 0  }
   0xc   :  { %s7411_s27 = smov 0   ;;  %s7413_s28 = smov 0  }
   0xd LB: > { %10733 = sst [smem:[#allocation15_spill]] %s7342_s26  ;;  %s6460_s29 = sadd.s32 4294967295, %s7350_s28   ;;  %s7350_s28 = sphi %s7413_s28, %s22_s28   ;;  %s7346_s27 = sphi %s7411_s27, %s10795_s27   ;;  %s7342_s26 = sphi %s7409_s26, %s10790_s26   ;;  %s7338_s25 = sphi %s7407_s25, %s10794_s25   ;;  %s7334_s24 = sphi %s7405_s24, %s10789_s24   ;;  %s7330_s23 = sphi %s7403_s23, %s10793_s23   ;;  %s7326_s22 = sphi %s7401_s22, %s10792_s22   ;;  %s7322_s21 = sphi %s7399_s21, %s10791_s21  }
   0xe   : > { %p56_p0 = scmp.ne.s32.totalorder %s7326_s22, %s7322_s21  ;;  %p7439_p1 = scmp.eq.s32.totalorder %s6460_s29, 0 }
   0xf   : > { %p7443_p2 = scmp.eq.s32.totalorder %s6460_s29, 3  ;;  %p6462_p3 = scmp.ge.s32.totalorder %s7350_s28, 1 }
  0x10   : > { %p207_p4 = scmp.lt.s32.totalorder %s7350_s28, 5  ;;  %p7451_p5 = por %p7439_p1, %p56_p0 }
  0x11   : > { %s10738_s1 = sld [smem:[#allocation17_spill]]  ;;  %s7352_s13 = smov [#allocation4]  }
  0x12   : > { %p7455_p6 = pnand %p6462_p3, %p207_p4  ;;  %s221_s14 = sshll.u32 %s7352_s13, 4  ;;  %s222_s14 = int_to_ptr.vmem [resolvable:$true] %s221_s14 }
  0x13   : > { %s10740_s3 = sld [smem:[#allocation19_spill]]  ;;  %s7353_s19 = smov [#allocation7]  }
  0x14   : > { %p6830_p7 = pneg %p7455_p6  ;;  %s244_s20 = sshll.u32 %s7353_s19, 4  ;;  %s245_s20 = int_to_ptr.vmem [resolvable:$true] %s244_s20 }
  0x15   : > { %s10741_s2 = sld [smem:[#allocation18_spill]]  ;;  %s7354_s11 = smov 128  }
  0x16   : > { %p7466_p8 = pnand %p6830_p7, %p7439_p1  ;;  %s7355_s13 = smov 8  }
  0x17   : > { %s219_s12 = sshll.u32 %s10738_s1, 4  ;;  %s7356_s16 = smov [#allocation6]   ;;  %s220_s12 = int_to_ptr.hbm [resolvable:$true] %s219_s12 }
  0x18   : > { %6833 = dma.hbm_to_vmem [thread:$0]  (!%p7466_p8), %s220_s12, 32, %s222_s14, [#allocation5]  }
  0x19   : > { %s242_s18 = sshll.u32 %s10740_s3, 4  ;;  %s233_s17 = sshll.u32 %s7356_s16, 4  ;;  %s243_s18 = int_to_ptr.hbm [resolvable:$true] %s242_s18  ;;  %s234_s17 = int_to_ptr.vmem [resolvable:$true] %s233_s17 }
  0x1a   : > { %6839 = dma.hbm_to_vmem [thread:$0]  (!%p7466_p8), %s243_s18, 4096, %s245_s20, [#allocation8], %s7354_s11, %s7354_s11, %s7355_s13  }
  0x1b   : > { %s231_s10 = sshll.u32 %s10741_s2, 4  ;;  %s10742_s4 = sld [smem:[#allocation20_spill]]  ;;  %s232_s10 = int_to_ptr.hbm [resolvable:$true] %s231_s10 }
  0x1c   : > { %6836 = dma.hbm_to_vmem [thread:$0]  (!%p7466_p8), %s232_s10, 32, %s234_s17, [#allocation5]  }
  0x1d   : > { %s7357_s21 = smov [#allocation9]   ;;  %s31_s20 = sadd.s32 1, %s7342_s26 }
  0x1e   : > { %s258_s18 = sshll.u32 %s7357_s21, 4  ;;  %p32_p9 = scmp.ge.s32.totalorder %s31_s20, 2  ;;  %s259_s18 = int_to_ptr.vmem [resolvable:$true] %s258_s18 }
  0x1f   : > { %s34_s29 = sadd.s32 1, %s7346_s27  ;;  %s43_s16 = sadd.s32 1, %s7330_s23 }
  0x20   : > { %p50_p10 = scmp.ne.s32.totalorder %s7330_s23, %s7326_s22  ;;  %s10797_s20 = smov (%p32_p9, %s31_s20), 0 }
  0x21   : > { %s256_s19 = sshll.u32 %s10742_s4, 4  ;;  %10743 = sst [smem:[#allocation16_spill]] %s10797_s20  ;;  %s257_s19 = int_to_ptr.hbm [resolvable:$true] %s256_s19 }
  0x22   : > { %6842 = dma.hbm_to_vmem [thread:$0]  (!%p7466_p8), %s257_s19, 4096, %s259_s18, [#allocation8], %s7354_s11, %s7354_s11, %s7355_s13  }
  0x23   : > { %s10799_s29 = smov (!%p32_p9, %s34_s29), %s7346_s27  ;;  %s39_s10 = ssub.s32 %s7342_s26, %s10797_s20 }
  0x24   : > { %p51_p11 = scmp.eq.s32.totalorder %s7350_s28, 0  ;;  %p36_p12 = scmp.ge.s32.totalorder %s10799_s29, 2 }
  0x25   : > { %p7500_p13 = por %p7443_p2, %p50_p10  ;;  %p6851_p3 = scmp.lt.s32.totalorder %s7350_s28, 4 }
  0x26   : > { %p7504_p0 = por %p51_p11, %p50_p10  ;;  %s10801_s29 = smov (%p36_p12, %s10799_s29), 0 }
  0x27   : > { %s272_s13 = sand.u32 1, %s7330_s23   ;;  %s6747_s17 = sshll.u32 %s7342_s26, 5 }
  0x28   : > { %s38_s12 = ssub.s32 %s7346_s27, %s10801_s29  ;;  %s6468_s19 = sshll.u32 %s272_s13, 8 }
  0x29   : > { %s40_s14 = sor.u32 %s39_s10, %s38_s12  ;;  %s6471_s7 = sshll.u32 %s7346_s27, 6 }
  0x2a   : > { %p41_p4 = scmp.eq.s32.totalorder %s40_s14, 0  ;;  %s276_s21 = scalar_lea.vmem [#allocation2], %s6468_s19 }
  0x2b   : > { %s287_s18 = sshll.u32 %s276_s21, 4  ;;  %s282_s2 = sadd.s32 %s6747_s17, %s6471_s7  ;;  %s288_s18 = int_to_ptr.vmem [resolvable:$true] %s287_s18 }
  0x2c   : > { %s7517_s1 = scalar_select %p41_p4, %s7330_s23, %s43_s16  }
  0x2d   : > { %s6472_s3 = sshll.u32 %s282_s2, 3  ;;  %p6844_p2 = pnand %p6851_p3, %p7504_p0 }
  0x2e   : > { %s284_s6 = scalar_lea.hbm %s10718_s0, %s6472_s3  ;;  %s273_s10 = scalar_lea.sflag [#allocation3], %s272_s13 }
  0x2f   : > { %s285_s26 = sshll.u32 %s284_s6, 4  ;;  %s7358_s12 = smov 256   ;;  %s286_s26 = int_to_ptr.hbm [resolvable:$true] %s285_s26 }
  0x30   : > { %s7359_s14 = smov 16   ;;  %299 = sbr.rel (%p7455_p6) target bundleno = 1202 (0x4b2), region = 40 }
  0x31   : > { %6846 = dma.hbm_to_vmem [thread:$0]  (!%p6844_p2), %s286_s26, 4096, %s288_s18, %s273_s10, %s7358_s12, %s7358_s12, %s7359_s14  }
  0x32   : > { %s301_s16 = sand.u32 (!%p7455_p6), 1, %s7326_s22  }
  0x33   : > { %s7529_s2 = sshll.u32 (!%p7455_p6), %s301_s16, 8  ;;  %s302_s11 = scalar_lea.sflag (!%p7455_p6), [#allocation3], %s301_s16 }
  0x34   : > { %s7532_s17 = scalar_lea.vmem (!%p7455_p6), [#allocation2], %s7529_s2 }
  0x35   : > { %7309 = dma.done.wait (%p7451_p5), %s302_s11, 4096  }
  0x36   : > { %7311 = vsyncadd (%p7451_p5), %s302_s11, 4294963200 }
  0x37   : > { %7313 = dma.done.wait (%p7439_p1), [#allocation5], 64  }
  0x38   : > { %7315 = vsyncadd (%p7439_p1), [#allocation5], 4294967232 }
  0x39   : > { %7317 = dma.done.wait (%p7439_p1), [#allocation8], 8192  }
  0x3a   : > { %7319 = vsyncadd (%p7439_p1), [#allocation8], 4294959104  ;;  %v7547_v0 = vld [vmem:[%s7532_s17 + $0x20] sm:$0xff]  ;;  %v7550_v1 = vld [vmem:[%s7532_s17 + $0x28] sm:$0xff]  ;;  %v7360_v27 = vmov 256.0   ;;  %s7361_s3 = smov 64  }
  0x3b   : > { %v361_v2 = vld [vmem:[%s7532_s17] sm:$0xff]  ;;  %v401_v3 = vadd.f32 %v7550_v1, %v7547_v0  ;;  %v362_v4 = vld [vmem:[%s7532_s17 + $0x8] sm:$0xff]  ;;  %v367_v8 = vld [vmem:[%s7532_s17 + $0x30] sm:$0xff]  ;;  %7092 = vrcp.f32 %v7360_v27  ;;  %s8366_s4 = scalar_lea.vmem [#allocation10], %s7529_s2  ;;  %s9712_s6 = scalar_lea.vmem [#allocation11], %s7529_s2 }
  0x3c   : > { %v395_v5 = vadd.f32 %v362_v4, %v361_v2  ;;  %v369_v6 = vld [vmem:[%s7532_s17 + $0x40] sm:$0xff]  ;;  %v370_v7 = vld [vmem:[%s7532_s17 + $0x48] sm:$0xff]  ;;  %v368_v9 = vld [vmem:[%s7532_s17 + $0x38] sm:$0xff]  ;;  %s6739_s26 = sshll.u32 (%p7500_p13), %s7334_s24, 4  ;;  %s6740_s30 = sshll.u32 (%p7500_p13), %s7338_s25, 7 }
  0x3d   : > { %402 = vadd.xlane.f32.xlu1 %v401_v3  ;;  %v407_v10 = vadd.f32 %v370_v7, %v369_v6  ;;  %v363_v11 = vld [vmem:[%s7532_s17 + $0x10] sm:$0xff]  ;;  %v364_v12 = vld [vmem:[%s7532_s17 + $0x18] sm:$0xff]  ;;  %v404_v13 = vadd.f32 %v368_v9, %v367_v8  ;;  %v7577_v20 = vld [vmem:[%s7532_s17 + $0x60] sm:$0xff]  ;;  %s5715_s8 = sadd.s32 (%p7500_p13), %s6740_s30, %s6739_s26 }
  0x3e   : > { %396 = vadd.xlane.f32.xlu0 %v395_v5  ;;  %v7563_v14 = vld [vmem:[%s7532_s17 + $0x50] sm:$0xff]  ;;  %v7566_v15 = vld [vmem:[%s7532_s17 + $0x58] sm:$0xff]  ;;  %v398_v16 = vadd.f32 %v364_v12, %v363_v11  ;;  %v7580_v21 = vld [vmem:[%s7532_s17 + $0x68] sm:$0xff]  ;;  %s6741_s9 = sshll.u32 (%p7500_p13), %s5715_s8, 2 }
  0x3f   : > { %408 = vadd.xlane.f32.xlu2 %v407_v10  ;;  %v410_v17 = vadd.f32 %v7566_v15, %v7563_v14  ;;  %v7571_v18 = vld [vmem:[%s7532_s17 + $0x70] sm:$0xff]  ;;  %v7574_v19 = vld [vmem:[%s7532_s17 + $0x78] sm:$0xff]  ;;  %v413_v23 = vadd.f32 %v7580_v21, %v7577_v20  ;;  %v7587_v24 = vld [vmem:[%s7532_s17 + $0x80] sm:$0xff]  ;;  %s10557_s19 = scalar_lea.vmem (%p7500_p13), %s10723_s5, %s6741_s9 }
  0x40   : > { %v416_v22 = vadd.f32 %v7574_v19, %v7571_v18  ;;  %v7590_v25 = vld [vmem:[%s7532_s17 + $0x88] sm:$0xff]  ;;  %v7608_v47 = vld [vmem:[%s7532_s17 + $0x90] sm:$0xff]  ;;  %v7611_v48 = vld [vmem:[%s7532_s17 + $0x98] sm:$0xff] }
  0x41   : > { %v419_v26 = vadd.f32 %v7590_v25, %v7587_v24  ;;  %v7093_v28 = vpop.eup %7092  ;;  %v422_v55 = vadd.f32 %v7611_v48, %v7608_v47  ;;  %v7678_v27 = vld [vmem:[%s7532_s17 + $0xb0] sm:$0xff] }
  0x42   : > { %v444_v29 = vmul.f32 256.0, %v7093_v28  ;;  %vm448_vm0 = vweird.f32 %v7093_v28 }
  0x44   : > { %v445_v30 = vsub.f32 1.0, %v444_v29 }
  0x45   : > { %405 = vadd.xlane.f32.xlu1 %v404_v13 }
  0x46   : > { %399 = vadd.xlane.f32.xlu0 %v398_v16  ;;  %v446_v31 = vmul.f32 %v7093_v28, %v445_v30 }
  0x47   : > { %411 = vadd.xlane.f32.xlu2 %v410_v17 }
  0x48   : > { %v447_v32 = vadd.f32 %v7093_v28, %v446_v31 }
  0x4a   : > { %v7594_v33 = vsel %vm448_vm0, %v7093_v28, %v447_v32  ;;  %v7681_v28 = vld [vmem:[%s7532_s17 + $0xb8] sm:$0xff] }
  0x4d   : > { %417 = vadd.xlane.f32.xlu1 %v416_v22 }
  0x4e   : > { %414 = vadd.xlane.f32.xlu0 %v413_v23  ;;  %v7668_v23 = vld [vmem:[%s7532_s17 + $0xd0] sm:$0xff] }
  0x55   : > { %420 = vadd.xlane.f32.xlu1 %v419_v26  ;;  %v7671_v26 = vld [vmem:[%s7532_s17 + $0xd8] sm:$0xff] }
  0x56   : > { %v434_v29 = vadd.f32 %v7671_v26, %v7668_v23 }
  0xb0   : > { %v403_v34 = vpop.xlane.xlu1 %402 }
  0xb1   : > { %v397_v35 = vpop.xlane.xlu0 %396  ;;  %v452_v49 = vmul.f32 %v7594_v33, %v403_v34 }
  0xb2   : > { %v450_v36 = vmul.f32 %v7594_v33, %v397_v35  ;;  %v409_v39 = vpop.xlane.xlu2 %408  ;;  %v428_v35 = vadd.f32 %v7681_v28, %v7678_v27 }
  0xb3   : > { %v454_v46 = vmul.f32 %v7594_v33, %v409_v39  ;;  %v7634_v60 = vsub.f32 %v7547_v0, %v452_v49  ;;  %v7637_v61 = vsub.f32 %v7550_v1, %v452_v49  ;;  %v7695_v39 = vld [vmem:[%s7532_s17 + $0xe0] sm:$0xff] }
  0xb4   : > { %v7597_v37 = vsub.f32 %v361_v2, %v450_v36  ;;  %v7599_v38 = vsub.f32 %v362_v4, %v450_v36 }
  0xb5   : > { %v7625_v56 = vsub.f32 %v369_v6, %v454_v46  ;;  %v7627_v57 = vsub.f32 %v370_v7, %v454_v46  ;;  %v502_v6 = vmul.f32 %v7634_v60, %v7634_v60  ;;  %v503_v7 = vmul.f32 %v7637_v61, %v7637_v61 }
  0xb6   : > { %v498_v40 = vmul.f32 %v7597_v37, %v7597_v37  ;;  %v499_v41 = vmul.f32 %v7599_v38, %v7599_v38 }
  0xb7   : > { %v506_v5 = vmul.f32 %v7625_v56, %v7625_v56  ;;  %v507_v0 = vmul.f32 %v7627_v57, %v7627_v57  ;;  %v536_v16 = vadd.f32 %v503_v7, %v502_v6  ;;  %v6603_v6 = vld [vmem:[#allocation7 + $0xf0] sm:$0xf] }
  0xb8   : > { %v406_v42 = vpop.xlane.xlu1 %405  ;;  %v530_v43 = vadd.f32 %v499_v41, %v498_v40  ;;  %v7698_v40 = vld [vmem:[%s7532_s17 + $0xe8] sm:$0xff]  ;;  %v7705_v41 = vld [vmem:[%s7532_s17 + $0xc0] sm:$0xff] }
  0xb9   : > { %v453_v44 = vmul.f32 %v7594_v33, %v406_v42  ;;  %v400_v45 = vpop.xlane.xlu0 %399  ;;  %v542_v10 = vadd.f32 %v507_v0, %v506_v5  ;;  %v7708_v42 = vld [vmem:[%s7532_s17 + $0xc8] sm:$0xff] }
  0xba   : > { %v451_v50 = vmul.f32 %v7594_v33, %v400_v45  ;;  %531 = vadd.xlane.f32.xlu2 %v530_v43  ;;  %v412_v3 = vpop.xlane.xlu2 %411  ;;  %v437_v43 = vadd.f32 %v7698_v40, %v7695_v39  ;;  %v431_v46 = vadd.f32 %v7708_v42, %v7705_v41 }
  0xbb   : > { %v7615_v51 = vsub.f32 %v367_v8, %v453_v44  ;;  %v7617_v52 = vsub.f32 %v368_v9, %v453_v44  ;;  %v455_v1 = vmul.f32 %v7594_v33, %v412_v3  ;;  %v7653_v8 = vld [vmem:[%s7532_s17 + $0xa0] sm:$0xff]  ;;  %v7656_v9 = vld [vmem:[%s7532_s17 + $0xa8] sm:$0xff] }
  0xbc   : > { %v7619_v53 = vsub.f32 %v363_v11, %v451_v50  ;;  %v7621_v54 = vsub.f32 %v364_v12, %v451_v50  ;;  %v425_v13 = vadd.f32 %v7656_v9, %v7653_v8 }
  0xbd   : > { %v504_v58 = vmul.f32 %v7615_v51, %v7615_v51  ;;  %v505_v59 = vmul.f32 %v7617_v52, %v7617_v52  ;;  %v7659_v11 = vsub.f32 %v7563_v14, %v455_v1  ;;  %v7662_v12 = vsub.f32 %v7566_v15, %v455_v1  ;;  %v6539_v1 = vld [vmem:[#allocation7 + $0x70] sm:$0xf] }
  0xbe   : > { %v500_v62 = vmul.f32 %v7619_v53, %v7619_v53  ;;  %v501_v63 = vmul.f32 %v7621_v54, %v7621_v54 }
  0xbf   : > { %v539_v2 = vadd.f32 %v505_v59, %v504_v58  ;;  %v508_v14 = vmul.f32 %v7659_v11, %v7659_v11  ;;  %v509_v15 = vmul.f32 %v7662_v12, %v7662_v12  ;;  %v7726_v59 = vld [vmem:[%s7532_s17 + $0xf0] sm:$0xff] }
  0xc0   : > { %v533_v4 = vadd.f32 %v501_v63, %v500_v62  ;;  %v418_v30 = vpop.xlane.xlu1 %417 }
  0xc1   : > { %540 = vadd.xlane.f32.xlu1 %v539_v2  ;;  %v415_v17 = vpop.xlane.xlu0 %414  ;;  %v545_v34 = vadd.f32 %v509_v15, %v508_v14  ;;  %v457_v36 = vmul.f32 %v7594_v33, %v418_v30  ;;  %v6605_v14 = vld [vmem:[#allocation7 + $0xf8] sm:$0xf0]  ;;  %v6761_v30 = vld [vmem:[#allocation7 + $0x64] sm:$0xf0] }
  0xc2   : > { %423 = vadd.xlane.f32.xlu2 %v422_v55  ;;  %534 = vadd.xlane.f32.xlu0 %v533_v4  ;;  %v456_v22 = vmul.f32 %v7594_v33, %v415_v17 }
  0xc3   : > { %v7713_v44 = vsub.f32 %v7571_v18, %v457_v36  ;;  %v7716_v45 = vsub.f32 %v7574_v19, %v457_v36  ;;  %v7729_v19 = vld [vmem:[%s7532_s17 + $0xf8] sm:$0xff]  ;;  %v6777_v36 = vld [vmem:[#allocation7 + $0xe4] sm:$0xf0] }
  0xc4   : > { %v7686_v31 = vsub.f32 %v7577_v20, %v456_v22  ;;  %v7689_v32 = vsub.f32 %v7580_v21, %v456_v22  ;;  %v440_v3 = vadd.f32 %v7729_v19, %v7726_v59  ;;  %v6778_v22 = vld [vmem:[#allocation7 + $0xf4] sm:$0xf] }
  0xc5   : > { %v512_v58 = vmul.f32 %v7713_v44, %v7713_v44  ;;  %v513_v18 = vmul.f32 %v7716_v45, %v7716_v45  ;;  %v6608_v15 = vor.u32 %v6778_v22, %v6605_v14  ;;  %v6773_v22 = vld [vmem:[#allocation7 + $0xc4] sm:$0xf0]  ;;  %v6756_v14 = vld [vmem:[#allocation7 + $0x44] sm:$0xf] }
  0xc6   : > { %v510_v20 = vmul.f32 %v7686_v31, %v7686_v31  ;;  %v511_v21 = vmul.f32 %v7689_v32, %v7689_v32 }
  0xc7   : > { %v551_v2 = vadd.f32 %v513_v18, %v512_v58  ;;  %1231 = vmatpush.bf16.msra.mxu3 %v6608_v15  ;;  %v6523_v58 = vld [vmem:[#allocation7 + $0x50] sm:$0xf]  ;;  %v6759_v18 = vld [vmem:[#allocation7 + $0x54] sm:$0xf0]  ;;  %v6517_v15 = vld [vmem:[#allocation7 + $0x48] sm:$0xf0] }
  0xc8   : > { %v548_v49 = vadd.f32 %v511_v21, %v510_v20  ;;  %v421_v50 = vpop.xlane.xlu1 %420  ;;  %v6760_v20 = vld [vmem:[#allocation7 + $0x64] sm:$0xf]  ;;  %v6533_v21 = vld [vmem:[#allocation7 + $0x68] sm:$0xf0] }
  0xc9   : > { %543 = vadd.xlane.f32.xlu1 %v542_v10  ;;  %v458_v55 = vmul.f32 %v7594_v33, %v421_v50  ;;  %v6762_v10 = vld [vmem:[#allocation7 + $0x74] sm:$0xf]  ;;  %v6597_v50 = vld [vmem:[#allocation7 + $0xe8] sm:$0xf0] }
  0xca   : > { %426 = vadd.xlane.f32.xlu2 %v425_v13  ;;  %537 = vadd.xlane.f32.xlu0 %v536_v16  ;;  %v6541_v13 = vld [vmem:[#allocation7 + $0x78] sm:$0xf0] }
  0xcb   : > { %v7732_v62 = vsub.f32 %v7587_v24, %v458_v55  ;;  %v7735_v63 = vsub.f32 %v7590_v25, %v458_v55  ;;  %v6763_v24 = vld [vmem:[#allocation7 + $0x74] sm:$0xf0]  ;;  %v6544_v17 = vor.u32 %v6762_v10, %v6541_v13  ;;  %v6515_v10 = vld [vmem:[#allocation7 + $0x40] sm:$0xf]  ;;  %v6757_v13 = vld [vmem:[#allocation7 + $0x44] sm:$0xf0] }
  0xcc   : > { %v6540_v7 = vor.u32 %v6763_v24, %v6539_v1  ;;  %v6779_v25 = vld [vmem:[#allocation7 + $0xf4] sm:$0xf0] }
  0xcd   : > { %v514_v4 = vmul.f32 %v7732_v62, %v7732_v62  ;;  %v515_v5 = vmul.f32 %v7735_v63, %v7735_v63  ;;  %v6604_v16 = vor.u32 %v6779_v25, %v6603_v6  ;;  %1182 = vmatpush.bf16.msra.mxu2 %v6544_v17  ;;  %v6774_v6 = vld [vmem:[#allocation7 + $0xd4] sm:$0xf]  ;;  %v6516_v17 = vor.u32 %v6757_v13, %v6515_v10 }
  0xce   : > { %1084 = vmatpush.bf16.msra.mxu0 %v6540_v7  ;;  %v6589_v7 = vld [vmem:[#allocation7 + $0xd8] sm:$0xf0] }
  0xcf   : > { %v554_v0 = vadd.f32 %v515_v5, %v514_v4  ;;  %1133 = vmatpush.bf16.msra.mxu1 %v6604_v16  ;;  %v6775_v4 = vld [vmem:[#allocation7 + $0xd4] sm:$0xf0]  ;;  %v6758_v5 = vld [vmem:[#allocation7 + $0x54] sm:$0xf]  ;;  %v6592_v25 = vor.u32 %v6774_v6, %v6589_v7  ;;  %v6579_v16 = vld [vmem:[#allocation7 + $0xc0] sm:$0xf] }
  0xd0   : > { %v6769_v6 = vld [vmem:[#allocation7 + $0xa4] sm:$0xf0]  ;;  %v6752_v7 = vld [vmem:[#allocation7 + $0x24] sm:$0xf] }
  0xd1   : > { %435 = vadd.xlane.f32.xlu1 %v434_v29  ;;  %v6531_v29 = vld [vmem:[#allocation7 + $0x60] sm:$0xf] }
  0xd2   : > { %546 = vadd.xlane.f32.xlu2 %v545_v34  ;;  %429 = vadd.xlane.f32.xlu0 %v428_v35  ;;  %v6595_v34 = vld [vmem:[#allocation7 + $0xe0] sm:$0xf]  ;;  %v6532_v35 = vor.u32 %v6761_v30, %v6531_v29  ;;  %v6580_v29 = vor.u32 %v6773_v22, %v6579_v16  ;;  %v6520_v30 = vor.u32 %v6756_v14, %v6517_v15  ;;  %v6768_v16 = vld [vmem:[#allocation7 + $0xa4] sm:$0xf]  ;;  %v6491_v15 = vld [vmem:[#allocation7 + $0x10] sm:$0xf] }
  0xd4   : > { %1085 = vmatpush.bf16.msra.mxu0 %v6532_v35  ;;  %v6581_v35 = vld [vmem:[#allocation7 + $0xc8] sm:$0xf0] }
  0xd9   : > { %438 = vadd.xlane.f32.xlu1 %v437_v43  ;;  %v6596_v43 = vor.u32 %v6777_v36, %v6595_v34  ;;  %v6772_v34 = vld [vmem:[#allocation7 + $0xc4] sm:$0xf] }
  0xda   : > { %432 = vadd.xlane.f32.xlu0 %v431_v46  ;;  %549 = vadd.xlane.f32.xlu2 %v548_v49  ;;  %v6536_v46 = vor.u32 %v6760_v20, %v6533_v21  ;;  %v6776_v49 = vld [vmem:[#allocation7 + $0xe4] sm:$0xf]  ;;  %v6584_v36 = vor.u32 %v6772_v34, %v6581_v35  ;;  %v6507_v20 = vld [vmem:[#allocation7 + $0x30] sm:$0xf]  ;;  %v6755_v21 = vld [vmem:[#allocation7 + $0x34] sm:$0xf0] }
  0xdb   : > { %v6600_v55 = vor.u32 %v6776_v49, %v6597_v50  ;;  %1134 = vmatpush.bf16.msra.mxu1 %v6596_v43  ;;  %v6571_v43 = vld [vmem:[#allocation7 + $0xb0] sm:$0xf]  ;;  %v6771_v49 = vld [vmem:[#allocation7 + $0xb4] sm:$0xf0]  ;;  %v6754_v50 = vld [vmem:[#allocation7 + $0x34] sm:$0xf] }
  0xdc   : > { %1183 = vmatpush.bf16.msra.mxu2 %v6536_v46  ;;  %v6508_v46 = vor.u32 %v6755_v21, %v6507_v20  ;;  %v6750_v20 = vld [vmem:[#allocation7 + $0x14] sm:$0xf]  ;;  %v6493_v21 = vld [vmem:[#allocation7 + $0x18] sm:$0xf0] }
  0xdd   : > { %1232 = vmatpush.bf16.msra.mxu3 %v6600_v55  ;;  %v6509_v55 = vld [vmem:[#allocation7 + $0x38] sm:$0xf0] }
  0xe1   : > { %1233 = vmatpush.bf16.msra.mxu3 %v6592_v25  ;;  %v6501_v25 = vld [vmem:[#allocation7 + $0x28] sm:$0xf0] }
  0xe2   : > { %552 = vadd.xlane.f32.xlu0 %v551_v2  ;;  %441 = vadd.xlane.f32.xlu2 %v440_v3  ;;  %v6587_v2 = vld [vmem:[#allocation7 + $0xd0] sm:$0xf]  ;;  %v6524_v3 = vor.u32 %v6759_v18, %v6523_v58  ;;  %v6572_v58 = vor.u32 %v6771_v49, %v6571_v43  ;;  %v6512_v18 = vor.u32 %v6754_v50, %v6509_v55  ;;  %v6766_v49 = vld [vmem:[#allocation7 + $0x94] sm:$0xf]  ;;  %v6557_v50 = vld [vmem:[#allocation7 + $0x98] sm:$0xf0] }
  0xe3   : > { %v6588_v1 = vor.u32 %v6775_v4, %v6587_v2  ;;  %v6770_v2 = vld [vmem:[#allocation7 + $0xb4] sm:$0xf]  ;;  %v6504_v13 = vor.u32 %v6752_v7, %v6501_v25 }
  0xe4   : > { %1086 = vmatpush.bf16.msra.mxu0 %v6524_v3  ;;  %v6573_v3 = vld [vmem:[#allocation7 + $0xb8] sm:$0xf0] }
  0xe5   : > { %1135 = vmatpush.bf16.msra.mxu1 %v6588_v1  ;;  %1234 = vmatpush.bf16.msra.mxu3 %v6584_v36  ;;  %v6576_v4 = vor.u32 %v6770_v2, %v6573_v3  ;;  %v6563_v1 = vld [vmem:[#allocation7 + $0xa0] sm:$0xf]  ;;  %v6767_v36 = vld [vmem:[#allocation7 + $0x94] sm:$0xf0]  ;;  %v6749_v2 = vld [vmem:[#allocation7 + $0x4] sm:$0xf0] }
  0xe6   : > { %v6564_v10 = vor.u32 %v6769_v6, %v6563_v1  ;;  %v6547_v3 = vld [vmem:[#allocation7 + $0x80] sm:$0xf]  ;;  %v6748_v1 = vld [vmem:[#allocation7 + $0x4] sm:$0xf] }
  0xe8   : > { %1087 = vmatpush.bf16.msra.mxu0 %v6516_v17  ;;  %v6565_v17 = vld [vmem:[#allocation7 + $0xa8] sm:$0xf0] }
  0xe9   : > { %1136 = vmatpush.bf16.msra.mxu1 %v6580_v29  ;;  %1235 = vmatpush.bf16.msra.mxu3 %v6576_v4  ;;  %v6568_v22 = vor.u32 %v6768_v16, %v6565_v17  ;;  %v6751_v29 = vld [vmem:[#allocation7 + $0x14] sm:$0xf0]  ;;  %v6764_v16 = vld [vmem:[#allocation7 + $0x84] sm:$0xf]  ;;  %v6549_v17 = vld [vmem:[#allocation7 + $0x88] sm:$0xf0] }
  0xea   : > { %555 = vadd.xlane.f32.xlu0 %v554_v0  ;;  %v6525_v0 = vld [vmem:[#allocation7 + $0x58] sm:$0xf0]  ;;  %v6492_v35 = vor.u32 %v6751_v29, %v6491_v15  ;;  %v6552_v15 = vor.u32 %v6764_v16, %v6549_v17 }
  0xeb   : > { %v6528_v24 = vor.u32 %v6758_v5, %v6525_v0  ;;  %v6499_v5 = vld [vmem:[#allocation7 + $0x20] sm:$0xf]  ;;  %v6753_v0 = vld [vmem:[#allocation7 + $0x24] sm:$0xf0] }
  0xec   : > { %1088 = vmatpush.bf16.msra.mxu0 %v6508_v46  ;;  %v6496_v46 = vor.u32 %v6750_v20, %v6493_v21 }
  0xed   : > { %1184 = vmatpush.bf16.msra.mxu2 %v6528_v24  ;;  %1137 = vmatpush.bf16.msra.mxu1 %v6572_v58  ;;  %v6500_v24 = vor.u32 %v6753_v0, %v6499_v5  ;;  %v6560_v58 = vor.u32 %v6766_v49, %v6557_v50  ;;  %v6765_v0 = vld [vmem:[#allocation7 + $0x84] sm:$0xf0] }
  0xee   : > { %1236 = vmatpush.bf16.msra.mxu3 %v6568_v22 }
  0xf0   : > { %1089 = vmatpush.bf16.msra.mxu0 %v6500_v24  ;;  %v6485_v24 = vld [vmem:[#allocation7 + $0x8] sm:$0xf0] }
  0xf1   : > { %1185 = vmatpush.bf16.msra.mxu2 %v6520_v30  ;;  %1138 = vmatpush.bf16.msra.mxu1 %v6564_v10  ;;  %v6555_v30 = vld [vmem:[#allocation7 + $0x90] sm:$0xf]  ;;  %v6548_v10 = vor.u32 %v6765_v0, %v6547_v3 }
  0xf2   : > { %v6556_v43 = vor.u32 %v6767_v36, %v6555_v30  ;;  %1237 = vmatpush.bf16.msra.mxu3 %v6560_v58 }
  0xf4   : > { %1090 = vmatpush.bf16.msra.mxu0 %v6492_v35 }
  0xf5   : > { %1186 = vmatpush.bf16.msra.mxu2 %v6512_v18  ;;  %1139 = vmatpush.bf16.msra.mxu1 %v6556_v43  ;;  %v6483_v18 = vld [vmem:[#allocation7] sm:$0xf] }
  0xf6   : > { %v6484_v5 = vor.u32 %v6749_v2, %v6483_v18  ;;  %1238 = vmatpush.bf16.msra.mxu3 %v6552_v15 }
  0xf8   : > { %1091 = vmatpush.bf16.msra.mxu0 %v6484_v5 }
  0xf9   : > { %1187 = vmatpush.bf16.msra.mxu2 %v6504_v13  ;;  %v6488_v13 = vor.u32 %v6748_v1, %v6485_v24  ;;  %1140 = vmatpush.bf16.msra.mxu1 %v6548_v10 }
  0xfd   : > { %1188 = vmatpush.bf16.msra.mxu2 %v6496_v46 }
 0x101   : > { %1189 = vmatpush.bf16.msra.mxu2 %v6488_v13 }
 0x12d   : > { %v532_v14 = vpop.xlane.xlu2 %531 }
 0x12e   : > { %v578_v34 = vmul.f32 %v532_v14, %v7594_v33 }
 0x130   : > { %v7744_v55 = vadd.f32 1e-05, %v578_v34 }
 0x132   : > { %7094 = vrsqrt.f32 %v7744_v55  ;;  %vm616_vm2 = vweird.f32 %v7744_v55 }
 0x134   : > { %v541_v4 = vpop.xlane.xlu1 %540 }
 0x135   : > { %v581_v6 = vmul.f32 %v541_v4, %v7594_v33  ;;  %v424_v7 = vpop.xlane.xlu2 %423  ;;  %v535_v25 = vpop.xlane.xlu0 %534 }
 0x136   : > { %v459_v22 = vmul.f32 %v7594_v33, %v424_v7  ;;  %v579_v14 = vmul.f32 %v535_v25, %v7594_v33 }
 0x137   : > { %v7750_v29 = vadd.f32 1e-05, %v581_v6 }
 0x138   : > { %v7095_v30 = vpop.eup %7094  ;;  %v7753_v34 = vsub.f32 %v7608_v47, %v459_v22  ;;  %v7756_v35 = vsub.f32 %v7611_v48, %v459_v22  ;;  %v595_v36 = vadd.f32 1e-05, %v579_v14 }
 0x139   : > { %v611_v20 = vmul.f32 %v7095_v30, %v7744_v55  ;;  %7096 = vrsqrt.f32 %v7750_v29  ;;  %vm617_vm1 = vweird.f32 %v7095_v30  ;;  %vm646_vm7 = vweird.f32 %v7750_v29 }
 0x13a   : > { %7098 = vrsqrt.f32 %v595_v36  ;;  %v516_v21 = vmul.f32 %v7753_v34, %v7753_v34  ;;  %v517_v43 = vmul.f32 %v7756_v35, %v7756_v35  ;;  %vm618_vm4 = vmor %vm616_vm2, %vm617_vm1  ;;  %vm626_vm5 = vweird.f32 %v595_v36 }
 0x13b   : > { %v612_v46 = vmul.f32 %v7095_v30, %v611_v20 }
 0x13c   : > { %v544_v49 = vpop.xlane.xlu1 %543  ;;  %v557_v47 = vadd.f32 %v517_v43, %v516_v21 }
 0x13d   : > { %v613_v50 = vmul.f32 0.5, %v612_v46  ;;  %v427_v58 = vpop.xlane.xlu2 %426  ;;  %v538_v48 = vpop.xlane.xlu0 %537 }
 0x13e   : > { %v460_v18 = vmul.f32 %v7594_v33, %v427_v58  ;;  %v580_v2 = vmul.f32 %v538_v48, %v7594_v33  ;;  %558 = vadd.xlane.f32.xlu1 %v557_v47  ;;  %v394_v58 = vld [vmem:[#allocation6] sm:$0x3] }
 0x13f   : > { %v7766_v3 = vpop.eup %7096  ;;  %v614_v1 = vsub.f32 1.5, %v613_v50  ;;  %v393_v50 = vld [vmem:[#allocation4] sm:$0x3] }
 0x140   : > { %v7099_v4 = vpop.eup %7098  ;;  %v7769_v5 = vsub.f32 %v7653_v8, %v460_v18  ;;  %v7772_v0 = vsub.f32 %v7656_v9, %v460_v18  ;;  %v7774_v6 = vadd.f32 1e-05, %v580_v2  ;;  %v641_v25 = vmul.f32 %v7766_v3, %v7750_v29 }
 0x141   : > { %v621_v24 = vmul.f32 %v7099_v4, %v595_v36  ;;  %v582_v8 = vmul.f32 %v544_v49, %v7594_v33  ;;  %v615_v16 = vmul.f32 %v7095_v30, %v614_v1  ;;  %vm627_vm3 = vweird.f32 %v7099_v4 }
 0x142   : > { %v518_v7 = vmul.f32 %v7769_v5, %v7769_v5  ;;  %v519_v13 = vmul.f32 %v7772_v0, %v7772_v0  ;;  %7100 = vrsqrt.f32 %v7774_v6  ;;  %v642_v46 = vmul.f32 %v7766_v3, %v641_v25  ;;  %vm628_vm6 = vmor %vm626_vm5, %vm627_vm3 }
 0x143   : > { %v622_v10 = vmul.f32 %v7099_v4, %v621_v24  ;;  %v7793_v48 = vadd.f32 1e-05, %v582_v8  ;;  %v619_v18 = vsel %vm618_vm4, %v7095_v30, %v615_v16  ;;  %v7809_v36 = vperm.slane %v393_v50, 0 }
 0x144   : > { %v436_v9 = vpop.xlane.xlu1 %435  ;;  %v560_v20 = vadd.f32 %v519_v13, %v518_v7  ;;  %v7811_v25 = vperm.slane %v394_v58, 0  ;;  %v643_v30 = vmul.f32 0.5, %v642_v46  ;;  %v770_v13 = vmul.f32 %v619_v18, %v7597_v37 }
 0x145   : > { %v623_v17 = vmul.f32 0.5, %v622_v10  ;;  %v463_v22 = vmul.f32 %v7594_v33, %v436_v9  ;;  %v547_v14 = vpop.xlane.xlu2 %546  ;;  %v430_v15 = vpop.xlane.xlu0 %429  ;;  %v7819_v9 = vperm.slane %v393_v50, 1  ;;  %v771_v37 = vmul.f32 %v619_v18, %v7599_v38 }
 0x146   : > { %v583_v21 = vmul.f32 %v547_v14, %v7594_v33  ;;  %v461_v43 = vmul.f32 %v7594_v33, %v430_v15  ;;  %561 = vadd.xlane.f32.xlu2 %v560_v20  ;;  %vm647_vm8 = vweird.f32 %v7766_v3  ;;  %v807_v18 = vmul.f32 %v7809_v36, %v770_v13 }
 0x147   : > { %v624_v47 = vsub.f32 1.5, %v623_v17  ;;  %v7790_v49 = vsub.f32 %v7668_v23, %v463_v22  ;;  %v7798_v1 = vsub.f32 %v7671_v26, %v463_v22  ;;  %vm636_vm9 = vweird.f32 %v7774_v6  ;;  %vm7870_vm11 = vmor %vm646_vm7, %vm647_vm8 }
 0x148   : > { %v7795_v55 = vadd.f32 1e-05, %v583_v21  ;;  %v7801_v24 = vsub.f32 %v7678_v27, %v461_v43  ;;  %v7803_v23 = vpop.eup %7100  ;;  %v7807_v7 = vsub.f32 %v7681_v28, %v461_v43  ;;  %v7821_v28 = vperm.slane %v394_v58, 1 }
 0x149   : > { %v625_v2 = vmul.f32 %v7099_v4, %v624_v47  ;;  %v631_v26 = vmul.f32 %v7803_v23, %v7774_v6  ;;  %v524_v27 = vmul.f32 %v7790_v49, %v7790_v49  ;;  %v525_v14 = vmul.f32 %v7798_v1, %v7798_v1 }
 0x14a   : > { %7102 = vrsqrt.f32 %v7795_v55  ;;  %v520_v15 = vmul.f32 %v7801_v24, %v7801_v24  ;;  %v521_v21 = vmul.f32 %v7807_v7, %v7807_v7  ;;  %v644_v43 = vsub.f32 1.5, %v643_v30 }
 0x14b   : > { %v629_v10 = vsel %vm628_vm6, %v7099_v4, %v625_v2  ;;  %7104 = vrsqrt.f32 %v7793_v48  ;;  %v632_v16 = vmul.f32 %v7803_v23, %v631_v26  ;;  %v569_v50 = vadd.f32 %v525_v14, %v524_v27 }
 0x14c   : > { %v439_v8 = vpop.xlane.xlu1 %438  ;;  %v772_v20 = vmul.f32 %v629_v10, %v7619_v53  ;;  %v773_v2 = vmul.f32 %v629_v10, %v7621_v54  ;;  %v808_v13 = vmul.f32 %v7819_v9, %v771_v37  ;;  %vm637_vm10 = vweird.f32 %v7803_v23 }
 0x14d   : > { %v464_v17 = vmul.f32 %v7594_v33, %v439_v8  ;;  %v550_v4 = vpop.xlane.xlu2 %549  ;;  %v433_v22 = vpop.xlane.xlu0 %432  ;;  %v633_v46 = vmul.f32 0.5, %v632_v16  ;;  %v563_v8 = vadd.f32 %v521_v21, %v520_v15  ;;  %v645_v16 = vmul.f32 %v7766_v3, %v644_v43  ;;  %vm638_vm12 = vmor %vm636_vm9, %vm637_vm10 }
 0x14e   : > { %v462_v47 = vmul.f32 %v7594_v33, %v433_v22  ;;  %v584_v38 = vmul.f32 %v550_v4, %v7594_v33  ;;  %570 = vadd.xlane.f32.xlu2 %v569_v50  ;;  %v809_v10 = vmul.f32 %v7809_v36, %v772_v20  ;;  %v844_v4 = vadd.f32 %v7811_v25, %v807_v18 }
 0x14f   : > { %v634_v26 = vsub.f32 1.5, %v633_v46  ;;  %v7842_v53 = vsub.f32 %v7695_v39, %v464_v17  ;;  %v7845_v30 = vsub.f32 %v7698_v40, %v464_v17  ;;  %564 = vadd.xlane.f32.xlu0 %v563_v8  ;;  %v810_v14 = vmul.f32 %v7819_v9, %v773_v2 }
 0x150   : > { %v7835_v58 = vpop.eup %7102  ;;  %v7858_v40 = vsub.f32 %v7705_v41, %v462_v47  ;;  %v7861_v17 = vsub.f32 %v7708_v42, %v462_v47  ;;  %v846_v22 = vadd.f32 %v7811_v25, %v809_v10  ;;  %v7876_v37 = vadd.f32 1e-05, %v584_v38 }
 0x151   : > { %v7847_v27 = vpop.eup %7104  ;;  %v661_v54 = vmul.f32 %v7835_v58, %v7795_v55  ;;  %v635_v39 = vmul.f32 %v7803_v23, %v634_v26  ;;  %v526_v21 = vmul.f32 %v7842_v53, %v7842_v53  ;;  %v527_v43 = vmul.f32 %v7845_v30, %v7845_v30 }
 0x152   : > { %v651_v41 = vmul.f32 %v7847_v27, %v7793_v48  ;;  %v7885_v46 = vpack.c.bf16 %v846_v22, %v844_v4  ;;  %v845_v47 = vadd.f32 %v7821_v28, %v808_v13  ;;  %v847_v50 = vadd.f32 %v7821_v28, %v810_v14 }
 0x153   : > { %v662_v29 = vmul.f32 %v7835_v58, %v661_v54  ;;  %v639_v2 = vsel %vm638_vm12, %v7803_v23, %v635_v39  ;;  %v572_v26 = vadd.f32 %v527_v43, %v526_v21  ;;  %v522_v6 = vmul.f32 %v7858_v40, %v7858_v40 }
 0x154   : > { %1092 = vmatmul.bf16.vlgmr.msra.gmra.mxu0 %v7885_v46  ;;  %v7893_v8 = vpack.c.bf16 %v847_v50, %v845_v47  ;;  %1190 = vmatmul.bf16.vlgmr.msra.gmra.mxu2 %v7885_v46  ;;  %v523_v54 = vmul.f32 %v7861_v17, %v7861_v17  ;;  %v649_v23 = vsel %vm7870_vm11, %v7766_v3, %v645_v16  ;;  %7106 = vrsqrt.f32 %v7876_v37 }
 0x155   : > { %v442_v42 = vpop.xlane.xlu2 %441  ;;  %v553_v20 = vpop.xlane.xlu0 %552  ;;  %v652_v10 = vmul.f32 %v7847_v27, %v651_v41  ;;  %v774_v39 = vmul.f32 %v639_v2, %v7634_v60  ;;  %v776_v3 = vmul.f32 %v649_v23, %v7615_v51  ;;  %v777_v15 = vmul.f32 %v649_v23, %v7617_v52 }
 0x156   : > { %v465_v38 = vmul.f32 %v7594_v33, %v442_v42  ;;  %v585_v18 = vmul.f32 %v553_v20, %v7594_v33  ;;  %1141 = vmatmul.bf16.vlgmr.msra.gmra.mxu1 %v7893_v8  ;;  %1239 = vmatmul.bf16.vlgmr.msra.gmra.mxu3 %v7893_v8  ;;  %v566_v14 = vadd.f32 %v523_v54, %v522_v6  ;;  %v663_v42 = vmul.f32 0.5, %v662_v29 }
 0x157   : > { %573 = vadd.xlane.f32.xlu0 %v572_v26  ;;  %v653_v16 = vmul.f32 0.5, %v652_v10  ;;  %v811_v41 = vmul.f32 %v7809_v36, %v774_v39  ;;  %v813_v51 = vmul.f32 %v7809_v36, %v776_v3  ;;  %vm666_vm13 = vweird.f32 %v7795_v55 }
 0x158   : > { %v7905_v13 = vsub.f32 %v7726_v59, %v465_v38  ;;  %v7911_v4 = vsub.f32 %v7729_v19, %v465_v38  ;;  %v7913_v22 = vadd.f32 1e-05, %v585_v18  ;;  %v775_v59 = vmul.f32 %v639_v2, %v7637_v61  ;;  %567 = vadd.xlane.f32.xlu1 %v566_v14 }
 0x159   : > { %v664_v20 = vsub.f32 1.5, %v663_v42  ;;  %v654_v29 = vsub.f32 1.5, %v653_v16  ;;  %vm667_vm14 = vweird.f32 %v7835_v58  ;;  %v848_v50 = vadd.f32 %v7811_v25, %v811_v41  ;;  %v6669_v16 = vld [vmem:[#allocation9 + $0x78] sm:$0xf0]  ;;  %v6667_v41 = vld [vmem:[#allocation9 + $0x70] sm:$0xf] }
 0x15a   : > { %7108 = vrsqrt.f32 %v7913_v22  ;;  %v528_v60 = vmul.f32 %v7905_v13, %v7905_v13  ;;  %v529_v19 = vmul.f32 %v7911_v4, %v7911_v4  ;;  %v812_v61 = vmul.f32 %v7819_v9, %v775_v59  ;;  %v7927_v43 = vpop.eup %7106  ;;  %vm668_vm1 = vmor %vm666_vm13, %vm667_vm14 }
 0x15b   : > { %v814_v52 = vmul.f32 %v7819_v9, %v777_v15  ;;  %vm656_vm15 = vweird.f32 %v7793_v48  ;;  %vm657_vm0 = vweird.f32 %v7847_v27  ;;  %v665_v2 = vmul.f32 %v7835_v58, %v664_v20  ;;  %v6733_v15 = vld [vmem:[#allocation9 + $0xf8] sm:$0xf0] }
 0x15c   : > { %v575_v21 = vadd.f32 %v529_v19, %v528_v60  ;;  %v850_v55 = vadd.f32 %v7811_v25, %v813_v51  ;;  %v849_v18 = vadd.f32 %v7821_v28, %v812_v61  ;;  %v655_v26 = vmul.f32 %v7847_v27, %v654_v29  ;;  %vm658_vm2 = vmor %vm656_vm15, %vm657_vm0  ;;  %v6794_v60 = vld [vmem:[#allocation9 + $0x74] sm:$0xf]  ;;  %v6795_v51 = vld [vmem:[#allocation9 + $0x74] sm:$0xf0] }
 0x15d   : > { %v671_v6 = vmul.f32 %v7927_v43, %v7876_v37  ;;  %v851_v23 = vadd.f32 %v7821_v28, %v814_v52  ;;  %v669_v10 = vsel %vm668_vm1, %v7835_v58, %v665_v2  ;;  %v6672_v58 = vor.u32 %v6794_v60, %v6669_v16  ;;  %v6810_v19 = vld [vmem:[#allocation9 + $0xf4] sm:$0xf]  ;;  %v6731_v61 = vld [vmem:[#allocation9 + $0xf0] sm:$0xf]  ;;  %v6811_v29 = vld [vmem:[#allocation9 + $0xf4] sm:$0xf0] }
 0x15e   : > { %v7946_v54 = vpack.c.bf16 %v850_v55, %v848_v50  ;;  %v659_v14 = vsel %vm658_vm2, %v7847_v27, %v655_v26  ;;  %v780_v3 = vmul.f32 %v669_v10, %v7659_v11  ;;  %v6736_v27 = vor.u32 %v6810_v19, %v6733_v15  ;;  %v6792_v2 = vld [vmem:[#allocation9 + $0x64] sm:$0xf] }
 0x15f   : > { %v7951_v39 = vpack.c.bf16 %v851_v23, %v849_v18  ;;  %v672_v42 = vmul.f32 %v7927_v43, %v671_v6  ;;  %v778_v20 = vmul.f32 %v659_v14, %v7625_v56  ;;  %1570 = vmatpush.bf16.msrb.mxu2 %v6672_v58  ;;  %v6668_v50 = vor.u32 %v6795_v51, %v6667_v41  ;;  %v6808_v6 = vld [vmem:[#allocation9 + $0xe4] sm:$0xf]  ;;  %v6725_v56 = vld [vmem:[#allocation9 + $0xe8] sm:$0xf0]  ;;  %v6653_v58 = vld [vmem:[#allocation9 + $0x58] sm:$0xf0] }
 0x160   : > { %v7931_v47 = vpop.eup %7108  ;;  %576 = vadd.xlane.f32.xlu1 %v575_v21  ;;  %v781_v21 = vmul.f32 %v669_v10, %v7662_v12  ;;  %v6732_v52 = vor.u32 %v6811_v29, %v6731_v61  ;;  %v779_v55 = vmul.f32 %v659_v14, %v7627_v57  ;;  %v817_v18 = vmul.f32 %v7809_v36, %v780_v3  ;;  %v6793_v10 = vld [vmem:[#allocation9 + $0x64] sm:$0xf0]  ;;  %v6790_v3 = vld [vmem:[#allocation9 + $0x54] sm:$0xf] }
 0x161   : > { %v681_v38 = vmul.f32 %v7931_v47, %v7913_v22  ;;  %v673_v11 = vmul.f32 0.5, %v672_v42  ;;  %1619 = vmatpush.bf16.msrb.mxu3 %v6736_v27  ;;  %1472 = vmatpush.bf16.msrb.mxu0 %v6668_v50  ;;  %v6728_v23 = vor.u32 %v6808_v6, %v6725_v56  ;;  %v6723_v42 = vld [vmem:[#allocation9 + $0xe0] sm:$0xf]  ;;  %vm686_vm3 = vweird.f32 %v7913_v22  ;;  %v6809_v14 = vld [vmem:[#allocation9 + $0xe4] sm:$0xf0] }
 0x162   : > { %1521 = vmatpush.bf16.msrb.mxu1 %v6732_v52  ;;  %v815_v60 = vmul.f32 %v7809_v36, %v778_v20  ;;  %v818_v16 = vmul.f32 %v7819_v9, %v781_v21  ;;  %vm687_vm4 = vweird.f32 %v7931_v47  ;;  %v6656_v15 = vor.u32 %v6790_v3, %v6653_v58  ;;  %v6806_v41 = vld [vmem:[#allocation9 + $0xd4] sm:$0xf]  ;;  %v6717_v27 = vld [vmem:[#allocation9 + $0xd8] sm:$0xf0]  ;;  %v6651_v58 = vld [vmem:[#allocation9 + $0x50] sm:$0xf] }
 0x163   : > { %v682_v48 = vmul.f32 %v7931_v47, %v681_v38  ;;  %v6661_v38 = vld [vmem:[#allocation9 + $0x68] sm:$0xf0]  ;;  %v674_v19 = vsub.f32 1.5, %v673_v11  ;;  %v854_v51 = vadd.f32 %v7811_v25, %v817_v18  ;;  %v816_v61 = vmul.f32 %v7819_v9, %v779_v55  ;;  %vm688_vm7 = vmor %vm686_vm3, %vm687_vm4 }
 0x164   : > { %1097 = vmatmul.bf16.gmra.mxu0 %v7946_v54  ;;  %1195 = vmatmul.bf16.gmra.mxu2 %v7946_v54  ;;  %v6664_v26 = vor.u32 %v6792_v2, %v6661_v38  ;;  %v6720_v20 = vor.u32 %v6806_v41, %v6717_v27  ;;  %vm676_vm5 = vweird.f32 %v7876_v37  ;;  %vm677_vm6 = vweird.f32 %v7927_v43  ;;  %v6807_v27 = vld [vmem:[#allocation9 + $0xd4] sm:$0xf0] }
 0x165   : > { %v683_v59 = vmul.f32 0.5, %v682_v48  ;;  %v6659_v48 = vld [vmem:[#allocation9 + $0x60] sm:$0xf]  ;;  %1620 = vmatpush.bf16.msrb.mxu3 %v6728_v23  ;;  %v852_v29 = vadd.f32 %v7811_v25, %v815_v60  ;;  %v855_v11 = vadd.f32 %v7821_v28, %v818_v16  ;;  %v675_v50 = vmul.f32 %v7927_v43, %v674_v19  ;;  %vm678_vm8 = vmor %vm676_vm5, %vm677_vm6  ;;  %v6791_v19 = vld [vmem:[#allocation9 + $0x54] sm:$0xf0] }
 0x166   : > { %1146 = vmatmul.bf16.gmra.mxu1 %v7951_v39  ;;  %1244 = vmatmul.bf16.gmra.mxu3 %v7951_v39  ;;  %v6660_v57 = vor.u32 %v6793_v10, %v6659_v48  ;;  %v853_v52 = vadd.f32 %v7821_v28, %v816_v61  ;;  %v6652_v41 = vor.u32 %v6791_v19, %v6651_v58  ;;  %v6645_v61 = vld [vmem:[#allocation9 + $0x48] sm:$0xf0]  ;;  %v6789_v58 = vld [vmem:[#allocation9 + $0x44] sm:$0xf0]  ;;  %v6707_v19 = vld [vmem:[#allocation9 + $0xc0] sm:$0xf] }
 0x167   : > { %v684_v12 = vsub.f32 1.5, %v683_v59  ;;  %1571 = vmatpush.bf16.msrb.mxu2 %v6664_v26  ;;  %v6724_v59 = vor.u32 %v6809_v14, %v6723_v42  ;;  %v7979_v37 = vpack.c.bf16 %v854_v51, %v852_v29  ;;  %v679_v22 = vsel %vm678_vm8, %v7927_v43, %v675_v50  ;;  %v6788_v51 = vld [vmem:[#allocation9 + $0x44] sm:$0xf]  ;;  %v6709_v50 = vld [vmem:[#allocation9 + $0xc8] sm:$0xf0] }
 0x168   : > { %1473 = vmatpush.bf16.msrb.mxu0 %v6660_v57  ;;  %v7984_v38 = vpack.c.bf16 %v855_v11, %v853_v52  ;;  %v782_v18 = vmul.f32 %v679_v22, %v7686_v31  ;;  %v6648_v29 = vor.u32 %v6788_v51, %v6645_v61  ;;  %v6804_v11 = vld [vmem:[#allocation9 + $0xc4] sm:$0xf]  ;;  %v6805_v51 = vld [vmem:[#allocation9 + $0xc4] sm:$0xf0]  ;;  %v6786_v61 = vld [vmem:[#allocation9 + $0x34] sm:$0xf] }
 0x169   : > { %v685_v21 = vmul.f32 %v7931_v47, %v684_v12  ;;  %1522 = vmatpush.bf16.msrb.mxu1 %v6724_v59  ;;  %1621 = vmatpush.bf16.msrb.mxu3 %v6720_v20  ;;  %v6715_v59 = vld [vmem:[#allocation9 + $0xd0] sm:$0xf] }
 0x16a   : > { %v819_v56 = vmul.f32 %v7809_v36, %v782_v18 }
 0x16b   : > { %1572 = vmatpush.bf16.msrb.mxu2 %v6656_v15  ;;  %v689_v2 = vsel %vm688_vm7, %v7931_v47, %v685_v21  ;;  %v783_v47 = vmul.f32 %v679_v22, %v7689_v32  ;;  %v6716_v21 = vor.u32 %v6807_v27, %v6715_v59  ;;  %vm1797_vm7 = vcmask 1047556  }
 0x16c   : > { %v784_v55 = vmul.f32 %v689_v2, %v7713_v44  ;;  %v785_v26 = vmul.f32 %v689_v2, %v7716_v45  ;;  %v856_v12 = vadd.f32 %v7811_v25, %v819_v56  ;;  %v556_v45 = vpop.xlane.xlu0 %555  ;;  %1474 = vmatpush.bf16.msrb.mxu0 %v6652_v41  ;;  %v6712_v2 = vor.u32 %v6804_v11, %v6709_v50  ;;  %v6637_v50 = vld [vmem:[#allocation9 + $0x38] sm:$0xf0] }
 0x16d   : > { %v820_v44 = vmul.f32 %v7819_v9, %v783_v47  ;;  %v586_v42 = vmul.f32 %v556_v45, %v7594_v33  ;;  %1523 = vmatpush.bf16.msrb.mxu1 %v6716_v21  ;;  %v6708_v11 = vor.u32 %v6805_v51, %v6707_v19  ;;  %v6787_v19 = vld [vmem:[#allocation9 + $0x34] sm:$0xf0]  ;;  %v6784_v51 = vld [vmem:[#allocation9 + $0x24] sm:$0xf] }
 0x16e   : > { %v821_v6 = vmul.f32 %v7809_v36, %v784_v55  ;;  %v822_v48 = vmul.f32 %v7819_v9, %v785_v26  ;;  %1622 = vmatpush.bf16.msrb.mxu3 %v6712_v2  ;;  %v6701_v2 = vld [vmem:[#allocation9 + $0xb8] sm:$0xf0] }
 0x16f   : > { %v857_v31 = vadd.f32 %v7821_v28, %v820_v44  ;;  %v602_v60 = vadd.f32 1e-05, %v586_v42  ;;  %1573 = vmatpush.bf16.msrb.mxu2 %v6648_v29 }
 0x170   : > { %v858_v43 = vadd.f32 %v7811_v25, %v821_v6  ;;  %v859_v23 = vadd.f32 %v7821_v28, %v822_v48 }
 0x171   : > { %7110 = vrsqrt.f32 %v602_v60  ;;  %vm696_vm9 = vweird.f32 %v602_v60  ;;  %1524 = vmatpush.bf16.msrb.mxu1 %v6708_v11 }
 0x172   : > { %v8001_v10 = vpack.c.bf16 %v858_v43, %v856_v12  ;;  %v8005_v32 = vpack.c.bf16 %v859_v23, %v857_v31 }
 0x174   : > { %1102 = vmatmul.bf16.gmra.mxu0 %v7979_v37  ;;  %1200 = vmatmul.bf16.gmra.mxu2 %v7979_v37 }
 0x176   : > { %1151 = vmatmul.bf16.gmra.mxu1 %v7984_v38  ;;  %1249 = vmatmul.bf16.gmra.mxu3 %v7984_v38 }
 0x177   : > { %v7111_v16 = vpop.eup %7110 }
 0x178   : > { %v691_v57 = vmul.f32 %v7111_v16, %v602_v60  ;;  %vm697_vm10 = vweird.f32 %v7111_v16 }
 0x179   : > { %vm698_vm11 = vmor %vm696_vm9, %vm697_vm10 }
 0x17a   : > { %v692_v14 = vmul.f32 %v7111_v16, %v691_v57 }
 0x17c   : > { %v693_v20 = vmul.f32 0.5, %v692_v14 }
 0x17e   : > { %v694_v22 = vsub.f32 1.5, %v693_v20 }
 0x180   : > { %v695_v18 = vmul.f32 %v7111_v16, %v694_v22 }
 0x182   : > { %v699_v48 = vsel %vm698_vm11, %v7111_v16, %v695_v18 }
 0x183   : > { %v786_v12 = vmul.f32 %v699_v48, %v7732_v62  ;;  %v787_v23 = vmul.f32 %v699_v48, %v7735_v63 }
 0x184   : > { %1107 = vmatmul.bf16.gmra.mxu0 %v8001_v10  ;;  %1205 = vmatmul.bf16.gmra.mxu2 %v8001_v10 }
 0x185   : > { %v823_v62 = vmul.f32 %v7809_v36, %v786_v12  ;;  %v824_v63 = vmul.f32 %v7819_v9, %v787_v23 }
 0x186   : > { %1156 = vmatmul.bf16.gmra.mxu1 %v8005_v32  ;;  %1254 = vmatmul.bf16.gmra.mxu3 %v8005_v32 }
 0x1b1   : > { %v559_v3 = vpop.xlane.xlu1 %558 }
 0x1b2   : > { %v587_v15 = vmul.f32 %v559_v3, %v7594_v33  ;;  %v6643_v3 = vld [vmem:[#allocation9 + $0x40] sm:$0xf] }
 0x1b3   : > { %v6644_v27 = vor.u32 %v6789_v58, %v6643_v3  ;;  %v6635_v58 = vld [vmem:[#allocation9 + $0x30] sm:$0xf] }
 0x1b4   : > { %v603_v52 = vadd.f32 1e-05, %v587_v15 }
 0x1b5   : > { %1475 = vmatpush.bf16.msrb.mxu0 %v6644_v27  ;;  %v6803_v27 = vld [vmem:[#allocation9 + $0xb4] sm:$0xf0] }
 0x1b6   : > { %7112 = vrsqrt.f32 %v603_v52  ;;  %vm706_vm13 = vweird.f32 %v603_v52 }
 0x1b9   : > { %v562_v55 = vpop.xlane.xlu2 %561 }
 0x1ba   : > { %v588_v26 = vmul.f32 %v562_v55, %v7594_v33  ;;  %v6640_v55 = vor.u32 %v6786_v61, %v6637_v50  ;;  %v6693_v50 = vld [vmem:[#allocation9 + $0xa8] sm:$0xf0] }
 0x1bc   : > { %v7113_v47 = vpop.eup %7112  ;;  %v8013_v56 = vadd.f32 1e-05, %v588_v26  ;;  %1574 = vmatpush.bf16.msrb.mxu2 %v6640_v55 }
 0x1bd   : > { %v701_v6 = vmul.f32 %v7113_v47, %v603_v52  ;;  %vm707_vm12 = vweird.f32 %v7113_v47  ;;  %v6802_v52 = vld [vmem:[#allocation9 + $0xb4] sm:$0xf] }
 0x1be   : > { %7114 = vrsqrt.f32 %v8013_v56  ;;  %vm708_vm14 = vmor %vm706_vm13, %vm707_vm12  ;;  %vm716_vm15 = vweird.f32 %v8013_v56 }
 0x1bf   : > { %v702_v43 = vmul.f32 %v7113_v47, %v701_v6 }
 0x1c1   : > { %v703_v44 = vmul.f32 0.5, %v702_v43  ;;  %v571_v45 = vpop.xlane.xlu2 %570  ;;  %v861_v43 = vadd.f32 %v7821_v28, %v824_v63 }
 0x1c2   : > { %v591_v57 = vmul.f32 %v571_v45, %v7594_v33  ;;  %v565_v14 = vpop.xlane.xlu0 %564 }
 0x1c3   : > { %v704_v31 = vsub.f32 1.5, %v703_v44  ;;  %v589_v41 = vmul.f32 %v565_v14, %v7594_v33 }
 0x1c4   : > { %v8018_v42 = vpop.eup %7114  ;;  %v8025_v15 = vadd.f32 1e-05, %v591_v57 }
 0x1c5   : > { %v705_v60 = vmul.f32 %v7113_v47, %v704_v31  ;;  %v711_v16 = vmul.f32 %v8018_v42, %v8013_v56  ;;  %v8032_v22 = vadd.f32 1e-05, %v589_v41  ;;  %vm717_vm0 = vweird.f32 %v8018_v42  ;;  %v6691_v56 = vld [vmem:[#allocation9 + $0xa0] sm:$0xf] }
 0x1c6   : > { %7116 = vrsqrt.f32 %v8025_v15  ;;  %v6636_v41 = vor.u32 %v6787_v19, %v6635_v58  ;;  %vm718_vm1 = vmor %vm716_vm15, %vm717_vm0  ;;  %vm746_vm3 = vweird.f32 %v8025_v15 }
 0x1c7   : > { %v709_v59 = vsel %vm708_vm14, %v7113_v47, %v705_v60  ;;  %v712_v29 = vmul.f32 %v8018_v42, %v711_v16  ;;  %v6704_v47 = vor.u32 %v6802_v52, %v6701_v2  ;;  %7118 = vrsqrt.f32 %v8032_v22 }
 0x1c8   : > { %v788_v20 = vmul.f32 %v709_v59, %v7753_v34  ;;  %v789_v21 = vmul.f32 %v709_v59, %v7756_v35  ;;  %v860_v35 = vadd.f32 %v7811_v25, %v823_v62  ;;  %v6699_v62 = vld [vmem:[#allocation9 + $0xb0] sm:$0xf]  ;;  %1476 = vmatpush.bf16.msrb.mxu0 %v6636_v41  ;;  %vm726_vm4 = vweird.f32 %v8032_v22 }
 0x1c9   : > { %v713_v18 = vmul.f32 0.5, %v712_v29  ;;  %1623 = vmatpush.bf16.msrb.mxu3 %v6704_v47  ;;  %v6800_v29 = vld [vmem:[#allocation9 + $0xa4] sm:$0xf]  ;;  %v6700_v11 = vor.u32 %v6803_v27, %v6699_v62  ;;  %v6627_v47 = vld [vmem:[#allocation9 + $0x20] sm:$0xf] }
 0x1ca   : > { %v825_v26 = vmul.f32 %v7809_v36, %v788_v20  ;;  %v826_v34 = vmul.f32 %v7819_v9, %v789_v21  ;;  %v574_v12 = vpop.xlane.xlu0 %573  ;;  %v6629_v21 = vld [vmem:[#allocation9 + $0x28] sm:$0xf0] }
 0x1cb   : > { %v714_v6 = vsub.f32 1.5, %v713_v18  ;;  %v568_v60 = vpop.xlane.xlu1 %567  ;;  %v592_v57 = vmul.f32 %v574_v12, %v7594_v33  ;;  %1525 = vmatpush.bf16.msrb.mxu1 %v6700_v11 }
 0x1cc   : > { %v862_v48 = vadd.f32 %v7811_v25, %v825_v26  ;;  %v863_v44 = vadd.f32 %v7821_v28, %v826_v34  ;;  %v8045_v45 = vpop.eup %7116  ;;  %v590_v3 = vmul.f32 %v568_v60, %v7594_v33  ;;  %v6632_v26 = vor.u32 %v6784_v51, %v6629_v21 }
 0x1cd   : > { %v715_v16 = vmul.f32 %v8018_v42, %v714_v6  ;;  %v741_v14 = vmul.f32 %v8045_v45, %v8025_v15  ;;  %v7119_v63 = vpop.eup %7118  ;;  %v8056_v59 = vadd.f32 1e-05, %v592_v57  ;;  %v6696_v34 = vor.u32 %v6800_v29, %v6693_v50 }
 0x1ce   : > { %v8041_v23 = vpack.c.bf16 %v862_v48, %v860_v35  ;;  %v8043_v31 = vpack.c.bf16 %v863_v44, %v861_v43  ;;  %v721_v61 = vmul.f32 %v7119_v63, %v8032_v22  ;;  %v8061_v20 = vadd.f32 1e-05, %v590_v3  ;;  %v6785_v35 = vld [vmem:[#allocation9 + $0x24] sm:$0xf0]  ;;  %1575 = vmatpush.bf16.msrb.mxu2 %v6632_v26 }
 0x1cf   : > { %v719_v52 = vsel %vm718_vm1, %v8018_v42, %v715_v16  ;;  %v742_v2 = vmul.f32 %v8045_v45, %v741_v14  ;;  %v6628_v48 = vor.u32 %v6785_v35, %v6627_v47  ;;  %v6801_v43 = vld [vmem:[#allocation9 + $0xa4] sm:$0xf0]  ;;  %1624 = vmatpush.bf16.msrb.mxu3 %v6696_v34  ;;  %vm727_vm2 = vweird.f32 %v7119_v63 }
 0x1d0   : > { %1112 = vmatmul.bf16.gmra.mxu0 %v8041_v23  ;;  %1161 = vmatmul.bf16.gmra.mxu1 %v8043_v31  ;;  %v722_v55 = vmul.f32 %v7119_v63, %v721_v61  ;;  %7120 = vrsqrt.f32 %v8061_v20  ;;  %v790_v44 = vmul.f32 %v719_v52, %v7769_v5  ;;  %v6692_v60 = vor.u32 %v6801_v43, %v6691_v56  ;;  %vm728_vm6 = vmor %vm726_vm4, %vm727_vm2 }
 0x1d1   : > { %1210 = vmatmul.bf16.gmra.mxu2 %v8041_v23  ;;  %1259 = vmatmul.bf16.gmra.mxu3 %v8043_v31  ;;  %7122 = vrsqrt.f32 %v8056_v59  ;;  %v1093_v18 = vpop.f32.mrf.mxu0  ;;  %v743_v57 = vmul.f32 0.5, %v742_v2  ;;  %v791_v3 = vmul.f32 %v719_v52, %v7772_v0  ;;  %vm747_vm5 = vweird.f32 %v8045_v45 }
 0x1d2   : > { %v723_v6 = vmul.f32 0.5, %v722_v55  ;;  %1477 = vmatpush.bf16.msrb.mxu0 %v6628_v48  ;;  %1526 = vmatpush.bf16.msrb.mxu1 %v6692_v60  ;;  %vm736_vm8 = vweird.f32 %v8061_v20  ;;  %vm748_vm10 = vmor %vm746_vm3, %vm747_vm5  ;;  %vm756_vm14 = vweird.f32 %v8056_v59  ;;  %vm3621_vm2 = vcmask 519168  }
 0x1d3   : > { %v1142_v42 = vpop.f32.mrf.mxu1  ;;  %v577_v12 = vpop.xlane.xlu1 %576  ;;  %v744_v0 = vsub.f32 1.5, %v743_v57  ;;  %v828_v52 = vmul.f32 %v7819_v9, %v791_v3 }
 0x1d4   : > { %v724_v16 = vsub.f32 1.5, %v723_v6  ;;  %v593_v14 = vmul.f32 %v577_v12, %v7594_v33  ;;  %v1143_v5 = vadd.f32 %v1142_v42, %v1093_v18  ;;  %v827_v33 = vmul.f32 %v7809_v36, %v790_v44  ;;  %v6782_v42 = vld [vmem:[#allocation9 + $0x14] sm:$0xf]  ;;  %v6621_v12 = vld [vmem:[#allocation9 + $0x18] sm:$0xf0] }
 0x1d5   : > { %v745_v47 = vmul.f32 %v8045_v45, %v744_v0 }
 0x1d6   : > { %v7121_v58 = vpop.eup %7120  ;;  %v725_v19 = vmul.f32 %v7119_v63, %v724_v16  ;;  %v8082_v61 = vadd.f32 1e-05, %v593_v14  ;;  %v1799_v55 = vrot.slane %v1143_v5, 4  ;;  %v865_v14 = vadd.f32 %v7821_v28, %v828_v52 }
 0x1d7   : > { %v8076_v62 = vpop.eup %7122  ;;  %v731_v41 = vmul.f32 %v7121_v58, %v8061_v20  ;;  %v1191_v27 = vpop.f32.mrf.mxu2  ;;  %vm737_vm9 = vweird.f32 %v7121_v58  ;;  %v749_v0 = vsel %vm748_vm10, %v8045_v45, %v745_v47  ;;  %v6799_v47 = vld [vmem:[#allocation9 + $0x94] sm:$0xf0] }
 0x1d8   : > { %v729_v51 = vsel %vm728_vm6, %v7119_v63, %v725_v19  ;;  %v751_v2 = vmul.f32 %v8076_v62, %v8056_v59  ;;  %7124 = vrsqrt.f32 %v8082_v61  ;;  %vm738_vm11 = vmor %vm736_vm8, %vm737_vm9  ;;  %vm766_vm12 = vweird.f32 %v8082_v61 }
 0x1d9   : > { %v792_v22 = vmul.f32 %v729_v51, %v7801_v24  ;;  %v793_v21 = vmul.f32 %v729_v51, %v7807_v7  ;;  %v732_v29 = vmul.f32 %v7121_v58, %v731_v41  ;;  %v1240_v11 = vpop.f32.mrf.mxu3  ;;  %v1095_v50 = vpop.f32.mrf.mxu0  ;;  %v864_v24 = vadd.f32 %v7811_v25, %v827_v33 }
 0x1da   : > { %v8090_v63 = vadd.f32 %v1240_v11, %v1191_v27  ;;  %v752_v60 = vmul.f32 %v8076_v62, %v751_v2  ;;  %v6624_v33 = vor.u32 %v6782_v42, %v6621_v12  ;;  %v6685_v11 = vld [vmem:[#allocation9 + $0x98] sm:$0xf0]  ;;  %vm757_vm15 = vweird.f32 %v8076_v62 }
 0x1db   : > { %v733_v18 = vmul.f32 0.5, %v732_v29  ;;  %v1144_v26 = vpop.f32.mrf.mxu1  ;;  %v829_v34 = vmul.f32 %v7809_v36, %v792_v22  ;;  %v830_v7 = vmul.f32 %v7819_v9, %v793_v21  ;;  %v6798_v29 = vld [vmem:[#allocation9 + $0x94] sm:$0xf]  ;;  %vm758_vm1 = vmor %vm756_vm14, %vm757_vm15 }
 0x1dc   : > { %v1796_v35 = vrot.slane %v8090_v63, 4  ;;  %v8099_v56 = vsel %vm1797_vm7, %v8090_v63, %v1799_v55  ;;  %v1145_v6 = vadd.f32 %v1144_v26, %v1095_v50  ;;  %v8125_v20 = vmul.f32 0.5, %v752_v60  ;;  %1576 = vmatpush.bf16.msrb.mxu2 %v6624_v33  ;;  %v6619_v55 = vld [vmem:[#allocation9 + $0x10] sm:$0xf] }
 0x1dd   : > { %v734_v48 = vsub.f32 1.5, %v733_v18  ;;  %v866_v43 = vadd.f32 %v7811_v25, %v829_v34  ;;  %v867_v44 = vadd.f32 %v7821_v28, %v830_v7  ;;  %v796_v18 = vmul.f32 %v749_v0, %v7790_v49  ;;  %v6683_v7 = vld [vmem:[#allocation9 + $0x90] sm:$0xf] }
 0x1de   : > { %v8109_v57 = vsel %vm1797_vm7, %v1796_v35, %v1143_v5  ;;  %v6932_v16 = vpack.i.bf16 %v1145_v6, %v1143_v5  ;;  %v8114_v27 = vpop.eup %7124  ;;  %v6688_v34 = vor.u32 %v6798_v29, %v6685_v11  ;;  %v797_v35 = vmul.f32 %v749_v0, %v7798_v1  ;;  %v6780_v0 = vld [vmem:[#allocation9 + $0x4] sm:$0xf]  ;;  %v6677_v11 = vld [vmem:[#allocation9 + $0x88] sm:$0xf0] }
 0x1df   : > { %v735_v3 = vmul.f32 %v7121_v58, %v734_v48  ;;  %v1193_v19 = vpop.f32.mrf.mxu2  ;;  %v8112_v41 = vpack.c.bf16 %v866_v43, %v864_v24  ;;  %v8119_v15 = vpack.c.bf16 %v867_v44, %v865_v14  ;;  %v761_v51 = vmul.f32 %v8114_v27, %v8082_v61  ;;  %v6783_v24 = vld [vmem:[#allocation9 + $0x14] sm:$0xf0] }
 0x1e0   : > { %6933 = vrot.lane.b32.xlu2 %v6932_v16, %s7361_s3  ;;  %1625 = vmatpush.bf16.msrb.mxu3 %v6688_v34  ;;  %v6620_v60 = vor.u32 %v6783_v24, %v6619_v55  ;;  %v6684_v16 = vor.u32 %v6799_v47, %v6683_v7  ;;  %v754_v14 = vsub.f32 1.5, %v8125_v20  ;;  %v833_v33 = vmul.f32 %v7809_v36, %v796_v18 }
 0x1e1   : > { %v739_v5 = vsel %vm738_vm11, %v7121_v58, %v735_v3  ;;  %v1242_v22 = vpop.f32.mrf.mxu3  ;;  %1117 = vmatmul.bf16.gmra.mxu0 %v8112_v41  ;;  %v1098_v21 = vpop.f32.mrf.mxu0  ;;  %1166 = vmatmul.bf16.gmra.mxu1 %v8119_v15  ;;  %v762_v45 = vmul.f32 %v8114_v27, %v761_v51  ;;  %v1855_v58 = vrot.slane %v1145_v6, 4  ;;  %v6796_v51 = vld [vmem:[#allocation9 + $0x84] sm:$0xf]  ;;  %vm767_vm13 = vweird.f32 %v8114_v27 }
 0x1e2   : > { %1215 = vmatmul.bf16.gmra.mxu2 %v8112_v41  ;;  %v794_v50 = vmul.f32 %v739_v5, %v7858_v40  ;;  %v1243_v52 = vadd.f32 %v1242_v22, %v1193_v19  ;;  %1264 = vmatmul.bf16.gmra.mxu3 %v8119_v15  ;;  %v795_v26 = vmul.f32 %v739_v5, %v7861_v17  ;;  %v6613_v5 = vld [vmem:[#allocation9 + $0x8] sm:$0xf0]  ;;  %vm768_vm0 = vmor %vm766_vm12, %vm767_vm13 }
 0x1e3   : > { %v1147_v2 = vpop.f32.mrf.mxu1  ;;  %v763_v40 = vmul.f32 0.5, %v762_v45  ;;  %1478 = vmatpush.bf16.msrb.mxu0 %v6620_v60  ;;  %1527 = vmatpush.bf16.msrb.mxu1 %v6684_v16  ;;  %v6616_v29 = vor.u32 %v6780_v0, %v6613_v5  ;;  %v6680_v45 = vor.u32 %v6796_v51, %v6677_v11  ;;  %v755_v34 = vmul.f32 %v8076_v62, %v754_v14  ;;  %v6781_v60 = vld [vmem:[#allocation9 + $0x4] sm:$0xf0] }
 0x1e4   : > { %v1853_v48 = vrot.slane %v1243_v52, 4  ;;  %v8136_v43 = vsel %vm1797_vm7, %v1243_v52, %v1855_v58  ;;  %v1148_v44 = vadd.f32 %v1147_v2, %v1098_v21  ;;  %v6937_v42 = vpack.i.bf16 %v1243_v52, %v8090_v63 }
 0x1e5   : > { %v831_v17 = vmul.f32 %v7809_v36, %v794_v50  ;;  %v764_v1 = vsub.f32 1.5, %v763_v40  ;;  %v832_v3 = vmul.f32 %v7819_v9, %v795_v26  ;;  %1577 = vmatpush.bf16.msrb.mxu2 %v6616_v29  ;;  %v870_v26 = vadd.f32 %v7811_v25, %v833_v33  ;;  %1626 = vmatpush.bf16.msrb.mxu3 %v6680_v45 }
 0x1e6   : > { %v8140_v12 = vsel %vm1797_vm7, %v1853_v48, %v1145_v6  ;;  %v834_v6 = vmul.f32 %v7819_v9, %v797_v35  ;;  %v1911_v22 = vrot.slane %v1148_v44, 4  ;;  %v759_v16 = vsel %vm758_vm1, %v8076_v62, %v755_v34 }
 0x1e7   : > { %v1196_v49 = vpop.f32.mrf.mxu2  ;;  %v868_v50 = vadd.f32 %v7811_v25, %v831_v17  ;;  %v765_v58 = vmul.f32 %v8114_v27, %v764_v1  ;;  %v869_v55 = vadd.f32 %v7821_v28, %v832_v3  ;;  %v6611_v17 = vld [vmem:[#allocation9] sm:$0xf]  ;;  %v798_v5 = vmul.f32 %v759_v16, %v7842_v53 }
 0x1e8   : > { %6938 = vrot.lane.b32.xlu2 %v6937_v42, %s7361_s3  ;;  %v871_v7 = vadd.f32 %v7821_v28, %v834_v6  ;;  %v799_v51 = vmul.f32 %v759_v16, %v7845_v30 }
 0x1e9   : > { %v1245_v19 = vpop.f32.mrf.mxu3  ;;  %v1100_v63 = vpop.f32.mrf.mxu0  ;;  %v8172_v61 = vpack.c.bf16 %v870_v26, %v868_v50  ;;  %v769_v40 = vsel %vm768_vm0, %v8114_v27, %v765_v58  ;;  %v6797_v27 = vld [vmem:[#allocation9 + $0x84] sm:$0xf0] }
 0x1ea   : > { %v1246_v21 = vadd.f32 %v1245_v19, %v1196_v49  ;;  %v8175_v48 = vpack.c.bf16 %v871_v7, %v869_v55  ;;  %v800_v1 = vmul.f32 %v769_v40, %v7905_v13  ;;  %v6612_v19 = vor.u32 %v6781_v60, %v6611_v17 }
 0x1eb   : > { %v1149_v20 = vpop.f32.mrf.mxu1  ;;  %v801_v33 = vmul.f32 %v769_v40, %v7911_v4  ;;  %v836_v58 = vmul.f32 %v7819_v9, %v799_v51 }
 0x1ec   : > { %v1909_v52 = vrot.slane %v1246_v21, 4  ;;  %v8155_v2 = vsel %vm1797_vm7, %v1246_v21, %v1911_v22  ;;  %v1150_v18 = vadd.f32 %v1149_v20, %v1100_v63  ;;  %1479 = vmatpush.bf16.msrb.mxu0 %v6612_v19  ;;  %v837_v4 = vmul.f32 %v7809_v36, %v800_v1 }
 0x1ed   : > { %v838_v11 = vmul.f32 %v7819_v9, %v801_v33 }
 0x1ee   : > { %v8165_v24 = vsel %vm1797_vm7, %v1909_v52, %v1148_v44  ;;  %v6942_v47 = vpack.i.bf16 %v1150_v18, %v1148_v44  ;;  %v1967_v59 = vrot.slane %v1150_v18, 4  ;;  %v6675_v44 = vld [vmem:[#allocation9 + $0x80] sm:$0xf]  ;;  %v874_v52 = vadd.f32 %v7811_v25, %v837_v4 }
 0x1ef   : > { %v1198_v35 = vpop.f32.mrf.mxu2  ;;  %v6676_v63 = vor.u32 %v6797_v27, %v6675_v44  ;;  %v875_v34 = vadd.f32 %v7821_v28, %v838_v11 }
 0x1f0   : > { %6943 = vrot.lane.b32.xlu0 %v6942_v47, %s7361_s3 }
 0x1f1   : > { %v1247_v42 = vpop.f32.mrf.mxu3  ;;  %1122 = vmatmul.bf16.gmra.mxu0 %v8172_v61  ;;  %v1103_v49 = vpop.f32.mrf.mxu0  ;;  %1171 = vmatmul.bf16.gmra.mxu1 %v8175_v48 }
 0x1f2   : > { %v1248_v14 = vadd.f32 %v1247_v42, %v1198_v35  ;;  %1220 = vmatmul.bf16.gmra.mxu2 %v8172_v61  ;;  %1269 = vmatmul.bf16.gmra.mxu3 %v8175_v48  ;;  %v873_v35 = vadd.f32 %v7821_v28, %v836_v58 }
 0x1f3   : > { %v1152_v3 = vpop.f32.mrf.mxu1  ;;  %1528 = vmatpush.bf16.msrb.mxu1 %v6676_v63 }
 0x1f4   : > { %v1965_v6 = vrot.slane %v1248_v14, 4  ;;  %v8186_v62 = vsel %vm1797_vm7, %v1248_v14, %v1967_v59  ;;  %v6947_v0 = vpack.i.bf16 %v1248_v14, %v1246_v21  ;;  %v1153_v22 = vadd.f32 %v1152_v3, %v1103_v49 }
 0x1f5   : > { %v835_v21 = vmul.f32 %v7809_v36, %v798_v5  ;;  %v8211_v42 = vpack.c.bf16 %v875_v34, %v873_v35 }
 0x1f6   : > { %v8191_v13 = vsel %vm1797_vm7, %v1965_v6, %v1150_v18  ;;  %6948 = vrot.lane.b32.xlu1 %v6947_v0, %s7361_s3  ;;  %v2023_v53 = vrot.slane %v1153_v22, 4 }
 0x1f7   : > { %v1201_v29 = vpop.f32.mrf.mxu2  ;;  %v872_v7 = vadd.f32 %v7811_v25, %v835_v21 }
 0x1f9   : > { %v1250_v20 = vpop.f32.mrf.mxu3  ;;  %v1105_v50 = vpop.f32.mrf.mxu0  ;;  %v8208_v9 = vpack.c.bf16 %v874_v52, %v872_v7 }
 0x1fa   : > { %v1251_v45 = vadd.f32 %v1250_v20, %v1201_v29 }
 0x1fb   : > { %v1154_v30 = vpop.f32.mrf.mxu1 }
 0x1fc   : > { %v2021_v55 = vrot.slane %v1251_v45, 4  ;;  %v8200_v18 = vsel %vm1797_vm7, %v1251_v45, %v2023_v53  ;;  %v1155_v26 = vadd.f32 %v1154_v30, %v1105_v50 }
 0x1fe   : > { %v8205_v47 = vsel %vm1797_vm7, %v2021_v55, %v1153_v22  ;;  %v6952_v36 = vpack.i.bf16 %v1155_v26, %v1153_v22  ;;  %v2079_v60 = vrot.slane %v1155_v26, 4 }
 0x1ff   : > { %v1203_v40 = vpop.f32.mrf.mxu2 }
 0x200   : > { %6953 = vrot.lane.b32.xlu1 %v6952_v36, %s7361_s3 }
 0x201   : > { %v1252_v49 = vpop.f32.mrf.mxu3  ;;  %1127 = vmatmul.bf16.gmra.mxu0 %v8208_v9  ;;  %v1108_v17 = vpop.f32.mrf.mxu0  ;;  %1176 = vmatmul.bf16.gmra.mxu1 %v8211_v42 }
 0x202   : > { %v1253_v16 = vadd.f32 %v1252_v49, %v1203_v40  ;;  %1225 = vmatmul.bf16.gmra.mxu2 %v8208_v9  ;;  %1274 = vmatmul.bf16.gmra.mxu3 %v8211_v42 }
 0x203   : > { %v1157_v25 = vpop.f32.mrf.mxu1 }
 0x204   : > { %v2077_v28 = vrot.slane %v1253_v16, 4  ;;  %v8218_v59 = vsel %vm1797_vm7, %v1253_v16, %v2079_v60  ;;  %v6957_v14 = vpack.i.bf16 %v1253_v16, %v1251_v45  ;;  %v1158_v27 = vadd.f32 %v1157_v25, %v1108_v17 }
 0x206   : > { %v8221_v44 = vsel %vm1797_vm7, %v2077_v28, %v1155_v26  ;;  %6958 = vrot.lane.b32.xlu0 %v6957_v14, %s7361_s3  ;;  %v2135_v63 = vrot.slane %v1158_v27, 4 }
 0x207   : > { %v1206_v1 = vpop.f32.mrf.mxu2 }
 0x209   : > { %v1255_v3 = vpop.f32.mrf.mxu3  ;;  %v1110_v19 = vpop.f32.mrf.mxu0 }
 0x20a   : > { %v1256_v33 = vadd.f32 %v1255_v3, %v1206_v1 }
 0x20b   : > { %v1159_v6 = vpop.f32.mrf.mxu1 }
 0x20c   : > { %v2133_v0 = vrot.slane %v1256_v33, 4  ;;  %v8225_v5 = vsel %vm1797_vm7, %v1256_v33, %v2135_v63  ;;  %v1160_v51 = vadd.f32 %v1159_v6, %v1110_v19 }
 0x20e   : > { %v8228_v22 = vsel %vm1797_vm7, %v2133_v0, %v1158_v27  ;;  %v6962_v29 = vpack.i.bf16 %v1160_v51, %v1158_v27  ;;  %v2191_v20 = vrot.slane %v1160_v51, 4 }
 0x20f   : > { %v1208_v4 = vpop.f32.mrf.mxu2 }
 0x210   : > { %6963 = vrot.lane.b32.xlu2 %v6962_v29, %s7361_s3 }
 0x211   : > { %v1257_v11 = vpop.f32.mrf.mxu3  ;;  %1480 = vmatmul.bf16.vlgmr.msrb.gmra.mxu0 %v7885_v46  ;;  %1529 = vmatmul.bf16.vlgmr.msrb.gmra.mxu1 %v7893_v8 }
 0x212   : > { %v1258_v50 = vadd.f32 %v1257_v11, %v1208_v4  ;;  %1578 = vmatmul.bf16.vlgmr.msrb.gmra.mxu2 %v7885_v46  ;;  %1627 = vmatmul.bf16.vlgmr.msrb.gmra.mxu3 %v7893_v8  ;;  %v7362_v46 = vmov 1983009808  }
 0x213   : > { %v1802_v8 = vunpack.c.l.s4 %v7362_v46 }
 0x214   : > { %v2189_v21 = vrot.slane %v1258_v50, 4  ;;  %v8236_v53 = vsel %vm1797_vm7, %v1258_v50, %v2191_v20  ;;  %v6967_v58 = vpack.i.bf16 %v1258_v50, %v1256_v33 }
 0x215   : > { %v8250_v30 = vunpack.c.0.s8 %v1802_v8 }
 0x216   : > { %v8239_v45 = vsel %vm1797_vm7, %v2189_v21, %v1160_v51 }
 0x217   : > { %v1808_v55 = vperm.slane %v8099_v56, %v8250_v30  ;;  %v1860_v34 = vperm.slane %v8140_v12, %v8250_v30  ;;  %v8263_v35 = vperm.slane %v8155_v2, %v8250_v30  ;;  %v8281_v3 = vperm.slane %v8191_v13, %v8250_v30 }
 0x218   : > { %6968 = vrot.lane.b32.xlu2 %v6967_v58, %s7361_s3  ;;  %v8285_v19 = vperm.slane %v8186_v62, %v8250_v30  ;;  %v8294_v29 = vperm.slane %v8200_v18, %v8250_v30 }
 0x219   : > { %v1835_v36 = vrot.slane %v1808_v55, 4  ;;  %v1879_v17 = vrot.slane %v1860_v34, 4  ;;  %v1947_v27 = vrot.slane %v8263_v35, 4 }
 0x221   : > { %1485 = vmatmul.bf16.gmra.mxu0 %v7946_v54  ;;  %1534 = vmatmul.bf16.gmra.mxu1 %v7951_v39 }
 0x222   : > { %1583 = vmatmul.bf16.gmra.mxu2 %v7946_v54  ;;  %1632 = vmatmul.bf16.gmra.mxu3 %v7951_v39  ;;  %v1804_v39 = vperm.slane %v8109_v57, %v8250_v30 }
 0x231   : > { %1490 = vmatmul.bf16.gmra.mxu0 %v7979_v37  ;;  %1539 = vmatmul.bf16.gmra.mxu1 %v7984_v38 }
 0x232   : > { %1588 = vmatmul.bf16.gmra.mxu2 %v7979_v37  ;;  %1637 = vmatmul.bf16.gmra.mxu3 %v7984_v38  ;;  %v1864_v37 = vperm.slane %v8136_v43, %v8250_v30  ;;  %v7363_v38 = vmov 1934713408   ;;  %v1823_v43 = vrot.slane %v1804_v39, 4 }
 0x233   : > { %v1826_v7 = vunpack.c.l.s4 %v7363_v38 }
 0x234   : > { %v1891_v60 = vrot.slane %v1864_v37, 4 }
 0x235   : > { %v8268_v16 = vunpack.c.0.s8 %v1826_v7 }
 0x23a   : > { %v6934_v52 = vpop.permute.xlu2 %6933 }
 0x23b   : > { %v6936_v26 = vunpack.i.h.bf16 %v6934_v52  ;;  %v6935_v54 = vunpack.i.l.bf16 %v6934_v52 }
 0x23d   : > { %v1867_v57 = vrot.slane %v6936_v26, 4  ;;  %v1811_v40 = vrot.slane %v6935_v54, 4 }
 0x241   : > { %1495 = vmatmul.bf16.gmra.mxu0 %v8001_v10  ;;  %1544 = vmatmul.bf16.gmra.mxu1 %v8005_v32 }
 0x242   : > { %v6939_v56 = vpop.permute.xlu2 %6938  ;;  %1593 = vmatmul.bf16.gmra.mxu2 %v8001_v10  ;;  %1642 = vmatmul.bf16.gmra.mxu3 %v8005_v32  ;;  %v8274_v10 = vperm.slane %v8165_v24, %v8250_v30 }
 0x243   : > { %v6941_v12 = vunpack.i.h.bf16 %v6939_v56  ;;  %v6940_v49 = vunpack.i.l.bf16 %v6939_v56 }
 0x245   : > { %v1865_v25 = vrot.slane %v6941_v12, 4  ;;  %v1809_v28 = vrot.slane %v6940_v49, 4  ;;  %v1812_v2 = vsel %vm1797_vm7, %v6940_v49, %v1811_v40  ;;  %v1868_v14 = vsel %vm1797_vm7, %v6941_v12, %v1867_v57 }
 0x246   : > { %v1820_v1 = vperm.slane %v1812_v2, %v8250_v30  ;;  %v1876_v32 = vperm.slane %v1868_v14, %v8250_v30 }
 0x247   : > { %v1810_v63 = vsel %vm1797_vm7, %v1809_v28, %v6935_v54  ;;  %v1866_v33 = vsel %vm1797_vm7, %v1865_v25, %v6936_v26 }
 0x248   : > { %v1816_v24 = vperm.slane %v1810_v63, %v8250_v30  ;;  %v1833_v6 = vrot.slane %v1820_v1, 4  ;;  %v1836_v0 = vsel %vm1797_vm7, %v1820_v1, %v1835_v36  ;;  %v1872_v51 = vperm.slane %v1866_v33, %v8250_v30 }
 0x249   : > { %v1844_v13 = vperm.slane %v1836_v0, %v8268_v16  ;;  %v1889_v4 = vrot.slane %v1876_v32, 4  ;;  %v1892_v62 = vsel %vm1797_vm7, %v1876_v32, %v1891_v60 }
 0x24a   : > { %v1821_v11 = vrot.slane %v1816_v24, 4  ;;  %v1824_v20 = vsel %vm1797_vm7, %v1816_v24, %v1823_v43  ;;  %v1834_v50 = vsel %vm1797_vm7, %v1833_v6, %v1808_v55  ;;  %v1877_v21 = vrot.slane %v1872_v51, 4 }
 0x24b   : > { %v1832_v58 = vperm.slane %v1824_v20, %v8268_v16  ;;  %v1840_v46 = vperm.slane %v1834_v50, %v8268_v16  ;;  %v1851_v8 = vrot.slane %v1844_v13, 4  ;;  %v1880_v52 = vsel %vm1797_vm7, %v1872_v51, %v1879_v17 }
 0x24c   : > { %v1822_v18 = vsel %vm1797_vm7, %v1821_v11, %v1804_v39  ;;  %v1878_v26 = vsel %vm1797_vm7, %v1877_v21, %v1860_v34  ;;  %v1888_v54 = vperm.slane %v1880_v52, %v8268_v16  ;;  %v1890_v38 = vsel %vm1797_vm7, %v1889_v4, %v1864_v37 }
 0x24d   : > { %v1828_v7 = vperm.slane %v1822_v18, %v8268_v16  ;;  %v1847_v36 = vrot.slane %v1832_v58, 4  ;;  %v1849_v55 = vrot.slane %v1840_v46, 4  ;;  %v1852_v56 = vsel %vm1797_vm7, 0.0, %v1851_v8  ;;  %v1113_v39 = vpop.f32.mrf.mxu0  ;;  %v1162_v43 = vpop.f32.mrf.mxu1 }
 0x24e   : > { %v1884_v57 = vperm.slane %v1878_v26, %v8268_v16  ;;  %v1896_v40 = vperm.slane %v1890_v38, %v8268_v16  ;;  %v1900_v12 = vperm.slane %v1892_v62, %v8268_v16  ;;  %v1903_v49 = vrot.slane %v1888_v54, 4 }
 0x24f   : > { %v1845_v34 = vrot.slane %v1828_v7, 4  ;;  %v1848_v17 = vsel %vm1797_vm7, 0.0, %v1847_v36  ;;  %v1850_v37 = vsel %vm1797_vm7, 0.0, %v1849_v55  ;;  %v2693_v60 = vsel %vm1797_vm7, %v1847_v36, %v1828_v7 }
 0x250   : > { %v1901_v25 = vrot.slane %v1884_v57, 4  ;;  %v1904_v28 = vsel %vm1797_vm7, 0.0, %v1903_v49  ;;  %v1905_v2 = vrot.slane %v1896_v40, 4  ;;  %v1907_v14 = vrot.slane %v1900_v12, 4 }
 0x251   : > { %v1846_v1 = vsel %vm1797_vm7, 0.0, %v1845_v34  ;;  %v2697_v32 = vperm.slane %v2693_v60, %v8250_v30  ;;  %v2698_v63 = vrot.slane %v1848_v17, 4  ;;  %v2704_v33 = vsel %vm1797_vm7, %v1851_v8, %v1840_v46  ;;  %1500 = vmatmul.bf16.gmra.mxu0 %v8041_v23  ;;  %1549 = vmatmul.bf16.gmra.mxu1 %v8043_v31 }
 0x252   : > { %v1902_v6 = vsel %vm1797_vm7, 0.0, %v1901_v25  ;;  %v1906_v0 = vsel %vm1797_vm7, 0.0, %v1905_v2  ;;  %v1908_v51 = vsel %vm1797_vm7, 0.0, %v1907_v14  ;;  %v2708_v13 = vperm.slane %v2704_v33, %v8250_v30  ;;  %1598 = vmatmul.bf16.gmra.mxu2 %v8041_v23  ;;  %1647 = vmatmul.bf16.gmra.mxu3 %v8043_v31 }
 0x253   : > { %v2699_v62 = vsel %vm1797_vm7, %v2698_v63, %v1846_v1  ;;  %v2709_v11 = vrot.slane %v1852_v56, 4  ;;  %v2717_v20 = vrot.slane %v2697_v32, 4  ;;  %v2747_v50 = vsel %vm1797_vm7, %v1903_v49, %v1884_v57 }
 0x254   : > { %v8320_v24 = vpop.f32.mrf.mxu2  ;;  %v8328_v4 = vpop.f32.mrf.mxu3  ;;  %v2703_v21 = vperm.slane %v2699_v62, %v8250_v30  ;;  %v2729_v58 = vrot.slane %v2708_v13, 4  ;;  %v2751_v46 = vperm.slane %v2747_v50, %v8250_v30  ;;  %v2752_v8 = vrot.slane %v1904_v28, 4 }
 0x255   : > { %v2710_v52 = vsel %vm1797_vm7, %v2709_v11, %v1850_v37  ;;  %v2758_v23 = vsel %vm1797_vm7, %v1907_v14, %v1896_v40  ;;  %v2763_v18 = vrot.slane %v1908_v51, 4  ;;  %v8337_v26 = vadd.f32 %v1162_v43, %v1113_v39  ;;  %v1115_v43 = vpop.f32.mrf.mxu0  ;;  %v1164_v34 = vpop.f32.mrf.mxu1 }
 0x256   : > { %v2714_v54 = vperm.slane %v2710_v52, %v8250_v30  ;;  %v2715_v38 = vrot.slane %v2703_v21, 4  ;;  %v2718_v7 = vsel %vm1797_vm7, %v2703_v21, %v2717_v20  ;;  %v2753_v31 = vsel %vm1797_vm7, %v2752_v8, %v1902_v6 }
 0x257   : > { %v2726_v36 = vperm.slane %v2718_v7, %v8268_v16  ;;  %v2757_v55 = vperm.slane %v2753_v31, %v8250_v30  ;;  %v2762_v56 = vperm.slane %v2758_v23, %v8250_v30  ;;  %v2764_v57 = vsel %vm1797_vm7, %v2763_v18, %v1906_v0 }
 0x258   : > { %v2716_v40 = vsel %vm1797_vm7, %v2715_v38, %v2697_v32  ;;  %v2727_v12 = vrot.slane %v2714_v54, 4  ;;  %v2730_v49 = vsel %vm1797_vm7, %v2714_v54, %v2729_v58  ;;  %v2768_v39 = vperm.slane %v2764_v57, %v8250_v30 }
 0x259   : > { %v2722_v17 = vperm.slane %v2716_v40, %v8268_v16  ;;  %v2738_v37 = vperm.slane %v2730_v49, %v8268_v16  ;;  %v2745_v60 = vrot.slane %v2726_v36, 4  ;;  %v2769_v25 = vrot.slane %v2757_v55, 4 }
 0x25a   : > { %v2728_v28 = vsel %vm1797_vm7, %v2727_v12, %v2708_v13  ;;  %v2771_v2 = vrot.slane %v2751_v46, 4  ;;  %v2781_v14 = vrot.slane %v2768_v39, 4  ;;  %v2783_v1 = vrot.slane %v2762_v56, 4 }
 0x25b   : > { %v2734_v32 = vperm.slane %v2728_v28, %v8268_v16  ;;  %v2741_v63 = vrot.slane %v2722_v17, 4  ;;  %v2743_v33 = vrot.slane %v2738_v37, 4  ;;  %v2746_v6 = vsel %vm1797_vm7, %v2738_v37, %v2745_v60 }
 0x25c   : > { %v1213_v0 = vpop.f32.mrf.mxu2  ;;  %v2770_v51 = vsel %vm1797_vm7, %v2769_v25, %v2751_v46  ;;  %v2772_v62 = vsel %vm1797_vm7, %v2757_v55, %v2771_v2  ;;  %v2782_v11 = vsel %vm1797_vm7, %v2781_v14, %v2762_v56  ;;  %v2784_v20 = vsel %vm1797_vm7, %v2768_v39, %v2783_v1  ;;  %v1262_v50 = vpop.f32.mrf.mxu3 }
 0x25d   : > { %v2739_v13 = vrot.slane %v2734_v32, 4  ;;  %v2742_v21 = vsel %vm1797_vm7, %v2734_v32, %v2741_v63  ;;  %v2744_v58 = vsel %vm1797_vm7, %v2743_v33, %v2726_v36  ;;  %v2776_v8 = vperm.slane %v2770_v51, %v8268_v16 }
 0x25e   : > { %v2780_v52 = vperm.slane %v2772_v62, %v8268_v16  ;;  %v2788_v23 = vperm.slane %v2782_v11, %v8268_v16  ;;  %v2792_v46 = vperm.slane %v2784_v20, %v8268_v16  ;;  %v3573_v18 = vpack.c.bf16 %v2742_v21, %v2742_v21  ;;  %v1118_v28 = vpop.f32.mrf.mxu0  ;;  %v1167_v2 = vpop.f32.mrf.mxu1 }
 0x25f   : > { %v2740_v54 = vsel %vm1797_vm7, %v2739_v13, %v2722_v17  ;;  %v2795_v38 = vrot.slane %v2776_v8, 4  ;;  %v3589_v7 = vpack.c.bf16 %v2744_v58, %v2744_v58  ;;  %v3605_v31 = vpack.c.bf16 %v2746_v6, %v2746_v6 }
 0x260   : > { %v2793_v55 = vrot.slane %v2788_v23, 4  ;;  %v2797_v56 = vrot.slane %v2792_v46, 4  ;;  %v2799_v57 = vrot.slane %v2780_v52, 4  ;;  %v3557_v40 = vpack.c.bf16 %v2740_v54, %v2740_v54  ;;  %3638 = vst.msk [vmem:[%s8366_s4 + $0x40] sm:$0xf] %vm3621_vm2, %v3573_v18 }
 0x261   : > { %v2796_v36 = vsel %vm1797_vm7, %v2788_v23, %v2795_v38  ;;  %3654 = vst.msk [vmem:[%s8366_s4 + $0x80] sm:$0xf] %vm3621_vm2, %v3589_v7  ;;  %v2247_v12 = vrot.slane %v8337_v26, 4  ;;  %v1261_v49 = vadd.f32 %v8328_v4, %v8320_v24  ;;  %v1165_v39 = vadd.f32 %v1164_v34, %v1115_v43  ;;  %1505 = vmatmul.bf16.gmra.mxu0 %v8112_v41 }
 0x262   : > { %v2794_v17 = vsel %vm1797_vm7, %v2793_v55, %v2776_v8  ;;  %v2798_v37 = vsel %vm1797_vm7, %v2797_v56, %v2780_v52  ;;  %v2800_v60 = vsel %vm1797_vm7, %v2792_v46, %v2799_v57  ;;  %v3574_v25 = vpack.c.bf16 %v2796_v36, %v2796_v36  ;;  %3622 = vst.msk [vmem:[%s8366_s4] sm:$0xf] %vm3621_vm2, %v3557_v40  ;;  %v6944_v4 = vpop.permute.xlu0 %6943 }
 0x263   : > { %v3558_v14 = vpack.c.bf16 %v2794_v17, %v2794_v17  ;;  %v3590_v1 = vpack.c.bf16 %v2798_v37, %v2798_v37  ;;  %v3606_v32 = vpack.c.bf16 %v2800_v60, %v2800_v60  ;;  %3670 = vst.msk [vmem:[%s8366_s4 + $0xc0] sm:$0xf] %vm3621_vm2, %v3605_v31  ;;  %v2245_v24 = vrot.slane %v1261_v49, 4  ;;  %1554 = vmatmul.bf16.gmra.mxu1 %v8119_v15 }
 0x264   : > { %3639 = vst.msk [vmem:[%s8366_s4 + $0x44] sm:$0xf] %vm3621_vm2, %v3574_v25  ;;  %v8388_v43 = vsel %vm1797_vm7, %v1261_v49, %v2247_v12  ;;  %v2303_v34 = vrot.slane %v1165_v39, 4  ;;  %v6972_v63 = vpack.i.bf16 %v1165_v39, %v8337_v26  ;;  %v1263_v33 = vadd.f32 %v1262_v50, %v1213_v0  ;;  %1603 = vmatmul.bf16.gmra.mxu2 %v8112_v41 }
 0x265   : > { %v8394_v6 = vperm.slane %v8205_v47, %v8250_v30  ;;  %3623 = vst.msk [vmem:[%s8366_s4 + $0x4] sm:$0xf] %vm3621_vm2, %v3558_v14  ;;  %v8400_v51 = vsel %vm1797_vm7, %v2245_v24, %v8337_v26  ;;  %v8402_v62 = vadd.f32 %v1167_v2, %v1118_v28  ;;  %1652 = vmatmul.bf16.gmra.mxu3 %v8119_v15  ;;  %v6946_v11 = vunpack.i.h.bf16 %v6944_v4  ;;  %v1216_v20 = vpop.f32.mrf.mxu2  ;;  %v1265_v26 = vpop.f32.mrf.mxu3 }
 0x266   : > { %v1935_v0 = vrot.slane %v8274_v10, 4  ;;  %3655 = vst.msk [vmem:[%s8366_s4 + $0x84] sm:$0xf] %vm3621_vm2, %v3590_v1  ;;  %6973 = vrot.lane.b32.xlu0 %v6972_v63, %s7361_s3  ;;  %v2301_v41 = vrot.slane %v1263_v33, 4  ;;  %v8410_v47 = vsel %vm1797_vm7, %v1263_v33, %v2303_v34  ;;  %v6977_v50 = vpack.i.bf16 %v1263_v33, %v1261_v49  ;;  %v1169_v17 = vpop.f32.mrf.mxu1 }
 0x267   : > { %v1991_v13 = vrot.slane %v8281_v3, 4  ;;  %v2003_v21 = vrot.slane %v8285_v19, 4  ;;  %v8416_v15 = vperm.slane %v8221_v44, %v8250_v30  ;;  %v8420_v58 = vperm.slane %v8218_v59, %v8250_v30  ;;  %3671 = vst.msk [vmem:[%s8366_s4 + $0xc4] sm:$0xf] %vm3621_vm2, %v3606_v32 }
 0x268   : > { %v8425_v8 = vsel %vm1797_vm7, %v2301_v41, %v1165_v39  ;;  %v2359_v52 = vrot.slane %v8402_v62, 4  ;;  %6978 = vrot.lane.b32.xlu1 %v6977_v50, %s7361_s3  ;;  %v6945_v23 = vunpack.i.l.bf16 %v6944_v4  ;;  %v8429_v46 = vadd.f32 %v1265_v26, %v1216_v20  ;;  %v6949_v18 = vpop.permute.xlu1 %6948  ;;  %v1120_v39 = vpop.f32.mrf.mxu0 }
 0x269   : > { %v2047_v44 = vrot.slane %v8394_v6, 4  ;;  %v2059_v54 = vrot.slane %v8294_v29, 4  ;;  %v1979_v38 = vrot.slane %v6946_v11, 4  ;;  %v6951_v59 = vunpack.i.h.bf16 %v6949_v18 }
 0x26a   : > { %v1923_v7 = vrot.slane %v6945_v23, 4  ;;  %v2357_v31 = vrot.slane %v8429_v46, 4  ;;  %v8436_v55 = vsel %vm1797_vm7, %v8429_v46, %v2359_v52  ;;  %v6950_v56 = vunpack.i.l.bf16 %v6949_v18 }
 0x26b   : > { %v2103_v57 = vrot.slane %v8416_v15, 4  ;;  %v2115_v40 = vrot.slane %v8420_v58, 4  ;;  %v8442_v36 = vperm.slane %v8225_v5, %v8250_v30  ;;  %v1977_v12 = vrot.slane %v6951_v59, 4 }
 0x26c   : > { %v8446_v49 = vsel %vm1797_vm7, %v2357_v31, %v8402_v62  ;;  %v1921_v37 = vrot.slane %v6950_v56, 4  ;;  %v1924_v60 = vsel %vm1797_vm7, %v6950_v56, %v1923_v7  ;;  %v1980_v25 = vsel %vm1797_vm7, %v6951_v59, %v1979_v38 }
 0x26d   : > { %v8452_v28 = vperm.slane %v8228_v22, %v8250_v30  ;;  %v8456_v5 = vperm.slane %v8236_v53, %v8250_v30  ;;  %v1932_v2 = vperm.slane %v1924_v60, %v8250_v30  ;;  %v1978_v14 = vsel %vm1797_vm7, %v1977_v12, %v6946_v11 }
 0x26e   : > { %v8462_v1 = vperm.slane %v8239_v45, %v8250_v30  ;;  %v1922_v32 = vsel %vm1797_vm7, %v1921_v37, %v6945_v23  ;;  %v1984_v24 = vperm.slane %v1978_v14, %v8250_v30  ;;  %v1988_v4 = vperm.slane %v1980_v25, %v8250_v30 }
 0x26f   : > { %v8467_v22 = vadd.f32 %v1169_v17, %v1120_v39  ;;  %v1928_v34 = vperm.slane %v1922_v32, %v8250_v30  ;;  %v1945_v53 = vrot.slane %v1932_v2, 4  ;;  %v1948_v63 = vsel %vm1797_vm7, %v1932_v2, %v1947_v27 }
 0x270   : > { %v1956_v33 = vperm.slane %v1948_v63, %v8268_v16  ;;  %v1989_v11 = vrot.slane %v1984_v24, 4  ;;  %v1992_v45 = vsel %vm1797_vm7, %v1984_v24, %v1991_v13  ;;  %v2001_v20 = vrot.slane %v1988_v4, 4 }
 0x271   : > { %v1933_v41 = vrot.slane %v1928_v34, 4  ;;  %v1936_v50 = vsel %vm1797_vm7, %v1928_v34, %v1935_v0  ;;  %v1946_v26 = vsel %vm1797_vm7, %v1945_v53, %v8263_v35  ;;  %v2000_v52 = vperm.slane %v1992_v45, %v8268_v16  ;;  %1510 = vmatmul.bf16.gmra.mxu0 %v8172_v61 }
 0x272   : > { %v1944_v23 = vperm.slane %v1936_v50, %v8268_v16  ;;  %v1952_v27 = vperm.slane %v1946_v26, %v8268_v16  ;;  %v1963_v18 = vrot.slane %v1956_v33, 4  ;;  %v1990_v38 = vsel %vm1797_vm7, %v1989_v11, %v8281_v3 }
 0x273   : > { %v1934_v13 = vsel %vm1797_vm7, %v1933_v41, %v8274_v10  ;;  %v1996_v0 = vperm.slane %v1990_v38, %v8268_v16  ;;  %v2002_v35 = vsel %vm1797_vm7, %v2001_v20, %v8285_v19  ;;  %v2004_v59 = vsel %vm1797_vm7, %v1988_v4, %v2003_v21  ;;  %1559 = vmatmul.bf16.gmra.mxu1 %v8175_v48 }
 0x274   : > { %v1940_v7 = vperm.slane %v1934_v13, %v8268_v16  ;;  %v1959_v31 = vrot.slane %v1944_v23, 4  ;;  %v1961_v56 = vrot.slane %v1952_v27, 4  ;;  %v1964_v12 = vsel %vm1797_vm7, 0.0, %v1963_v18  ;;  %1608 = vmatmul.bf16.gmra.mxu2 %v8172_v61 }
 0x275   : > { %v2008_v3 = vperm.slane %v2002_v35, %v8268_v16  ;;  %v2012_v10 = vperm.slane %v2004_v59, %v8268_v16  ;;  %v2013_v39 = vrot.slane %v1996_v0, 4  ;;  %v2015_v17 = vrot.slane %v2000_v52, 4  ;;  %1657 = vmatmul.bf16.gmra.mxu3 %v8175_v48 }
 0x276   : > { %v1957_v19 = vrot.slane %v1940_v7, 4  ;;  %v1960_v21 = vsel %vm1797_vm7, 0.0, %v1959_v31  ;;  %v1962_v37 = vsel %vm1797_vm7, 0.0, %v1961_v56  ;;  %v2801_v60 = vsel %vm1797_vm7, %v1959_v31, %v1940_v7 }
 0x277   : > { %v2014_v25 = vsel %vm1797_vm7, 0.0, %v2013_v39  ;;  %v2016_v2 = vsel %vm1797_vm7, 0.0, %v2015_v17  ;;  %v2017_v61 = vrot.slane %v2008_v3, 4  ;;  %v2019_v14 = vrot.slane %v2012_v10, 4 }
 0x278   : > { %v1958_v32 = vsel %vm1797_vm7, 0.0, %v1957_v19  ;;  %v2805_v24 = vperm.slane %v2801_v60, %v8250_v30  ;;  %v2806_v4 = vrot.slane %v1960_v21, 4  ;;  %v2812_v48 = vsel %vm1797_vm7, %v1963_v18, %v1952_v27  ;;  %v8525_v21 = vpop.permute.xlu2 %6963 }
 0x279   : > { %v2018_v34 = vsel %vm1797_vm7, 0.0, %v2017_v61  ;;  %v2020_v53 = vsel %vm1797_vm7, 0.0, %v2019_v14  ;;  %v2816_v63 = vperm.slane %v2812_v48, %v8250_v30  ;;  %v2817_v33 = vrot.slane %v1964_v12, 4 }
 0x27a   : > { %v2807_v11 = vsel %vm1797_vm7, %v2806_v4, %v1958_v32  ;;  %v2825_v45 = vrot.slane %v2805_v24, 4  ;;  %v2855_v20 = vsel %vm1797_vm7, %v2015_v17, %v1996_v0  ;;  %v2860_v41 = vrot.slane %v2016_v2, 4 }
 0x27b   : > { %v2811_v50 = vperm.slane %v2807_v11, %v8250_v30  ;;  %v2818_v26 = vsel %vm1797_vm7, %v2817_v33, %v1962_v37  ;;  %v2837_v52 = vrot.slane %v2816_v63, 4  ;;  %v2859_v23 = vperm.slane %v2855_v20, %v8250_v30  ;;  %v1218_v20 = vpop.f32.mrf.mxu2 }
 0x27c   : > { %v2822_v27 = vperm.slane %v2818_v26, %v8250_v30  ;;  %v2861_v18 = vsel %vm1797_vm7, %v2860_v41, %v2014_v25  ;;  %v2866_v38 = vsel %vm1797_vm7, %v2019_v14, %v2008_v3  ;;  %v2871_v13 = vrot.slane %v2020_v53, 4  ;;  %v1267_v41 = vpop.f32.mrf.mxu3 }
 0x27d   : > { %v2823_v35 = vrot.slane %v2811_v50, 4  ;;  %v2826_v59 = vsel %vm1797_vm7, %v2811_v50, %v2825_v45  ;;  %v2865_v0 = vperm.slane %v2861_v18, %v8250_v30  ;;  %v2870_v7 = vperm.slane %v2866_v38, %v8250_v30 }
 0x27e   : > { %v2834_v31 = vperm.slane %v2826_v59, %v8268_v16  ;;  %v2835_v56 = vrot.slane %v2822_v27, 4  ;;  %v2838_v12 = vsel %vm1797_vm7, %v2822_v27, %v2837_v52  ;;  %v2872_v10 = vsel %vm1797_vm7, %v2871_v13, %v2018_v34 }
 0x27f   : > { %v2824_v39 = vsel %vm1797_vm7, %v2823_v35, %v2805_v24  ;;  %v2846_v17 = vperm.slane %v2838_v12, %v8268_v16  ;;  %v2876_v3 = vperm.slane %v2872_v10, %v8250_v30  ;;  %v2877_v19 = vrot.slane %v2865_v0, 4 }
 0x280   : > { %v2830_v37 = vperm.slane %v2824_v39, %v8268_v16  ;;  %v2836_v60 = vsel %vm1797_vm7, %v2835_v56, %v2816_v63  ;;  %v2853_v25 = vrot.slane %v2834_v31, 4  ;;  %v2879_v2 = vrot.slane %v2859_v23, 4 }
 0x281   : > { %v2842_v61 = vperm.slane %v2836_v60, %v8268_v16  ;;  %v2851_v14 = vrot.slane %v2846_v17, 4  ;;  %v2878_v32 = vsel %vm1797_vm7, %v2877_v19, %v2859_v23  ;;  %v2889_v4 = vrot.slane %v2876_v3, 4  ;;  %1515 = vmatmul.bf16.gmra.mxu0 %v8208_v9  ;;  %v1172_v19 = vpop.f32.mrf.mxu1 }
 0x282   : > { %v2849_v24 = vrot.slane %v2830_v37, 4  ;;  %v2854_v48 = vsel %vm1797_vm7, %v2846_v17, %v2853_v25  ;;  %v2880_v34 = vsel %vm1797_vm7, %v2865_v0, %v2879_v2  ;;  %v2884_v53 = vperm.slane %v2878_v32, %v8268_v16 }
 0x283   : > { %v2847_v33 = vrot.slane %v2842_v61, 4  ;;  %v2852_v63 = vsel %vm1797_vm7, %v2851_v14, %v2834_v31  ;;  %v2888_v11 = vperm.slane %v2880_v34, %v8268_v16  ;;  %v2890_v45 = vsel %vm1797_vm7, %v2889_v4, %v2870_v7  ;;  %1564 = vmatmul.bf16.gmra.mxu1 %v8211_v42 }
 0x284   : > { %v2850_v50 = vsel %vm1797_vm7, %v2842_v61, %v2849_v24  ;;  %v2891_v26 = vrot.slane %v2870_v7, 4  ;;  %v2896_v52 = vperm.slane %v2890_v45, %v8268_v16  ;;  %v2903_v23 = vrot.slane %v2884_v53, 4  ;;  %1613 = vmatmul.bf16.gmra.mxu2 %v8208_v9  ;;  %v6969_v61 = vpop.permute.xlu2 %6968  ;;  %v8580_v45 = vpop.permute.xlu1 %6953 }
 0x285   : > { %v2848_v27 = vsel %vm1797_vm7, %v2847_v33, %v2830_v37  ;;  %v2907_v18 = vrot.slane %v2888_v11, 4  ;;  %v3575_v38 = vpack.c.bf16 %v2850_v50, %v2850_v50  ;;  %v3591_v13 = vpack.c.bf16 %v2852_v63, %v2852_v63  ;;  %1662 = vmatmul.bf16.gmra.mxu3 %v8211_v42 }
 0x286   : > { %v2892_v35 = vsel %vm1797_vm7, %v2876_v3, %v2891_v26  ;;  %v2901_v59 = vrot.slane %v2896_v52, 4  ;;  %v2904_v0 = vsel %vm1797_vm7, %v2896_v52, %v2903_v23  ;;  %v3559_v7 = vpack.c.bf16 %v2848_v27, %v2848_v27  ;;  %v1123_v3 = vpop.f32.mrf.mxu0  ;;  %v1221_v52 = vpop.f32.mrf.mxu2 }
 0x287   : > { %v2415_v31 = vrot.slane %v8467_v22, 4  ;;  %v2900_v56 = vperm.slane %v2892_v35, %v8268_v16  ;;  %v3576_v9 = vpack.c.bf16 %v2904_v0, %v2904_v0  ;;  %3640 = vst.msk [vmem:[%s8366_s4 + $0x48] sm:$0xf] %vm3621_vm2, %v3575_v38  ;;  %v6966_v12 = vunpack.i.h.bf16 %v8525_v21  ;;  %v1270_v23 = vpop.f32.mrf.mxu3 }
 0x288   : > { %v2902_v10 = vsel %vm1797_vm7, %v2901_v59, %v2884_v53  ;;  %v3607_v42 = vpack.c.bf16 %v2854_v48, %v2854_v48  ;;  %3624 = vst.msk [vmem:[%s8366_s4 + $0x8] sm:$0xf] %vm3621_vm2, %v3559_v7  ;;  %v6982_v39 = vpack.i.bf16 %v8467_v22, %v8402_v62  ;;  %v1268_v17 = vadd.f32 %v1267_v41, %v1218_v20 }
 0x289   : > { %v2905_v37 = vrot.slane %v2900_v56, 4  ;;  %v2908_v60 = vsel %vm1797_vm7, %v2900_v56, %v2907_v18  ;;  %v3560_v25 = vpack.c.bf16 %v2902_v10, %v2902_v10  ;;  %3641 = vst.msk [vmem:[%s8366_s4 + $0x4c] sm:$0xf] %vm3621_vm2, %v3576_v9  ;;  %v6965_v2 = vunpack.i.l.bf16 %v8525_v21 }
 0x28a   : > { %v2171_v14 = vrot.slane %v8442_v36, 4  ;;  %v3608_v32 = vpack.c.bf16 %v2908_v60, %v2908_v60  ;;  %3656 = vst.msk [vmem:[%s8366_s4 + $0x88] sm:$0xf] %vm3621_vm2, %v3591_v13  ;;  %6983 = vrot.lane.b32.xlu2 %v6982_v39, %s7361_s3  ;;  %v2413_v62 = vrot.slane %v1268_v17, 4  ;;  %v8565_v4 = vsel %vm1797_vm7, %v1268_v17, %v2415_v31 }
 0x28b   : > { %v2159_v24 = vrot.slane %v8452_v28, 4  ;;  %v2227_v48 = vrot.slane %v8456_v5, 4  ;;  %v2906_v34 = vsel %vm1797_vm7, %v2905_v37, %v2888_v11  ;;  %3625 = vst.msk [vmem:[%s8366_s4 + $0xc] sm:$0xf] %vm3621_vm2, %v3560_v25  ;;  %v8572_v21 = vadd.f32 %v1172_v19, %v1123_v3 }
 0x28c   : > { %v3592_v53 = vpack.c.bf16 %v2906_v34, %v2906_v34  ;;  %3672 = vst.msk [vmem:[%s8366_s4 + $0xc8] sm:$0xf] %vm3621_vm2, %v3607_v42  ;;  %v2203_v33 = vrot.slane %v6966_v12, 4  ;;  %v8578_v63 = vsel %vm1797_vm7, %v2413_v62, %v8467_v22  ;;  %v6971_v20 = vunpack.i.h.bf16 %v6969_v61 }
 0x28d   : > { %v2215_v41 = vrot.slane %v8462_v1, 4  ;;  %v8585_v11 = vperm.slane %v8388_v43, %v8250_v30  ;;  %3673 = vst.msk [vmem:[%s8366_s4 + $0xcc] sm:$0xf] %vm3621_vm2, %v3608_v32  ;;  %v2147_v50 = vrot.slane %v6965_v2, 4  ;;  %v6970_v26 = vunpack.i.l.bf16 %v6969_v61 }
 0x28e   : > { %v8591_v27 = vperm.slane %v8400_v51, %v8250_v30  ;;  %3657 = vst.msk [vmem:[%s8366_s4 + $0x8c] sm:$0xf] %vm3621_vm2, %v3592_v53  ;;  %v2201_v22 = vrot.slane %v6971_v20, 4  ;;  %v2204_v18 = vsel %vm1797_vm7, %v6971_v20, %v2203_v33  ;;  %v6987_v38 = vpack.i.bf16 %v1268_v17, %v8429_v46 }
 0x28f   : > { %v2471_v43 = vrot.slane %v8572_v21, 4  ;;  %v2145_v13 = vrot.slane %v6970_v26, 4  ;;  %v2148_v35 = vsel %vm1797_vm7, %v6970_v26, %v2147_v50  ;;  %v2212_v59 = vperm.slane %v2204_v18, %v8250_v30 }
 0x290   : > { %v6956_v0 = vunpack.i.h.bf16 %v8580_v45  ;;  %v2156_v7 = vperm.slane %v2148_v35, %v8250_v30  ;;  %v2202_v51 = vsel %vm1797_vm7, %v2201_v22, %v6966_v12  ;;  %6988 = vrot.lane.b32.xlu0 %v6987_v38, %s7361_s3  ;;  %v8604_v31 = vadd.f32 %v1270_v23, %v1221_v52 }
 0x291   : > { %v2146_v56 = vsel %vm1797_vm7, %v2145_v13, %v6965_v2  ;;  %v2208_v46 = vperm.slane %v2202_v51, %v8250_v30  ;;  %v2225_v9 = vrot.slane %v2212_v59, 4  ;;  %v2228_v10 = vsel %vm1797_vm7, %v2212_v59, %v2227_v48 }
 0x292   : > { %v2152_v42 = vperm.slane %v2146_v56, %v8250_v30  ;;  %v2169_v39 = vrot.slane %v2156_v7, 4  ;;  %v2172_v17 = vsel %vm1797_vm7, %v2156_v7, %v2171_v14  ;;  %v2236_v3 = vperm.slane %v2228_v10, %v8268_v16 }
 0x293   : > { %v2180_v12 = vperm.slane %v2172_v17, %v8268_v16  ;;  %v2213_v19 = vrot.slane %v2208_v46, 4  ;;  %v2216_v37 = vsel %vm1797_vm7, %v2208_v46, %v2215_v41  ;;  %v2226_v60 = vsel %vm1797_vm7, %v2225_v9, %v8456_v5 }
 0x294   : > { %v2157_v25 = vrot.slane %v2152_v42, 4  ;;  %v2160_v2 = vsel %vm1797_vm7, %v2152_v42, %v2159_v24  ;;  %v2170_v61 = vsel %vm1797_vm7, %v2169_v39, %v8442_v36  ;;  %v2224_v32 = vperm.slane %v2216_v37, %v8268_v16 }
 0x295   : > { %v2168_v14 = vperm.slane %v2160_v2, %v8268_v16  ;;  %v2176_v62 = vperm.slane %v2170_v61, %v8268_v16  ;;  %v2187_v48 = vrot.slane %v2180_v12, 4  ;;  %v2214_v34 = vsel %vm1797_vm7, %v2213_v19, %v8462_v1 }
 0x296   : > { %v2158_v53 = vsel %vm1797_vm7, %v2157_v25, %v8452_v28  ;;  %v2220_v5 = vperm.slane %v2214_v34, %v8268_v16  ;;  %v2232_v24 = vperm.slane %v2226_v60, %v8268_v16  ;;  %v2239_v33 = vrot.slane %v2224_v32, 4  ;;  %v1125_v60 = vpop.f32.mrf.mxu0  ;;  %v1174_v25 = vpop.f32.mrf.mxu1 }
 0x297   : > { %v2164_v36 = vperm.slane %v2158_v53, %v8268_v16  ;;  %v2183_v20 = vrot.slane %v2168_v14, 4  ;;  %v2185_v41 = vrot.slane %v2176_v62, 4  ;;  %v2188_v50 = vsel %vm1797_vm7, 0.0, %v2187_v48 }
 0x298   : > { %v2237_v26 = vrot.slane %v2220_v5, 4  ;;  %v2240_v52 = vsel %vm1797_vm7, 0.0, %v2239_v33  ;;  %v2241_v23 = vrot.slane %v2232_v24, 4  ;;  %v2243_v22 = vrot.slane %v2236_v3, 4 }
 0x299   : > { %v2181_v1 = vrot.slane %v2164_v36, 4  ;;  %v2184_v18 = vsel %vm1797_vm7, 0.0, %v2183_v20  ;;  %v2186_v28 = vsel %vm1797_vm7, 0.0, %v2185_v41  ;;  %v3017_v38 = vsel %vm1797_vm7, %v2183_v20, %v2164_v36 }
 0x29a   : > { %v2238_v13 = vsel %vm1797_vm7, 0.0, %v2237_v26  ;;  %v2242_v35 = vsel %vm1797_vm7, 0.0, %v2241_v23  ;;  %v2244_v59 = vsel %vm1797_vm7, 0.0, %v2243_v22  ;;  %v3021_v7 = vperm.slane %v3017_v38, %v8250_v30 }
 0x29b   : > { %v2182_v51 = vsel %vm1797_vm7, 0.0, %v2181_v1  ;;  %v3022_v56 = vrot.slane %v2184_v18, 4  ;;  %v3028_v46 = vsel %vm1797_vm7, %v2187_v48, %v2176_v62  ;;  %v3033_v9 = vrot.slane %v2188_v50, 4 }
 0x29c   : > { %v3032_v10 = vperm.slane %v3028_v46, %v8250_v30  ;;  %v3041_v42 = vrot.slane %v3021_v7, 4  ;;  %v3071_v39 = vsel %vm1797_vm7, %v2239_v33, %v2220_v5  ;;  %v3076_v17 = vrot.slane %v2240_v52, 4 }
 0x29d   : > { %v3023_v3 = vsel %vm1797_vm7, %v3022_v56, %v2182_v51  ;;  %v3034_v12 = vsel %vm1797_vm7, %v3033_v9, %v2186_v28  ;;  %v3075_v19 = vperm.slane %v3071_v39, %v8250_v30  ;;  %v3082_v37 = vsel %vm1797_vm7, %v2243_v22, %v2232_v24  ;;  %v1272_v39 = vpop.f32.mrf.mxu3 }
 0x29e   : > { %v3027_v2 = vperm.slane %v3023_v3, %v8250_v30  ;;  %v3038_v61 = vperm.slane %v3034_v12, %v8250_v30  ;;  %v3053_v32 = vrot.slane %v3032_v10, 4  ;;  %v3077_v14 = vsel %vm1797_vm7, %v3076_v17, %v2238_v13 }
 0x29f   : > { %v3081_v62 = vperm.slane %v3077_v14, %v8250_v30  ;;  %v3086_v48 = vperm.slane %v3082_v37, %v8250_v30  ;;  %v3087_v34 = vrot.slane %v2244_v59, 4  ;;  %v3095_v53 = vrot.slane %v3075_v19, 4  ;;  %v1128_v14 = vpop.f32.mrf.mxu0 }
 0x2a0   : > { %v3039_v5 = vrot.slane %v3027_v2, 4  ;;  %v3042_v33 = vsel %vm1797_vm7, %v3027_v2, %v3041_v42  ;;  %v3051_v36 = vrot.slane %v3038_v61, 4  ;;  %v3054_v24 = vsel %vm1797_vm7, %v3038_v61, %v3053_v32  ;;  %v1223_v42 = vpop.f32.mrf.mxu2 }
 0x2a1   : > { %v3050_v20 = vperm.slane %v3042_v33, %v8268_v16  ;;  %v3062_v41 = vperm.slane %v3054_v24, %v8268_v16  ;;  %v3088_v50 = vsel %vm1797_vm7, %v3087_v34, %v2242_v35  ;;  %v3093_v26 = vrot.slane %v3081_v62, 4 }
 0x2a2   : > { %v3040_v52 = vsel %vm1797_vm7, %v3039_v5, %v3021_v7  ;;  %v3052_v23 = vsel %vm1797_vm7, %v3051_v36, %v3032_v10  ;;  %v3092_v22 = vperm.slane %v3088_v50, %v8250_v30  ;;  %v3096_v1 = vsel %vm1797_vm7, %v3081_v62, %v3095_v53  ;;  %v1177_v62 = vpop.f32.mrf.mxu1 }
 0x2a3   : > { %v3046_v18 = vperm.slane %v3040_v52, %v8268_v16  ;;  %v3058_v28 = vperm.slane %v3052_v23, %v8268_v16  ;;  %v3067_v38 = vrot.slane %v3062_v41, 4  ;;  %v3069_v13 = vrot.slane %v3050_v20, 4  ;;  %v6959_v23 = vpop.permute.xlu0 %6958 }
 0x2a4   : > { %v3094_v59 = vsel %vm1797_vm7, %v3093_v26, %v3075_v19  ;;  %v3104_v51 = vperm.slane %v3096_v1, %v8268_v16  ;;  %v3105_v35 = vrot.slane %v3092_v22, 4  ;;  %v3107_v56 = vrot.slane %v3086_v48, 4 }
 0x2a5   : > { %v3063_v46 = vrot.slane %v3058_v28, 4  ;;  %v3065_v7 = vrot.slane %v3046_v18, 4  ;;  %v3068_v9 = vsel %vm1797_vm7, %v3067_v38, %v3050_v20  ;;  %v3070_v10 = vsel %vm1797_vm7, %v3062_v41, %v3069_v13 }
 0x2a6   : > { %v3100_v17 = vperm.slane %v3094_v59, %v8268_v16  ;;  %v3106_v3 = vsel %vm1797_vm7, %v3105_v35, %v3086_v48  ;;  %v3108_v12 = vsel %vm1797_vm7, %v3092_v22, %v3107_v56  ;;  %v3123_v37 = vrot.slane %v3104_v51, 4 }
 0x2a7   : > { %v3064_v19 = vsel %vm1797_vm7, %v3063_v46, %v3046_v18  ;;  %v3066_v2 = vsel %vm1797_vm7, %v3058_v28, %v3065_v7  ;;  %v3112_v61 = vperm.slane %v3106_v3, %v8268_v16  ;;  %v3116_v32 = vperm.slane %v3108_v12, %v8268_v16 }
 0x2a8   : > { %v3119_v34 = vrot.slane %v3100_v17, 4  ;;  %v3563_v53 = vpack.c.bf16 %v3064_v19, %v3064_v19  ;;  %v3579_v5 = vpack.c.bf16 %v3066_v2, %v3066_v2  ;;  %v3595_v33 = vpack.c.bf16 %v3068_v9, %v3068_v9  ;;  %v8714_v19 = vpop.f32.mrf.mxu3 }
 0x2a9   : > { %v6955_v48 = vunpack.i.l.bf16 %v8580_v45  ;;  %v3117_v36 = vrot.slane %v3112_v61, 4  ;;  %v3121_v24 = vrot.slane %v3116_v32, 4  ;;  %v3124_v20 = vsel %vm1797_vm7, %v3116_v32, %v3123_v37  ;;  %v8712_v37 = vpop.f32.mrf.mxu2 }
 0x2aa   : > { %v3120_v41 = vsel %vm1797_vm7, %v3112_v61, %v3119_v34  ;;  %3628 = vst.msk [vmem:[%s8366_s4 + $0x18] sm:$0xf] %vm3621_vm2, %v3563_v53  ;;  %v2469_v50 = vrot.slane %v8604_v31, 4  ;;  %v8683_v26 = vsel %vm1797_vm7, %v8604_v31, %v2471_v43  ;;  %v1175_v52 = vadd.f32 %v1174_v25, %v1125_v60  ;;  %v8735_v53 = vpop.f32.mrf.mxu0 }
 0x2ab   : > { %v2283_v22 = vrot.slane %v8585_v11, 4  ;;  %v3118_v1 = vsel %vm1797_vm7, %v3117_v36, %v3100_v17  ;;  %v3122_v18 = vsel %vm1797_vm7, %v3121_v24, %v3104_v51  ;;  %v3580_v28 = vpack.c.bf16 %v3120_v41, %v3120_v41  ;;  %3644 = vst.msk [vmem:[%s8366_s4 + $0x58] sm:$0xf] %vm3621_vm2, %v3579_v5  ;;  %v8737_v5 = vpop.f32.mrf.mxu1 }
 0x2ac   : > { %v3564_v38 = vpack.c.bf16 %v3118_v1, %v3118_v1  ;;  %v3596_v13 = vpack.c.bf16 %v3122_v18, %v3122_v18  ;;  %v3611_v59 = vpack.c.bf16 %v3070_v10, %v3070_v10  ;;  %3660 = vst.msk [vmem:[%s8366_s4 + $0x98] sm:$0xf] %vm3621_vm2, %v3595_v33  ;;  %v8694_v43 = vsel %vm1797_vm7, %v2469_v50, %v8572_v21 }
 0x2ad   : > { %v2091_v60 = vrot.slane %v6956_v0, 4  ;;  %v3612_v25 = vpack.c.bf16 %v3124_v20, %v3124_v20  ;;  %3645 = vst.msk [vmem:[%s8366_s4 + $0x5c] sm:$0xf] %vm3621_vm2, %v3580_v28  ;;  %v6961_v51 = vunpack.i.h.bf16 %v6959_v23  ;;  %v6960_v35 = vunpack.i.l.bf16 %v6959_v23 }
 0x2ae   : > { %v2035_v56 = vrot.slane %v6955_v48, 4  ;;  %3629 = vst.msk [vmem:[%s8366_s4 + $0x1c] sm:$0xf] %vm3621_vm2, %v3564_v38  ;;  %v2527_v46 = vrot.slane %v1175_v52, 4  ;;  %v6992_v7 = vpack.i.bf16 %v1175_v52, %v8572_v21  ;;  %v8703_v9 = vadd.f32 %v1272_v39, %v1223_v42 }
 0x2af   : > { %v8707_v10 = vperm.slane %v8410_v47, %v8250_v30  ;;  %3661 = vst.msk [vmem:[%s8366_s4 + $0x9c] sm:$0xf] %vm3621_vm2, %v3596_v13  ;;  %v2089_v17 = vrot.slane %v6961_v51, 4  ;;  %v2092_v3 = vsel %vm1797_vm7, %v6961_v51, %v2091_v60  ;;  %v2033_v12 = vrot.slane %v6960_v35, 4 }
 0x2b0   : > { %3676 = vst.msk [vmem:[%s8366_s4 + $0xd8] sm:$0xf] %vm3621_vm2, %v3611_v59  ;;  %v2100_v21 = vperm.slane %v2092_v3, %v8250_v30  ;;  %v2036_v42 = vsel %vm1797_vm7, %v6960_v35, %v2035_v56  ;;  %6993 = vrot.lane.b32.xlu1 %v6992_v7, %s7361_s3  ;;  %v2525_v47 = vrot.slane %v8703_v9, 4  ;;  %v8724_v39 = vsel %vm1797_vm7, %v8703_v9, %v2527_v46 }
 0x2b1   : > { %3677 = vst.msk [vmem:[%s8366_s4 + $0xdc] sm:$0xf] %vm3621_vm2, %v3612_v25  ;;  %v2090_v2 = vsel %vm1797_vm7, %v2089_v17, %v6956_v0  ;;  %v2034_v61 = vsel %vm1797_vm7, %v2033_v12, %v6955_v48  ;;  %v2044_v32 = vperm.slane %v2036_v42, %v8250_v30  ;;  %v8733_v34 = vadd.f32 %v1177_v62, %v1128_v14  ;;  %v8770_v25 = vpop.f32.mrf.mxu2 }
 0x2b2   : > { %v2096_v33 = vperm.slane %v2090_v2, %v8250_v30  ;;  %v2113_v36 = vrot.slane %v2100_v21, 4  ;;  %v2116_v24 = vsel %vm1797_vm7, %v2100_v21, %v2115_v40  ;;  %v2040_v45 = vperm.slane %v2034_v61, %v8250_v30  ;;  %v8780_v17 = vpop.f32.mrf.mxu0 }
 0x2b3   : > { %v2124_v0 = vperm.slane %v2116_v24, %v8268_v16  ;;  %v2057_v48 = vrot.slane %v2044_v32, 4  ;;  %v2060_v14 = vsel %vm1797_vm7, %v2044_v32, %v2059_v54  ;;  %v8749_v62 = vsel %vm1797_vm7, %v2525_v47, %v1175_v52  ;;  %v8782_v3 = vpop.f32.mrf.mxu1 }
 0x2b4   : > { %v2101_v20 = vrot.slane %v2096_v33, 4  ;;  %v2104_v41 = vsel %vm1797_vm7, %v2096_v33, %v2103_v57  ;;  %v2114_v40 = vsel %vm1797_vm7, %v2113_v36, %v8420_v58  ;;  %v2045_v50 = vrot.slane %v2040_v45, 4 }
 0x2b5   : > { %v2112_v23 = vperm.slane %v2104_v41, %v8268_v16  ;;  %v2120_v1 = vperm.slane %v2114_v40, %v8268_v16  ;;  %v2131_v18 = vrot.slane %v2124_v0, 4  ;;  %v2048_v54 = vsel %vm1797_vm7, %v2040_v45, %v2047_v44  ;;  %v8772_v44 = vpop.f32.mrf.mxu3 }
 0x2b6   : > { %v2102_v52 = vsel %vm1797_vm7, %v2101_v20, %v8416_v15  ;;  %v2046_v28 = vsel %vm1797_vm7, %v2045_v50, %v8394_v6  ;;  %v2056_v57 = vperm.slane %v2048_v54, %v8268_v16  ;;  %v2058_v58 = vsel %vm1797_vm7, %v2057_v48, %v8294_v29 }
 0x2b7   : > { %v2108_v38 = vperm.slane %v2102_v52, %v8268_v16  ;;  %v2127_v13 = vrot.slane %v2112_v23, 4  ;;  %v2129_v59 = vrot.slane %v2120_v1, 4  ;;  %v2132_v60 = vsel %vm1797_vm7, 0.0, %v2131_v18 }
 0x2b8   : > { %v2974_v15 = vsel %vm1797_vm7, %v2131_v18, %v2120_v1  ;;  %v2979_v51 = vrot.slane %v2132_v60, 4  ;;  %v2052_v6 = vperm.slane %v2046_v28, %v8268_v16  ;;  %v2064_v35 = vperm.slane %v2058_v58, %v8268_v16 }
 0x2b9   : > { %v2125_v56 = vrot.slane %v2108_v38, 4  ;;  %v2128_v29 = vsel %vm1797_vm7, 0.0, %v2127_v13  ;;  %v2130_v46 = vsel %vm1797_vm7, 0.0, %v2129_v59  ;;  %v2963_v7 = vsel %vm1797_vm7, %v2127_v13, %v2108_v38 }
 0x2ba   : > { %v2967_v12 = vperm.slane %v2963_v7, %v8250_v30  ;;  %v2968_v21 = vrot.slane %v2128_v29, 4  ;;  %v2978_v42 = vperm.slane %v2974_v15, %v8250_v30  ;;  %v2980_v47 = vsel %vm1797_vm7, %v2979_v51, %v2130_v46  ;;  %v8809_v29 = vpop.f32.mrf.mxu0 }
 0x2bb   : > { %v2126_v2 = vsel %vm1797_vm7, 0.0, %v2125_v56  ;;  %v2984_v61 = vperm.slane %v2980_v47, %v8250_v30  ;;  %v2068_v32 = vperm.slane %v2060_v14, %v8268_v16  ;;  %v2069_v33 = vrot.slane %v2052_v6, 4  ;;  %v8811_v46 = vpop.f32.mrf.mxu1 }
 0x2bc   : > { %v2969_v36 = vsel %vm1797_vm7, %v2968_v21, %v2126_v2  ;;  %v2987_v24 = vrot.slane %v2967_v12, 4  ;;  %v2999_v45 = vrot.slane %v2978_v42, 4  ;;  %v2071_v0 = vrot.slane %v2056_v57, 4  ;;  %v8799_v57 = vpop.f32.mrf.mxu2 }
 0x2bd   : > { %v2973_v48 = vperm.slane %v2969_v36, %v8250_v30  ;;  %v2997_v20 = vrot.slane %v2984_v61, 4  ;;  %v2070_v41 = vsel %vm1797_vm7, 0.0, %v2069_v33  ;;  %v2073_v40 = vrot.slane %v2064_v35, 4  ;;  %v8801_v58 = vpop.f32.mrf.mxu3 }
 0x2be   : > { %v3000_v50 = vsel %vm1797_vm7, %v2984_v61, %v2999_v45  ;;  %v2072_v23 = vsel %vm1797_vm7, 0.0, %v2071_v0  ;;  %v2075_v1 = vrot.slane %v2068_v32, 4  ;;  %v2909_v18 = vsel %vm1797_vm7, %v2071_v0, %v2052_v6 }
 0x2bf   : > { %v2985_v14 = vrot.slane %v2973_v48, 4  ;;  %v2988_v54 = vsel %vm1797_vm7, %v2973_v48, %v2987_v24  ;;  %v2998_v52 = vsel %vm1797_vm7, %v2997_v20, %v2978_v42  ;;  %v3008_v28 = vperm.slane %v3000_v50, %v8268_v16 }
 0x2c0   : > { %v2996_v38 = vperm.slane %v2988_v54, %v8268_v16  ;;  %v3004_v13 = vperm.slane %v2998_v52, %v8268_v16  ;;  %v2074_v59 = vsel %vm1797_vm7, 0.0, %v2073_v40  ;;  %v2076_v60 = vsel %vm1797_vm7, 0.0, %v2075_v1 }
 0x2c1   : > { %v2986_v15 = vsel %vm1797_vm7, %v2985_v14, %v2967_v12  ;;  %v3013_v51 = vrot.slane %v3008_v28, 4  ;;  %v2913_v6 = vperm.slane %v2909_v18, %v8250_v30  ;;  %v2914_v56 = vrot.slane %v2072_v23, 4 }
 0x2c2   : > { %v2992_v7 = vperm.slane %v2986_v15, %v8268_v16  ;;  %v3009_v21 = vrot.slane %v3004_v13, 4  ;;  %v3015_v42 = vrot.slane %v2996_v38, 4  ;;  %v2920_v47 = vsel %vm1797_vm7, %v2075_v1, %v2064_v35 }
 0x2c3   : > { %v3014_v2 = vsel %vm1797_vm7, %v3013_v51, %v2996_v38  ;;  %v2915_v61 = vsel %vm1797_vm7, %v2914_v56, %v2070_v41  ;;  %v2924_v12 = vperm.slane %v2920_v47, %v8250_v30  ;;  %v2925_v32 = vrot.slane %v2076_v60, 4 }
 0x2c4   : > { %v3010_v33 = vsel %vm1797_vm7, %v3009_v21, %v2992_v7  ;;  %v3011_v36 = vrot.slane %v2992_v7, 4  ;;  %v3016_v24 = vsel %vm1797_vm7, %v3008_v28, %v3015_v42  ;;  %v3594_v45 = vpack.c.bf16 %v3014_v2, %v3014_v2  ;;  %v8833_v52 = vpop.f32.mrf.mxu2  ;;  %v1486_v7 = vpop.f32.mrf.mxu0 }
 0x2c5   : > { %v3562_v0 = vpack.c.bf16 %v3010_v33, %v3010_v33  ;;  %v3610_v48 = vpack.c.bf16 %v3016_v24, %v3016_v24  ;;  %v2919_v20 = vperm.slane %v2915_v61, %v8250_v30  ;;  %v2926_v35 = vsel %vm1797_vm7, %v2925_v32, %v2074_v59  ;;  %v8835_v28 = vpop.f32.mrf.mxu3  ;;  %v1535_v21 = vpop.f32.mrf.mxu1 }
 0x2c6   : > { %v3012_v40 = vsel %vm1797_vm7, %v3004_v13, %v3011_v36  ;;  %3659 = vst.msk [vmem:[%s8366_s4 + $0x94] sm:$0xf] %vm3621_vm2, %v3594_v45  ;;  %v2930_v41 = vperm.slane %v2926_v35, %v8250_v30  ;;  %v2933_v50 = vrot.slane %v2913_v6, 4  ;;  %v2945_v23 = vrot.slane %v2924_v12, 4 }
 0x2c7   : > { %v2271_v1 = vrot.slane %v8591_v27, 4  ;;  %v8829_v18 = vperm.slane %v8425_v8, %v8250_v30  ;;  %v3578_v14 = vpack.c.bf16 %v3012_v40, %v3012_v40  ;;  %3627 = vst.msk [vmem:[%s8366_s4 + $0x14] sm:$0xf] %vm3621_vm2, %v3562_v0  ;;  %v2931_v54 = vrot.slane %v2919_v20, 4 }
 0x2c8   : > { %v2339_v38 = vrot.slane %v8707_v10, 4  ;;  %3675 = vst.msk [vmem:[%s8366_s4 + $0xd4] sm:$0xf] %vm3621_vm2, %v3610_v48  ;;  %v2934_v13 = vsel %vm1797_vm7, %v2919_v20, %v2933_v50  ;;  %v2943_v59 = vrot.slane %v2930_v41, 4  ;;  %v2946_v60 = vsel %vm1797_vm7, %v2930_v41, %v2945_v23 }
 0x2c9   : > { %3643 = vst.msk [vmem:[%s8366_s4 + $0x54] sm:$0xf] %vm3621_vm2, %v3578_v14  ;;  %v2932_v8 = vsel %vm1797_vm7, %v2931_v54, %v2913_v6  ;;  %v2942_v15 = vperm.slane %v2934_v13, %v8268_v16  ;;  %v2954_v51 = vperm.slane %v2946_v60, %v8268_v16  ;;  %v2583_v56 = vrot.slane %v8733_v34, 4 }
 0x2ca   : > { %v2938_v42 = vperm.slane %v2932_v8, %v8268_v16  ;;  %v2944_v47 = vsel %vm1797_vm7, %v2943_v59, %v2924_v12  ;;  %v6997_v2 = vpack.i.bf16 %v8703_v9, %v8604_v31  ;;  %v1276_v61 = vadd.f32 %v8714_v19, %v8712_v37 }
 0x2cb   : > { %v2950_v6 = vperm.slane %v2944_v47, %v8268_v16  ;;  %v2959_v32 = vrot.slane %v2954_v51, 4  ;;  %v2961_v33 = vrot.slane %v2942_v15, 4  ;;  %v1180_v36 = vadd.f32 %v8737_v5, %v8735_v53 }
 0x2cc   : > { %v2957_v24 = vrot.slane %v2938_v42, 4  ;;  %6998 = vrot.lane.b32.xlu2 %v6997_v2, %s7361_s3  ;;  %v2581_v45 = vrot.slane %v1276_v61, 4  ;;  %v2584_v0 = vsel %vm1797_vm7, %v1276_v61, %v2583_v56  ;;  %v1278_v12 = vadd.f32 %v8772_v44, %v8770_v25  ;;  %v1584_v40 = vpop.f32.mrf.mxu2  ;;  %v1488_v60 = vpop.f32.mrf.mxu0 }
 0x2cd   : > { %v8863_v31 = vperm.slane %v8436_v55, %v8250_v30  ;;  %v2955_v9 = vrot.slane %v2950_v6, 4  ;;  %v2960_v37 = vsel %vm1797_vm7, %v2959_v32, %v2942_v15  ;;  %v2962_v19 = vsel %vm1797_vm7, %v2954_v51, %v2961_v33  ;;  %v1633_v41 = vpop.f32.mrf.mxu3  ;;  %v1537_v8 = vpop.f32.mrf.mxu1 }
 0x2ce   : > { %v8869_v53 = vperm.slane %v8446_v49, %v8250_v30  ;;  %v2958_v5 = vsel %vm1797_vm7, %v2950_v6, %v2957_v24  ;;  %v3593_v48 = vpack.c.bf16 %v2960_v37, %v2960_v37  ;;  %v2582_v25 = vsel %vm1797_vm7, %v2581_v45, %v8733_v34 }
 0x2cf   : > { %v8876_v55 = vperm.slane %v8565_v4, %v8250_v30  ;;  %v2956_v44 = vsel %vm1797_vm7, %v2955_v9, %v2938_v42  ;;  %v3577_v20 = vpack.c.bf16 %v2958_v5, %v2958_v5  ;;  %v3609_v35 = vpack.c.bf16 %v2962_v19, %v2962_v19 }
 0x2d0   : > { %v3561_v49 = vpack.c.bf16 %v2956_v44, %v2956_v44  ;;  %3658 = vst.msk [vmem:[%s8366_s4 + $0x90] sm:$0xf] %vm3621_vm2, %v3593_v48  ;;  %v2639_v50 = vrot.slane %v1180_v36, 4  ;;  %v7002_v23 = vpack.i.bf16 %v1180_v36, %v8733_v34  ;;  %v2637_v14 = vrot.slane %v1278_v12, 4 }
 0x2d1   : > { %v8884_v54 = vperm.slane %v8578_v63, %v8250_v30  ;;  %3642 = vst.msk [vmem:[%s8366_s4 + $0x50] sm:$0xf] %vm3621_vm2, %v3577_v20  ;;  %v1531_v4 = vadd.f32 %v8782_v3, %v8780_v17  ;;  %v7007_v13 = vpack.i.bf16 %v1278_v12, %v1276_v61  ;;  %v1629_v59 = vadd.f32 %v8801_v58, %v8799_v57 }
 0x2d2   : > { %v2327_v15 = vrot.slane %v8829_v18, 4  ;;  %3626 = vst.msk [vmem:[%s8366_s4 + $0x10] sm:$0xf] %vm3621_vm2, %v3561_v49  ;;  %7003 = vrot.lane.b32.xlu0 %v7002_v23, %s7361_s3  ;;  %v2638_v63 = vsel %vm1797_vm7, %v2637_v14, %v1180_v36  ;;  %v2640_v34 = vsel %vm1797_vm7, %v1278_v12, %v2639_v50  ;;  %v1533_v51 = vadd.f32 %v8811_v46, %v8809_v29 }
 0x2d3   : > { %3674 = vst.msk [vmem:[%s8366_s4 + $0xd0] sm:$0xf] %vm3621_vm2, %v3609_v35  ;;  %v3816_v57 = vrot.slane %v1531_v4, 4  ;;  %7008 = vrot.lane.b32.xlu1 %v7007_v13, %s7361_s3  ;;  %v3814_v58 = vrot.slane %v1629_v59, 4  ;;  %v1631_v47 = vadd.f32 %v8835_v28, %v8833_v52  ;;  %v1536_v2 = vadd.f32 %v1535_v21, %v1486_v7 }
 0x2d4   : > { %v3872_v42 = vrot.slane %v1533_v51, 4  ;;  %v8911_v29 = vperm.slane %v8683_v26, %v8250_v30  ;;  %v8917_v32 = vperm.slane %v8694_v43, %v8250_v30  ;;  %v7012_v33 = vpack.i.bf16 %v1533_v51, %v1531_v4  ;;  %v1586_v21 = vpop.f32.mrf.mxu2  ;;  %v1491_v44 = vpop.f32.mrf.mxu0 }
 0x2d5   : > { %v3815_v46 = vsel %vm1797_vm7, %v3814_v58, %v1531_v4  ;;  %v3817_v6 = vsel %vm1797_vm7, %v1629_v59, %v3816_v57  ;;  %v3870_v36 = vrot.slane %v1631_v47, 4  ;;  %v8922_v52 = vperm.slane %v8724_v39, %v8250_v30  ;;  %v1635_v45 = vpop.f32.mrf.mxu3  ;;  %v1540_v20 = vpop.f32.mrf.mxu1 }
 0x2d6   : > { %v3873_v24 = vsel %vm1797_vm7, %v1631_v47, %v3872_v42  ;;  %v3928_v28 = vrot.slane %v1536_v2, 4  ;;  %v7017_v7 = vpack.i.bf16 %v1631_v47, %v1629_v59  ;;  %v1634_v26 = vadd.f32 %v1633_v41, %v1584_v40 }
 0x2d7   : > { %v8926_v12 = vperm.slane %v8749_v62, %v8250_v30  ;;  %v8929_v43 = vperm.slane %v2584_v0, %v8250_v30  ;;  %v3871_v9 = vsel %vm1797_vm7, %v3870_v36, %v1533_v51  ;;  %v1538_v37 = vadd.f32 %v1537_v8, %v1488_v60 }
 0x2d8   : > { %v8933_v19 = vperm.slane %v2582_v25, %v8250_v30  ;;  %v8936_v39 = vperm.slane %v2638_v63, %v8250_v30  ;;  %v3926_v5 = vrot.slane %v1634_v26, 4  ;;  %v3929_v48 = vsel %vm1797_vm7, %v1634_v26, %v3928_v28 }
 0x2d9   : > { %v8940_v62 = vperm.slane %v2640_v34, %v8250_v30  ;;  %v3984_v0 = vrot.slane %v1538_v37, 4  ;;  %v7022_v35 = vpack.i.bf16 %v1538_v37, %v1536_v2  ;;  %v1636_v40 = vadd.f32 %v1635_v45, %v1586_v21  ;;  %v6974_v21 = vpop.permute.xlu0 %6973 }
 0x2da   : > { %7013 = vrot.lane.b32.xlu0 %v7012_v33, %s7361_s3  ;;  %v8946_v49 = vperm.slane %v3815_v46, %v8250_v30  ;;  %v3927_v50 = vsel %vm1797_vm7, %v3926_v5, %v1536_v2  ;;  %v1541_v13 = vadd.f32 %v1540_v20, %v1491_v44  ;;  %v8959_v51 = vperm.slane %v3817_v6, %v8250_v30  ;;  %v6979_v45 = vpop.permute.xlu1 %6978 }
 0x2db   : > { %7018 = vrot.lane.b32.xlu1 %v7017_v7, %s7361_s3  ;;  %7023 = vrot.lane.b32.xlu2 %v7022_v35, %s7361_s3  ;;  %v3982_v14 = vrot.slane %v1636_v40, 4  ;;  %v3985_v4 = vsel %vm1797_vm7, %v1636_v40, %v3984_v0  ;;  %v7027_v58 = vpack.i.bf16 %v1636_v40, %v1634_v26  ;;  %v8964_v47 = vperm.slane %v3871_v9, %v8250_v30 }
 0x2dc   : > { %v8967_v2 = vperm.slane %v3873_v24, %v8250_v30  ;;  %v8970_v46 = vperm.slane %v3929_v48, %v8250_v30  ;;  %v1589_v33 = vpop.f32.mrf.mxu2  ;;  %v8973_v28 = vperm.slane %v3927_v50, %v8250_v30  ;;  %v8976_v6 = vperm.slane %v3985_v4, %v8250_v30  ;;  %v1493_v24 = vpop.f32.mrf.mxu0 }
 0x2dd   : > { %v3983_v57 = vsel %vm1797_vm7, %v3982_v14, %v1538_v37  ;;  %v1638_v36 = vpop.f32.mrf.mxu3  ;;  %v4040_v7 = vrot.slane %v1541_v13, 4  ;;  %v1542_v37 = vpop.f32.mrf.mxu1  ;;  %v6976_v5 = vunpack.i.h.bf16 %v6974_v21  ;;  %v6975_v48 = vunpack.i.l.bf16 %v6974_v21 }
 0x2de   : > { %v1639_v26 = vadd.f32 %v1638_v36, %v1589_v33  ;;  %v8979_v9 = vperm.slane %v3983_v57, %v8250_v30  ;;  %v6981_v44 = vunpack.i.h.bf16 %v6979_v45  ;;  %v1543_v35 = vadd.f32 %v1542_v37, %v1493_v24 }
 0x2df   : > { %v6980_v40 = vunpack.i.l.bf16 %v6979_v45  ;;  %v2259_v42 = vrot.slane %v6975_v48, 4  ;;  %v2315_v45 = vrot.slane %v6976_v5, 4 }
 0x2e0   : > { %v4038_v20 = vrot.slane %v1639_v26, 4  ;;  %v4041_v0 = vsel %vm1797_vm7, %v1639_v26, %v4040_v7  ;;  %v2313_v57 = vrot.slane %v6981_v44, 4  ;;  %v7032_v36 = vpack.i.bf16 %v1543_v35, %v1541_v13 }
 0x2e1   : > { %v2257_v21 = vrot.slane %v6980_v40, 4  ;;  %v8998_v14 = vperm.slane %v4041_v0, %v8250_v30  ;;  %v4096_v63 = vrot.slane %v1543_v35, 4  ;;  %v2316_v60 = vsel %vm1797_vm7, %v6981_v44, %v2315_v45 }
 0x2e2   : > { %7028 = vrot.lane.b32.xlu0 %v7027_v58, %s7361_s3  ;;  %v4039_v33 = vsel %vm1797_vm7, %v4038_v20, %v1541_v13  ;;  %v2260_v20 = vsel %vm1797_vm7, %v6980_v40, %v2259_v42  ;;  %v2314_v13 = vsel %vm1797_vm7, %v2313_v57, %v6976_v5 }
 0x2e3   : > { %7033 = vrot.lane.b32.xlu1 %v7032_v36, %s7361_s3  ;;  %v2258_v4 = vsel %vm1797_vm7, %v2257_v21, %v6975_v48  ;;  %v9003_v37 = vperm.slane %v4039_v33, %v8250_v30  ;;  %v2268_v42 = vperm.slane %v2260_v20, %v8250_v30 }
 0x2e4   : > { %v8990_v24 = vpop.permute.xlu2 %6983  ;;  %v1591_v58 = vpop.f32.mrf.mxu2  ;;  %v2264_v7 = vperm.slane %v2258_v4, %v8250_v30  ;;  %v2320_v4 = vperm.slane %v2314_v13, %v8250_v30 }
 0x2e5   : > { %v1640_v50 = vpop.f32.mrf.mxu3  ;;  %v6986_v48 = vunpack.i.h.bf16 %v8990_v24  ;;  %v1496_v40 = vpop.f32.mrf.mxu0  ;;  %v10727_v0 = vunpack.i.l.bf16 %v8990_v24  ;;  %v2281_v8 = vrot.slane %v2268_v42, 4 }
 0x2e6   : > { %v1641_v36 = vadd.f32 %v1640_v50, %v1591_v58  ;;  %v1545_v5 = vpop.f32.mrf.mxu1  ;;  %v2269_v57 = vrot.slane %v2264_v7, 4  ;;  %v2272_v21 = vsel %vm1797_vm7, %v2264_v7, %v2271_v1  ;;  %v2324_v50 = vperm.slane %v2316_v60, %v8250_v30 }
 0x2e7   : > { %v1546_v58 = vadd.f32 %v1545_v5, %v1496_v40  ;;  %v2280_v34 = vperm.slane %v2272_v21, %v8268_v16  ;;  %v2284_v60 = vsel %vm1797_vm7, %v2268_v42, %v2283_v22  ;;  %v9033_v7 = vrot.slane %v6986_v48, 4 }
 0x2e8   : > { %v4094_v44 = vrot.slane %v1641_v36, 4  ;;  %v4097_v33 = vsel %vm1797_vm7, %v1641_v36, %v4096_v63  ;;  %v7037_v45 = vpack.i.bf16 %v1641_v36, %v1639_v26  ;;  %v2270_v20 = vsel %vm1797_vm7, %v2269_v57, %v8591_v27 }
 0x2e9   : > { %v9019_v23 = vperm.slane %v4097_v33, %v8250_v30  ;;  %v2276_v1 = vperm.slane %v2270_v20, %v8268_v16  ;;  %v2282_v26 = vsel %vm1797_vm7, %v2281_v8, %v8585_v11  ;;  %v9037_v13 = vrot.slane %v10727_v0, 4 }
 0x2ea   : > { %v4095_v25 = vsel %vm1797_vm7, %v4094_v44, %v1543_v35  ;;  %7038 = vrot.lane.b32.xlu2 %v7037_v45, %s7361_s3  ;;  %v2292_v35 = vperm.slane %v2284_v60, %v8268_v16  ;;  %v2288_v36 = vperm.slane %v2282_v26, %v8268_v16  ;;  %v2325_v22 = vrot.slane %v2320_v4, 4 }
 0x2eb   : > { %v4152_v42 = vrot.slane %v1546_v58, 4  ;;  %v2295_v57 = vrot.slane %v2280_v34, 4  ;;  %v2328_v11 = vsel %vm1797_vm7, %v2320_v4, %v2327_v15  ;;  %v2337_v8 = vrot.slane %v2324_v50, 4 }
 0x2ec   : > { %v1594_v40 = vpop.f32.mrf.mxu2  ;;  %v9044_v21 = vperm.slane %v4095_v25, %v8250_v30  ;;  %v2293_v45 = vrot.slane %v2276_v1, 4  ;;  %v2297_v26 = vrot.slane %v2288_v36, 4  ;;  %v2299_v27 = vrot.slane %v2292_v35, 4 }
 0x2ed   : > { %v1643_v5 = vpop.f32.mrf.mxu3  ;;  %v1498_v20 = vpop.f32.mrf.mxu0  ;;  %v2326_v63 = vsel %vm1797_vm7, %v2325_v22, %v8829_v18  ;;  %v2338_v34 = vsel %vm1797_vm7, %v2337_v8, %v8707_v10  ;;  %v2336_v25 = vperm.slane %v2328_v11, %v8268_v16  ;;  %v2296_v44 = vsel %vm1797_vm7, 0.0, %v2295_v57 }
 0x2ee   : > { %v1644_v33 = vadd.f32 %v1643_v5, %v1594_v40  ;;  %v1547_v60 = vpop.f32.mrf.mxu1  ;;  %v2332_v40 = vperm.slane %v2326_v63, %v8268_v16  ;;  %v2340_v35 = vsel %vm1797_vm7, %v2324_v50, %v2339_v38  ;;  %v2344_v5 = vperm.slane %v2338_v34, %v8268_v16 }
 0x2ef   : > { %v1548_v4 = vadd.f32 %v1547_v60, %v1498_v20  ;;  %v2294_v20 = vsel %vm1797_vm7, 0.0, %v2293_v45  ;;  %v2298_v11 = vsel %vm1797_vm7, 0.0, %v2297_v26  ;;  %v2300_v60 = vsel %vm1797_vm7, 0.0, %v2299_v27 }
 0x2f0   : > { %v4150_v41 = vrot.slane %v1644_v33, 4  ;;  %v4153_v15 = vsel %vm1797_vm7, %v1644_v33, %v4152_v42  ;;  %v2348_v42 = vperm.slane %v2340_v35, %v8268_v16  ;;  %v2349_v63 = vrot.slane %v2332_v40, 4 }
 0x2f1   : > { %v7042_v8 = vpack.i.bf16 %v1548_v4, %v1546_v58  ;;  %v9066_v10 = vperm.slane %v4153_v15, %v8250_v30  ;;  %v2351_v38 = vrot.slane %v2336_v25, 4  ;;  %v3125_v50 = vsel %vm1797_vm7, %v2295_v57, %v2276_v1 }
 0x2f2   : > { %v4151_v22 = vsel %vm1797_vm7, %v4150_v41, %v1546_v58  ;;  %v3130_v34 = vrot.slane %v2296_v44, 4  ;;  %v4208_v58 = vrot.slane %v1548_v4, 4  ;;  %v2353_v18 = vrot.slane %v2344_v5, 4 }
 0x2f3   : > { %7043 = vrot.lane.b32.xlu0 %v7042_v8, %s7361_s3  ;;  %v9071_v41 = vperm.slane %v4151_v22, %v8250_v30  ;;  %v3129_v26 = vperm.slane %v3125_v50, %v8250_v30  ;;  %v2350_v17 = vsel %vm1797_vm7, 0.0, %v2349_v63  ;;  %v2355_v15 = vrot.slane %v2348_v42, 4 }
 0x2f4   : > { %v1596_v35 = vpop.f32.mrf.mxu2  ;;  %v3131_v3 = vsel %vm1797_vm7, %v3130_v34, %v2294_v20  ;;  %v3136_v57 = vsel %vm1797_vm7, %v2299_v27, %v2288_v36  ;;  %v3141_v44 = vrot.slane %v2300_v60, 4  ;;  %v2352_v50 = vsel %vm1797_vm7, 0.0, %v2351_v38 }
 0x2f5   : > { %v1645_v45 = vpop.f32.mrf.mxu3  ;;  %v1501_v8 = vpop.f32.mrf.mxu0  ;;  %v3135_v1 = vperm.slane %v3131_v3, %v8250_v30  ;;  %v3149_v22 = vrot.slane %v3129_v26, 4  ;;  %v3140_v42 = vperm.slane %v3136_v57, %v8250_v30  ;;  %v2354_v3 = vsel %vm1797_vm7, 0.0, %v2353_v18 }
 0x2f6   : > { %v1646_v59 = vadd.f32 %v1645_v45, %v1596_v35  ;;  %v1550_v25 = vpop.f32.mrf.mxu1  ;;  %v3142_v20 = vsel %vm1797_vm7, %v3141_v44, %v2298_v11 }
 0x2f7   : > { %v9080_v35 = vadd.f32 %v1550_v25, %v1501_v8  ;;  %v3147_v63 = vrot.slane %v3135_v1, 4  ;;  %v3146_v27 = vperm.slane %v3142_v20, %v8250_v30  ;;  %v3184_v25 = vrot.slane %v2352_v50, 4 }
 0x2f8   : > { %v4206_v61 = vrot.slane %v1646_v59, 4  ;;  %v4209_v0 = vsel %vm1797_vm7, %v1646_v59, %v4208_v58  ;;  %v7047_v56 = vpack.i.bf16 %v1646_v59, %v1644_v33  ;;  %v3150_v59 = vsel %vm1797_vm7, %v3135_v1, %v3149_v22 }
 0x2f9   : > { %v9092_v36 = vperm.slane %v4209_v0, %v8250_v30  ;;  %v2356_v33 = vsel %vm1797_vm7, 0.0, %v2355_v15  ;;  %v3148_v60 = vsel %vm1797_vm7, %v3147_v63, %v3129_v26  ;;  %v3158_v11 = vperm.slane %v3150_v59, %v8268_v16 }
 0x2fa   : > { %v9085_v34 = vsel %vm1797_vm7, %v4206_v61, %v1548_v4  ;;  %7048 = vrot.lane.b32.xlu1 %v7047_v56, %s7361_s3  ;;  %v3154_v61 = vperm.slane %v3148_v60, %v8268_v16  ;;  %v3159_v4 = vrot.slane %v3146_v27, 4  ;;  %v3161_v58 = vrot.slane %v3140_v42, 4 }
 0x2fb   : > { %v3179_v56 = vsel %vm1797_vm7, %v2351_v38, %v2332_v40  ;;  %v4264_v18 = vrot.slane %v9080_v35, 4  ;;  %v3177_v45 = vrot.slane %v3158_v11, 4  ;;  %v3190_v22 = vsel %vm1797_vm7, %v2355_v15, %v2344_v5 }
 0x2fc   : > { %v3183_v8 = vperm.slane %v3179_v56, %v8250_v30  ;;  %v1599_v0 = vpop.f32.mrf.mxu2  ;;  %v3160_v57 = vsel %vm1797_vm7, %v3159_v4, %v3140_v42  ;;  %v3162_v26 = vsel %vm1797_vm7, %v3146_v27, %v3161_v58  ;;  %v3173_v44 = vrot.slane %v3154_v61, 4 }
 0x2fd   : > { %v1648_v1 = vpop.f32.mrf.mxu3  ;;  %v3166_v20 = vperm.slane %v3160_v57, %v8268_v16  ;;  %v3170_v63 = vperm.slane %v3162_v26, %v8268_v16  ;;  %v3185_v40 = vsel %vm1797_vm7, %v3184_v25, %v2350_v17  ;;  %v3194_v38 = vperm.slane %v3190_v22, %v8250_v30  ;;  %v1503_v26 = vpop.f32.mrf.mxu0 }
 0x2fe   : > { %v3189_v59 = vperm.slane %v3185_v40, %v8250_v30  ;;  %v3195_v50 = vrot.slane %v2356_v33, 4  ;;  %v3203_v60 = vrot.slane %v3183_v8, 4  ;;  %v9109_v56 = vadd.f32 %v1648_v1, %v1599_v0 }
 0x2ff   : > { %v3171_v42 = vrot.slane %v3166_v20, 4  ;;  %v3174_v27 = vsel %vm1797_vm7, %v3166_v20, %v3173_v44  ;;  %v3175_v4 = vrot.slane %v3170_v63, 4  ;;  %v3178_v5 = vsel %vm1797_vm7, %v3170_v63, %v3177_v45  ;;  %v1552_v44 = vpop.f32.mrf.mxu1 }
 0x300   : > { %v3196_v15 = vsel %vm1797_vm7, %v3195_v50, %v2354_v3  ;;  %v3201_v58 = vrot.slane %v3189_v59, 4  ;;  %v3204_v57 = vsel %vm1797_vm7, %v3189_v59, %v3203_v60  ;;  %v3215_v17 = vrot.slane %v3194_v38, 4 }
 0x301   : > { %v3172_v25 = vsel %vm1797_vm7, %v3171_v42, %v3154_v61  ;;  %v3176_v33 = vsel %vm1797_vm7, %v3175_v4, %v3158_v11  ;;  %v3200_v0 = vperm.slane %v3196_v15, %v8250_v30  ;;  %v3212_v1 = vperm.slane %v3204_v57, %v8268_v16 }
 0x302   : > { %v3202_v22 = vsel %vm1797_vm7, %v3201_v58, %v3183_v8  ;;  %v3565_v45 = vpack.c.bf16 %v3172_v25, %v3172_v25  ;;  %v3581_v3 = vpack.c.bf16 %v3174_v27, %v3174_v27  ;;  %v3597_v20 = vpack.c.bf16 %v3176_v33, %v3176_v33 }
 0x303   : > { %v3208_v63 = vperm.slane %v3202_v22, %v8268_v16  ;;  %v3213_v40 = vrot.slane %v3200_v0, 4  ;;  %v3216_v61 = vsel %vm1797_vm7, %v3200_v0, %v3215_v17  ;;  %v3231_v59 = vrot.slane %v3212_v1, 4 }
 0x304   : > { %v3224_v11 = vperm.slane %v3216_v61, %v8268_v16  ;;  %v3613_v50 = vpack.c.bf16 %v3178_v5, %v3178_v5  ;;  %3630 = vst.msk [vmem:[%s8366_s4 + $0x20] sm:$0xf] %vm3621_vm2, %v3565_v45  ;;  %v4262_v60 = vrot.slane %v9109_v56, 4  ;;  %v4265_v8 = vsel %vm1797_vm7, %v9109_v56, %v4264_v18  ;;  %v1601_v17 = vpop.f32.mrf.mxu2 }
 0x305   : > { %v3214_v27 = vsel %vm1797_vm7, %v3213_v40, %v3194_v38  ;;  %v3227_v4 = vrot.slane %v3208_v63, 4  ;;  %3646 = vst.msk [vmem:[%s8366_s4 + $0x60] sm:$0xf] %vm3621_vm2, %v3581_v3  ;;  %v1553_v15 = vadd.f32 %v1552_v44, %v1503_v26  ;;  %v1650_v25 = vpop.f32.mrf.mxu3  ;;  %v9141_v38 = vperm.slane %v9085_v34, %v8250_v30  ;;  %v6989_v44 = vpop.permute.xlu0 %6988 }
 0x306   : > { %v3220_v58 = vperm.slane %v3214_v27, %v8268_v16  ;;  %v3229_v57 = vrot.slane %v3224_v11, 4  ;;  %v3232_v5 = vsel %vm1797_vm7, %v3224_v11, %v3231_v59  ;;  %3662 = vst.msk [vmem:[%s8366_s4 + $0xa0] sm:$0xf] %vm3621_vm2, %v3597_v20  ;;  %v4263_v18 = vsel %vm1797_vm7, %v4262_v60, %v9080_v35 }
 0x307   : > { %v3614_v26 = vpack.c.bf16 %v3232_v5, %v3232_v5  ;;  %3678 = vst.msk [vmem:[%s8366_s4 + $0xe0] sm:$0xf] %vm3621_vm2, %v3613_v50  ;;  %v7052_v20 = vpack.i.bf16 %v1553_v15, %v9080_v35  ;;  %v4320_v34 = vrot.slane %v1553_v15, 4  ;;  %v1651_v59 = vadd.f32 %v1650_v25, %v1601_v17 }
 0x308   : > { %v3225_v22 = vrot.slane %v3220_v58, 4  ;;  %v3228_v45 = vsel %vm1797_vm7, %v3220_v58, %v3227_v4  ;;  %v3230_v3 = vsel %vm1797_vm7, %v3229_v57, %v3212_v1  ;;  %v9153_v50 = vperm.slane %v4265_v8, %v8250_v30  ;;  %v1506_v58 = vpop.f32.mrf.mxu0  ;;  %v1555_v57 = vpop.f32.mrf.mxu1 }
 0x309   : > { %v3582_v40 = vpack.c.bf16 %v3228_v45, %v3228_v45  ;;  %v3598_v61 = vpack.c.bf16 %v3230_v3, %v3230_v3  ;;  %3679 = vst.msk [vmem:[%s8366_s4 + $0xe4] sm:$0xf] %vm3621_vm2, %v3614_v26  ;;  %7053 = vrot.lane.b32.xlu2 %v7052_v20, %s7361_s3  ;;  %v6991_v60 = vunpack.i.h.bf16 %v6989_v44  ;;  %v6990_v27 = vunpack.i.l.bf16 %v6989_v44 }
 0x30a   : > { %v3226_v11 = vsel %vm1797_vm7, %v3225_v22, %v3208_v63  ;;  %v4318_v35 = vrot.slane %v1651_v59, 4  ;;  %v4321_v4 = vsel %vm1797_vm7, %v1651_v59, %v4320_v34  ;;  %v7057_v5 = vpack.i.bf16 %v1651_v59, %v9109_v56 }
 0x30b   : > { %v3566_v1 = vpack.c.bf16 %v3226_v11, %v3226_v11  ;;  %3647 = vst.msk [vmem:[%s8366_s4 + $0x64] sm:$0xf] %vm3621_vm2, %v3582_v40  ;;  %v9164_v8 = vperm.slane %v4263_v18, %v8250_v30  ;;  %v2425_v17 = vrot.slane %v6991_v60, 4  ;;  %v2428_v25 = vsel %vm1797_vm7, %v6991_v60, %v9033_v7 }
 0x30c   : > { %3663 = vst.msk [vmem:[%s8366_s4 + $0xa4] sm:$0xf] %vm3621_vm2, %v3598_v61  ;;  %v9171_v26 = vsel %vm1797_vm7, %v4318_v35, %v1553_v15  ;;  %7058 = vrot.lane.b32.xlu0 %v7057_v5, %s7361_s3  ;;  %v2436_v56 = vperm.slane %v2428_v25, %v8250_v30  ;;  %v2369_v44 = vrot.slane %v6990_v27, 4  ;;  %v2372_v22 = vsel %vm1797_vm7, %v6990_v27, %v9037_v13 }
 0x30d   : > { %3631 = vst.msk [vmem:[%s8366_s4 + $0x24] sm:$0xf] %vm3621_vm2, %v3566_v1  ;;  %v9178_v45 = vadd.f32 %v1555_v57, %v1506_v58  ;;  %v2426_v7 = vsel %vm1797_vm7, %v2425_v17, %v6986_v48  ;;  %v2380_v3 = vperm.slane %v2372_v22, %v8250_v30  ;;  %v10748_v40 = vrot.slane %v8876_v55, 4 }
 0x30e   : > { %v2432_v15 = vperm.slane %v2426_v7, %v8250_v30  ;;  %v2449_v20 = vrot.slane %v2436_v56, 4  ;;  %v10749_v34 = vunpack.i.l.bf16 %v8990_v24  ;;  %v9192_v59 = vperm.slane %v4321_v4, %v8250_v30 }
 0x30f   : > { %v2452_v61 = vsel %vm1797_vm7, %v2436_v56, %v10748_v40  ;;  %v2393_v60 = vrot.slane %v2380_v3, 4  ;;  %v10750_v1 = vrot.slane %v8884_v54, 4  ;;  %v10751_v24 = vrot.slane %v8863_v31, 4 }
 0x310   : > { %v2370_v13 = vsel %vm1797_vm7, %v2369_v44, %v10749_v34  ;;  %v2460_v11 = vperm.slane %v2452_v61, %v8268_v16  ;;  %v2437_v27 = vrot.slane %v2432_v15, 4  ;;  %v2450_v58 = vsel %vm1797_vm7, %v2449_v20, %v8876_v55 }
 0x311   : > { %v2376_v48 = vperm.slane %v2370_v13, %v8250_v30  ;;  %v2440_v35 = vsel %vm1797_vm7, %v2432_v15, %v10750_v1  ;;  %v2396_v57 = vsel %vm1797_vm7, %v2380_v3, %v10751_v24  ;;  %v2456_v5 = vperm.slane %v2450_v58, %v8268_v16  ;;  %v1604_v24 = vpop.f32.mrf.mxu2 }
 0x312   : > { %v2448_v4 = vperm.slane %v2440_v35, %v8268_v16  ;;  %v2467_v17 = vrot.slane %v2460_v11, 4  ;;  %v2438_v56 = vsel %vm1797_vm7, %v2437_v27, %v8884_v54  ;;  %v10752_v44 = vrot.slane %v8869_v53, 4 }
 0x313   : > { %v2381_v25 = vrot.slane %v2376_v48, 4  ;;  %v2394_v55 = vsel %vm1797_vm7, %v2393_v60, %v8863_v31  ;;  %v2404_v7 = vperm.slane %v2396_v57, %v8268_v16  ;;  %v2444_v3 = vperm.slane %v2438_v56, %v8268_v16 }
 0x314   : > { %v2384_v22 = vsel %vm1797_vm7, %v2376_v48, %v10752_v44  ;;  %v2463_v15 = vrot.slane %v2448_v4, 4  ;;  %v2465_v20 = vrot.slane %v2456_v5, 4  ;;  %v2468_v40 = vsel %vm1797_vm7, 0.0, %v2467_v17 }
 0x315   : > { %v3298_v61 = vsel %vm1797_vm7, %v2467_v17, %v2456_v5  ;;  %v3303_v34 = vrot.slane %v2468_v40, 4  ;;  %v2382_v54 = vsel %vm1797_vm7, %v2381_v25, %v8869_v53  ;;  %v2392_v13 = vperm.slane %v2384_v22, %v8268_v16  ;;  %v1653_v17 = vpop.f32.mrf.mxu3 }
 0x316   : > { %v2461_v11 = vrot.slane %v2444_v3, 4  ;;  %v2464_v48 = vsel %vm1797_vm7, 0.0, %v2463_v15  ;;  %v2466_v31 = vsel %vm1797_vm7, 0.0, %v2465_v20  ;;  %v3287_v60 = vsel %vm1797_vm7, %v2463_v15, %v2444_v3 }
 0x317   : > { %v3291_v27 = vperm.slane %v3287_v60, %v8250_v30  ;;  %v3292_v1 = vrot.slane %v2464_v48, 4  ;;  %v3302_v35 = vperm.slane %v3298_v61, %v8250_v30  ;;  %v3304_v58 = vsel %vm1797_vm7, %v3303_v34, %v2466_v31 }
 0x318   : > { %v2462_v57 = vsel %vm1797_vm7, 0.0, %v2461_v11  ;;  %v3308_v53 = vperm.slane %v3304_v58, %v8250_v30  ;;  %v2388_v4 = vperm.slane %v2382_v54, %v8268_v16  ;;  %v2400_v5 = vperm.slane %v2394_v55, %v8268_v16 }
 0x319   : > { %v3293_v25 = vsel %vm1797_vm7, %v3292_v1, %v2462_v57  ;;  %v3311_v56 = vrot.slane %v3291_v27, 4  ;;  %v3323_v44 = vrot.slane %v3302_v35, 4  ;;  %v2407_v22 = vrot.slane %v2392_v13, 4 }
 0x31a   : > { %v3297_v3 = vperm.slane %v3293_v25, %v8250_v30  ;;  %v3321_v15 = vrot.slane %v3308_v53, 4  ;;  %v2405_v20 = vrot.slane %v2388_v4, 4  ;;  %v2409_v40 = vrot.slane %v2400_v5, 4 }
 0x31b   : > { %v3324_v61 = vsel %vm1797_vm7, %v3308_v53, %v3323_v44  ;;  %v2408_v34 = vsel %vm1797_vm7, 0.0, %v2407_v22  ;;  %v2411_v11 = vrot.slane %v2404_v7, 4  ;;  %v3233_v54 = vsel %vm1797_vm7, %v2407_v22, %v2388_v4 }
 0x31c   : > { %v3309_v48 = vrot.slane %v3297_v3, 4  ;;  %v3312_v55 = vsel %vm1797_vm7, %v3297_v3, %v3311_v56  ;;  %v3322_v31 = vsel %vm1797_vm7, %v3321_v15, %v3302_v35  ;;  %v3332_v60 = vperm.slane %v3324_v61, %v8268_v16 }
 0x31d   : > { %v3320_v13 = vperm.slane %v3312_v55, %v8268_v16  ;;  %v3328_v1 = vperm.slane %v3322_v31, %v8268_v16  ;;  %v2406_v58 = vsel %vm1797_vm7, 0.0, %v2405_v20  ;;  %v2410_v57 = vsel %vm1797_vm7, 0.0, %v2409_v40  ;;  %v1508_v55 = vpop.f32.mrf.mxu0  ;;  %v1557_v31 = vpop.f32.mrf.mxu1 }
 0x31e   : > { %v3310_v53 = vsel %vm1797_vm7, %v3309_v48, %v3291_v27  ;;  %v3337_v7 = vrot.slane %v3332_v60, 4  ;;  %v2412_v4 = vsel %vm1797_vm7, 0.0, %v2411_v11  ;;  %v3237_v25 = vperm.slane %v3233_v54, %v8250_v30 }
 0x31f   : > { %v3316_v56 = vperm.slane %v3310_v53, %v8268_v16  ;;  %v3333_v35 = vrot.slane %v3328_v1, 4  ;;  %v3339_v44 = vrot.slane %v3320_v13, 4  ;;  %v3238_v22 = vrot.slane %v2408_v34, 4  ;;  %v1606_v53 = vpop.f32.mrf.mxu2 }
 0x320   : > { %v3338_v3 = vsel %vm1797_vm7, %v3337_v7, %v3320_v13  ;;  %v3244_v15 = vsel %vm1797_vm7, %v2411_v11, %v2400_v5  ;;  %v3249_v61 = vrot.slane %v2412_v4, 4  ;;  %v3257_v20 = vrot.slane %v3237_v25, 4  ;;  %v1655_v13 = vpop.f32.mrf.mxu3 }
 0x321   : > { %v3334_v27 = vsel %vm1797_vm7, %v3333_v35, %v3316_v56  ;;  %v3335_v40 = vrot.slane %v3316_v56, 4  ;;  %v3340_v48 = vsel %vm1797_vm7, %v3332_v60, %v3339_v44  ;;  %v3600_v54 = vpack.c.bf16 %v3338_v3, %v3338_v3 }
 0x322   : > { %v3568_v34 = vpack.c.bf16 %v3334_v27, %v3334_v27  ;;  %v3616_v33 = vpack.c.bf16 %v3340_v48, %v3340_v48  ;;  %v3239_v5 = vsel %vm1797_vm7, %v3238_v22, %v2406_v58  ;;  %v3248_v11 = vperm.slane %v3244_v15, %v8250_v30 }
 0x323   : > { %v9257_v60 = vperm.slane %v9171_v26, %v8250_v30  ;;  %v3336_v4 = vsel %vm1797_vm7, %v3328_v1, %v3335_v40  ;;  %3665 = vst.msk [vmem:[%s8366_s4 + $0xac] sm:$0xf] %vm3621_vm2, %v3600_v54  ;;  %v3243_v56 = vperm.slane %v3239_v5, %v8250_v30  ;;  %v3250_v58 = vsel %vm1797_vm7, %v3249_v61, %v2410_v57 }
 0x324   : > { %v3584_v35 = vpack.c.bf16 %v3336_v4, %v3336_v4  ;;  %3633 = vst.msk [vmem:[%s8366_s4 + $0x2c] sm:$0xf] %vm3621_vm2, %v3568_v34  ;;  %v3269_v44 = vrot.slane %v3248_v11, 4  ;;  %v9266_v22 = vadd.f32 %v1653_v17, %v1604_v24  ;;  %v4376_v15 = vrot.slane %v9178_v45, 4 }
 0x325   : > { %3681 = vst.msk [vmem:[%s8366_s4 + $0xec] sm:$0xf] %vm3621_vm2, %v3616_v33  ;;  %v3254_v26 = vperm.slane %v3250_v58, %v8250_v30  ;;  %v3255_v1 = vrot.slane %v3243_v56, 4  ;;  %v3258_v40 = vsel %vm1797_vm7, %v3243_v56, %v3257_v20  ;;  %v1558_v61 = vadd.f32 %v1557_v31, %v1508_v55 }
 0x326   : > { %v9250_v18 = vpop.permute.xlu2 %6998  ;;  %3649 = vst.msk [vmem:[%s8366_s4 + $0x6c] sm:$0xf] %vm3621_vm2, %v3584_v35  ;;  %v4374_v57 = vrot.slane %v9266_v22, 4  ;;  %v3266_v17 = vperm.slane %v3258_v40, %v8268_v16  ;;  %v4377_v4 = vsel %vm1797_vm7, %v9266_v22, %v4376_v15 }
 0x327   : > { %v7001_v3 = vunpack.i.h.bf16 %v9250_v18  ;;  %v3256_v24 = vsel %vm1797_vm7, %v3255_v1, %v3237_v25  ;;  %v3267_v48 = vrot.slane %v3254_v26, 4  ;;  %v3270_v54 = vsel %vm1797_vm7, %v3254_v26, %v3269_v44  ;;  %v1511_v26 = vpop.f32.mrf.mxu0  ;;  %v1609_v33 = vpop.f32.mrf.mxu2 }
 0x328   : > { %v3262_v34 = vperm.slane %v3256_v24, %v8268_v16  ;;  %v3278_v5 = vperm.slane %v3270_v54, %v8268_v16  ;;  %v7000_v55 = vunpack.i.l.bf16 %v9250_v18  ;;  %v3285_v31 = vrot.slane %v3266_v17, 4  ;;  %v1658_v27 = vpop.f32.mrf.mxu3 }
 0x329   : > { %v2537_v20 = vrot.slane %v7001_v3, 4  ;;  %v3268_v25 = vsel %vm1797_vm7, %v3267_v48, %v3248_v11  ;;  %v4375_v44 = vsel %vm1797_vm7, %v4374_v57, %v9178_v45  ;;  %v9295_v15 = vperm.slane %v4377_v4, %v8250_v30  ;;  %v6994_v11 = vpop.permute.xlu1 %6993  ;;  %v1560_v48 = vpop.f32.mrf.mxu1 }
 0x32a   : > { %v3274_v56 = vperm.slane %v3268_v25, %v8268_v16  ;;  %v3281_v35 = vrot.slane %v3262_v34, 4  ;;  %v3283_v58 = vrot.slane %v3278_v5, 4  ;;  %v3286_v1 = vsel %vm1797_vm7, %v3278_v5, %v3285_v31 }
 0x32b   : > { %v7062_v40 = vpack.i.bf16 %v1558_v61, %v9178_v45  ;;  %v9298_v24 = vadd.f32 %v1655_v13, %v1606_v53  ;;  %v3615_v57 = vpack.c.bf16 %v3286_v1, %v3286_v1  ;;  %v2481_v5 = vrot.slane %v7000_v55, 4 }
 0x32c   : > { %v3279_v54 = vrot.slane %v3274_v56, 4  ;;  %v3282_v25 = vsel %vm1797_vm7, %v3274_v56, %v3281_v35  ;;  %v3284_v7 = vsel %vm1797_vm7, %v3283_v58, %v3266_v17  ;;  %v4432_v13 = vrot.slane %v1558_v61, 4 }
 0x32d   : > { %v3583_v4 = vpack.c.bf16 %v3282_v25, %v3282_v25  ;;  %v3599_v31 = vpack.c.bf16 %v3284_v7, %v3284_v7  ;;  %7063 = vrot.lane.b32.xlu1 %v7062_v40, %s7361_s3  ;;  %v4430_v45 = vrot.slane %v9298_v24, 4  ;;  %3680 = vst.msk [vmem:[%s8366_s4 + $0xe8] sm:$0xf] %vm3621_vm2, %v3615_v57  ;;  %v6996_v56 = vunpack.i.h.bf16 %v6994_v11 }
 0x32e   : > { %v3280_v53 = vsel %vm1797_vm7, %v3279_v54, %v3262_v34  ;;  %v6995_v35 = vunpack.i.l.bf16 %v6994_v11  ;;  %v9310_v58 = vperm.slane %v4375_v44, %v8250_v30  ;;  %v9312_v1 = vadd.f32 %v1560_v48, %v1511_v26 }
 0x32f   : > { %v3567_v17 = vpack.c.bf16 %v3280_v53, %v3280_v53  ;;  %3648 = vst.msk [vmem:[%s8366_s4 + $0x68] sm:$0xf] %vm3621_vm2, %v3583_v4  ;;  %v9314_v7 = vadd.f32 %v1658_v27, %v1609_v33  ;;  %v9321_v34 = vsel %vm1797_vm7, %v9298_v24, %v4432_v13  ;;  %v2538_v11 = vsel %vm1797_vm7, %v2537_v20, %v6996_v56 }
 0x330   : > { %3664 = vst.msk [vmem:[%s8366_s4 + $0xa8] sm:$0xf] %vm3621_vm2, %v3599_v31  ;;  %v2539_v54 = vrot.slane %v6996_v56, 4  ;;  %v9327_v44 = vsel %vm1797_vm7, %v4430_v45, %v1558_v61  ;;  %v2544_v26 = vperm.slane %v2538_v11, %v8250_v30  ;;  %v2482_v27 = vsel %vm1797_vm7, %v2481_v5, %v6995_v35 }
 0x331   : > { %3632 = vst.msk [vmem:[%s8366_s4 + $0x28] sm:$0xf] %vm3621_vm2, %v3567_v17  ;;  %v2483_v33 = vrot.slane %v6995_v35, 4  ;;  %v2488_v25 = vperm.slane %v2482_v27, %v8250_v30  ;;  %v4486_v20 = vrot.slane %v9314_v7, 4  ;;  %v10753_v45 = vrot.slane %v8926_v12, 4 }
 0x332   : > { %v2540_v48 = vsel %vm1797_vm7, %v7001_v3, %v2539_v54  ;;  %v2549_v31 = vrot.slane %v2544_v26, 4  ;;  %v10754_v3 = vrot.slane %v8917_v32, 4 }
 0x333   : > { %v2548_v4 = vperm.slane %v2540_v48, %v8250_v30  ;;  %v2484_v61 = vsel %vm1797_vm7, %v7000_v55, %v2483_v33  ;;  %v2552_v5 = vsel %vm1797_vm7, %v2544_v26, %v10753_v45  ;;  %v2493_v18 = vrot.slane %v2488_v25, 4 }
 0x334   : > { %v2492_v53 = vperm.slane %v2484_v61, %v8250_v30  ;;  %v2496_v13 = vsel %vm1797_vm7, %v2488_v25, %v10754_v3  ;;  %v2560_v56 = vperm.slane %v2552_v5, %v8268_v16  ;;  %v2550_v11 = vsel %vm1797_vm7, %v2549_v31, %v8926_v12 }
 0x335   : > { %v2561_v35 = vrot.slane %v2548_v4, 4  ;;  %v2504_v17 = vperm.slane %v2496_v13, %v8268_v16  ;;  %v10755_v55 = vrot.slane %v8922_v52, 4  ;;  %v2494_v26 = vsel %vm1797_vm7, %v2493_v18, %v8917_v32 }
 0x336   : > { %v2505_v27 = vrot.slane %v2492_v53, 4  ;;  %v10756_v33 = vrot.slane %v8911_v29, 4  ;;  %v2556_v25 = vperm.slane %v2550_v11, %v8268_v16  ;;  %v2500_v61 = vperm.slane %v2494_v26, %v8268_v16 }
 0x337   : > { %v2564_v54 = vsel %vm1797_vm7, %v2548_v4, %v10755_v55  ;;  %v2519_v5 = vrot.slane %v2504_v17, 4  ;;  %v2562_v12 = vsel %vm1797_vm7, %v2561_v35, %v8922_v52  ;;  %v2575_v17 = vrot.slane %v2560_v56, 4 }
 0x338   : > { %v2508_v48 = vsel %vm1797_vm7, %v2492_v53, %v10756_v33  ;;  %v2506_v4 = vsel %vm1797_vm7, %v2505_v27, %v8911_v29  ;;  %v2568_v32 = vperm.slane %v2562_v12, %v8268_v16  ;;  %v2572_v31 = vperm.slane %v2564_v54, %v8268_v16 }
 0x339   : > { %v2516_v45 = vperm.slane %v2508_v48, %v8268_v16  ;;  %v2573_v18 = vrot.slane %v2556_v25, 4  ;;  %v2512_v53 = vperm.slane %v2506_v4, %v8268_v16  ;;  %v2517_v3 = vrot.slane %v2500_v61, 4 }
 0x33a   : > { %v2520_v13 = vsel %vm1797_vm7, 0.0, %v2519_v5  ;;  %v2577_v26 = vrot.slane %v2568_v32, 4  ;;  %v2579_v33 = vrot.slane %v2572_v31, 4  ;;  %v3341_v27 = vsel %vm1797_vm7, %v2519_v5, %v2500_v61 }
 0x33b   : > { %v2523_v11 = vrot.slane %v2516_v45, 4  ;;  %v2574_v55 = vsel %vm1797_vm7, 0.0, %v2573_v18  ;;  %v2518_v52 = vsel %vm1797_vm7, 0.0, %v2517_v3  ;;  %v2521_v35 = vrot.slane %v2512_v53, 4 }
 0x33c   : > { %v2576_v54 = vsel %vm1797_vm7, 0.0, %v2575_v17  ;;  %v2578_v48 = vsel %vm1797_vm7, 0.0, %v2577_v26  ;;  %v2580_v12 = vsel %vm1797_vm7, 0.0, %v2579_v33  ;;  %v3345_v45 = vperm.slane %v3341_v27, %v8250_v30 }
 0x33d   : > { %v2524_v29 = vsel %vm1797_vm7, 0.0, %v2523_v11  ;;  %v2522_v4 = vsel %vm1797_vm7, 0.0, %v2521_v35  ;;  %v3346_v56 = vrot.slane %v2520_v13, 4  ;;  %v3352_v31 = vsel %vm1797_vm7, %v2523_v11, %v2512_v53 }
 0x33e   : > { %v3357_v18 = vrot.slane %v2524_v29, 4  ;;  %v3356_v3 = vperm.slane %v3352_v31, %v8250_v30  ;;  %v3365_v40 = vrot.slane %v3345_v45, 4  ;;  %v3395_v63 = vsel %vm1797_vm7, %v2575_v17, %v2556_v25 }
 0x33f   : > { %v3400_v61 = vrot.slane %v2576_v54, 4  ;;  %v3347_v5 = vsel %vm1797_vm7, %v3346_v56, %v2518_v52  ;;  %v3399_v42 = vperm.slane %v3395_v63, %v8250_v30  ;;  %v3406_v27 = vsel %vm1797_vm7, %v2579_v33, %v2568_v32 }
 0x340   : > { %v3358_v26 = vsel %vm1797_vm7, %v3357_v18, %v2522_v4  ;;  %v3351_v35 = vperm.slane %v3347_v5, %v8250_v30  ;;  %v3377_v53 = vrot.slane %v3356_v3, 4  ;;  %v3410_v25 = vperm.slane %v3406_v27, %v8250_v30 }
 0x341   : > { %v3362_v13 = vperm.slane %v3358_v26, %v8250_v30  ;;  %v3401_v11 = vsel %vm1797_vm7, %v3400_v61, %v2574_v55  ;;  %v3411_v17 = vrot.slane %v2580_v12, 4  ;;  %v3419_v54 = vrot.slane %v3399_v42, 4  ;;  %v1513_v55 = vpop.f32.mrf.mxu0  ;;  %v1562_v61 = vpop.f32.mrf.mxu1 }
 0x342   : > { %v3405_v29 = vperm.slane %v3401_v11, %v8250_v30  ;;  %v3363_v52 = vrot.slane %v3351_v35, 4  ;;  %v3366_v4 = vsel %vm1797_vm7, %v3351_v35, %v3365_v40 }
 0x343   : > { %v3375_v56 = vrot.slane %v3362_v13, 4  ;;  %v3378_v63 = vsel %vm1797_vm7, %v3362_v13, %v3377_v53  ;;  %v3374_v32 = vperm.slane %v3366_v4, %v8268_v16  ;;  %v3412_v31 = vsel %vm1797_vm7, %v3411_v17, %v2578_v48 }
 0x344   : > { %v3386_v33 = vperm.slane %v3378_v63, %v8268_v16  ;;  %v3417_v18 = vrot.slane %v3405_v29, 4  ;;  %v3364_v5 = vsel %vm1797_vm7, %v3363_v52, %v3345_v45  ;;  %v3416_v26 = vperm.slane %v3412_v31, %v8250_v30  ;;  %v1611_v63 = vpop.f32.mrf.mxu2  ;;  %v1660_v45 = vpop.f32.mrf.mxu3 }
 0x345   : > { %v3376_v12 = vsel %vm1797_vm7, %v3375_v56, %v3356_v3  ;;  %v3420_v40 = vsel %vm1797_vm7, %v3405_v29, %v3419_v54  ;;  %v3370_v27 = vperm.slane %v3364_v5, %v8268_v16  ;;  %v3393_v53 = vrot.slane %v3374_v32, 4 }
 0x346   : > { %v3382_v35 = vperm.slane %v3376_v12, %v8268_v16  ;;  %v3391_v13 = vrot.slane %v3386_v33, 4  ;;  %v3418_v11 = vsel %vm1797_vm7, %v3417_v18, %v3399_v42  ;;  %v3428_v48 = vperm.slane %v3420_v40, %v8268_v16 }
 0x347   : > { %v3429_v17 = vrot.slane %v3416_v26, 4  ;;  %v3431_v4 = vrot.slane %v3410_v25, 4  ;;  %v3389_v3 = vrot.slane %v3370_v27, 4  ;;  %v3394_v29 = vsel %vm1797_vm7, %v3386_v33, %v3393_v53 }
 0x348   : > { %v3387_v52 = vrot.slane %v3382_v35, 4  ;;  %v3392_v56 = vsel %vm1797_vm7, %v3391_v13, %v3374_v32  ;;  %v3424_v54 = vperm.slane %v3418_v11, %v8268_v16  ;;  %v3447_v42 = vrot.slane %v3428_v48, 4 }
 0x349   : > { %v3430_v31 = vsel %vm1797_vm7, %v3429_v17, %v3410_v25  ;;  %v3432_v5 = vsel %vm1797_vm7, %v3416_v26, %v3431_v4  ;;  %v3390_v12 = vsel %vm1797_vm7, %v3382_v35, %v3389_v3  ;;  %v3601_v33 = vpack.c.bf16 %v3392_v56, %v3392_v56 }
 0x34a   : > { %v3388_v18 = vsel %vm1797_vm7, %v3387_v52, %v3370_v27  ;;  %v3436_v40 = vperm.slane %v3430_v31, %v8268_v16  ;;  %v3440_v0 = vperm.slane %v3432_v5, %v8268_v16  ;;  %v3443_v57 = vrot.slane %v3424_v54, 4  ;;  %v7004_v52 = vpop.permute.xlu0 %7003  ;;  %v1565_v31 = vpop.f32.mrf.mxu1 }
 0x34b   : > { %v3569_v32 = vpack.c.bf16 %v3388_v18, %v3388_v18  ;;  %v3585_v13 = vpack.c.bf16 %v3390_v12, %v3390_v12  ;;  %v9416_v27 = vperm.slane %v9321_v34, %v8250_v30  ;;  %v4487_v17 = vsel %vm1797_vm7, %v4486_v20, %v9312_v1  ;;  %v1516_v20 = vpop.f32.mrf.mxu0  ;;  %3666 = vst.msk [vmem:[%s8366_s4 + $0xb0] sm:$0xf] %vm3621_vm2, %v3601_v33 }
 0x34c   : > { %v3441_v25 = vrot.slane %v3436_v40, 4  ;;  %v3445_v11 = vrot.slane %v3440_v0, 4  ;;  %v3448_v26 = vsel %vm1797_vm7, %v3440_v0, %v3447_v42  ;;  %v3444_v35 = vsel %vm1797_vm7, %v3436_v40, %v3443_v57  ;;  %v1614_v33 = vpop.f32.mrf.mxu2 }
 0x34d   : > { %3634 = vst.msk [vmem:[%s8366_s4 + $0x30] sm:$0xf] %vm3621_vm2, %v3569_v32  ;;  %v10757_v4 = vrot.slane %v9312_v1, 4  ;;  %v9431_v34 = vperm.slane %v9327_v44, %v8250_v30  ;;  %v3586_v56 = vpack.c.bf16 %v3444_v35, %v3444_v35  ;;  %v3617_v18 = vpack.c.bf16 %v3394_v29, %v3394_v29  ;;  %v7009_v32 = vpop.permute.xlu1 %7008 }
 0x34e   : > { %v3442_v57 = vsel %vm1797_vm7, %v3441_v25, %v3424_v54  ;;  %v3446_v3 = vsel %vm1797_vm7, %v3445_v11, %v3428_v48  ;;  %3650 = vst.msk [vmem:[%s8366_s4 + $0x70] sm:$0xf] %vm3621_vm2, %v3585_v13  ;;  %v1563_v12 = vadd.f32 %v1562_v61, %v1513_v55  ;;  %v3618_v40 = vpack.c.bf16 %v3448_v26, %v3448_v26  ;;  %v1663_v55 = vpop.f32.mrf.mxu3 }
 0x34f   : > { %v4489_v0 = vsel %vm1797_vm7, %v9314_v7, %v10757_v4  ;;  %v3570_v5 = vpack.c.bf16 %v3442_v57, %v3442_v57  ;;  %v3602_v42 = vpack.c.bf16 %v3446_v3, %v3446_v3  ;;  %3651 = vst.msk [vmem:[%s8366_s4 + $0x74] sm:$0xf] %vm3621_vm2, %v3586_v56  ;;  %v1661_v44 = vadd.f32 %v1660_v45, %v1611_v63 }
 0x350   : > { %v7006_v54 = vunpack.i.h.bf16 %v7004_v52  ;;  %v7005_v48 = vunpack.i.l.bf16 %v7004_v52  ;;  %v4468_v25 = vrot.slane %v9416_v27, 4  ;;  %v4544_v13 = vrot.slane %v1563_v12, 4  ;;  %3682 = vst.msk [vmem:[%s8366_s4 + $0xf0] sm:$0xf] %vm3621_vm2, %v3617_v18 }
 0x351   : > { %3635 = vst.msk [vmem:[%s8366_s4 + $0x34] sm:$0xf] %vm3621_vm2, %v3570_v5  ;;  %v7067_v29 = vpack.i.bf16 %v1563_v12, %v9312_v1  ;;  %v9445_v11 = vadd.f32 %v1565_v31, %v1516_v20  ;;  %v4456_v61 = vrot.slane %v9431_v34, 4  ;;  %v9451_v63 = vperm.slane %v4487_v17, %v8250_v30 }
 0x352   : > { %3667 = vst.msk [vmem:[%s8366_s4 + $0xb4] sm:$0xf] %vm3621_vm2, %v3602_v42  ;;  %v4542_v45 = vrot.slane %v1661_v44, 4  ;;  %v7082_v26 = vpack.i.bf16 %v1661_v44, %v9314_v7  ;;  %v4545_v1 = vsel %vm1797_vm7, %v1661_v44, %v4544_v13  ;;  %v2595_v35 = vrot.slane %v7005_v48, 4 }
 0x353   : > { %7068 = vrot.lane.b32.xlu0 %v7067_v29, %s7361_s3  ;;  %v7011_v4 = vunpack.i.h.bf16 %v7009_v32  ;;  %v7010_v52 = vunpack.i.l.bf16 %v7009_v32  ;;  %3683 = vst.msk [vmem:[%s8366_s4 + $0xf4] sm:$0xf] %vm3621_vm2, %v3618_v40  ;;  %v9461_v57 = vperm.slane %v4489_v0, %v8250_v30  ;;  %v2651_v3 = vrot.slane %v7006_v54, 4 }
 0x354   : > { %v4543_v17 = vsel %vm1797_vm7, %v4542_v45, %v1563_v12  ;;  %7083 = vrot.lane.b32.xlu1 %v7082_v26, %s7361_s3  ;;  %v9465_v7 = vadd.f32 %v1663_v55, %v1614_v33  ;;  %v4600_v56 = vrot.slane %v9445_v11, 4  ;;  %v9470_v42 = vperm.slane %v4545_v1, %v8250_v30 }
 0x355   : > { %v2649_v20 = vrot.slane %v7011_v4, 4  ;;  %v2593_v31 = vrot.slane %v7010_v52, 4  ;;  %v2596_v5 = vsel %vm1797_vm7, %v7010_v52, %v2595_v35  ;;  %v2652_v0 = vsel %vm1797_vm7, %v7011_v4, %v2651_v3 }
 0x356   : > { %v2604_v18 = vperm.slane %v2596_v5, %v8250_v30  ;;  %v4598_v12 = vrot.slane %v9465_v7, 4  ;;  %v9476_v40 = vperm.slane %v4543_v17, %v8250_v30  ;;  %v2660_v13 = vperm.slane %v2652_v0, %v8250_v30 }
 0x357   : > { %v2594_v44 = vsel %vm1797_vm7, %v2593_v31, %v7005_v48  ;;  %v2650_v32 = vsel %vm1797_vm7, %v2649_v20, %v7006_v54  ;;  %v10758_v55 = vrot.slane %v8929_v43, 4  ;;  %v10759_v4 = vrot.slane %v8940_v62, 4 }
 0x358   : > { %v2600_v29 = vperm.slane %v2594_v44, %v8250_v30  ;;  %v2617_v33 = vrot.slane %v2604_v18, 4  ;;  %v2656_v26 = vperm.slane %v2650_v32, %v8250_v30  ;;  %v2673_v35 = vrot.slane %v2660_v13, 4 }
 0x359   : > { %v2620_v45 = vsel %vm1797_vm7, %v2604_v18, %v10758_v55  ;;  %v2676_v48 = vsel %vm1797_vm7, %v2660_v13, %v10759_v4  ;;  %v9492_v54 = vsel %vm1797_vm7, %v4598_v12, %v9445_v11  ;;  %v10760_v17 = vrot.slane %v8933_v19, 4 }
 0x35a   : > { %v2628_v1 = vperm.slane %v2620_v45, %v8268_v16  ;;  %v2605_v52 = vrot.slane %v2600_v29, 4  ;;  %v2618_v20 = vsel %vm1797_vm7, %v2617_v33, %v8929_v43  ;;  %v2661_v31 = vrot.slane %v2656_v26, 4 }
 0x35b   : > { %v2608_v3 = vsel %vm1797_vm7, %v2600_v29, %v10760_v17  ;;  %v2624_v18 = vperm.slane %v2618_v20, %v8268_v16  ;;  %v10761_v44 = vrot.slane %v8936_v39, 4  ;;  %v2674_v43 = vsel %vm1797_vm7, %v2673_v35, %v8940_v62 }
 0x35c   : > { %v2616_v5 = vperm.slane %v2608_v3, %v8268_v16  ;;  %v2635_v0 = vrot.slane %v2628_v1, 4  ;;  %v2606_v12 = vsel %vm1797_vm7, %v2605_v52, %v8933_v19  ;;  %v2662_v13 = vsel %vm1797_vm7, %v2661_v31, %v8936_v39 }
 0x35d   : > { %v2664_v32 = vsel %vm1797_vm7, %v2656_v26, %v10761_v44  ;;  %v2612_v33 = vperm.slane %v2606_v12, %v8268_v16  ;;  %v2633_v45 = vrot.slane %v2624_v18, 4  ;;  %v2668_v4 = vperm.slane %v2662_v13, %v8268_v16 }
 0x35e   : > { %v2672_v29 = vperm.slane %v2664_v32, %v8268_v16  ;;  %v2631_v55 = vrot.slane %v2616_v5, 4  ;;  %v2636_v1 = vsel %vm1797_vm7, 0.0, %v2635_v0  ;;  %v2680_v26 = vperm.slane %v2674_v43, %v8268_v16 }
 0x35f   : > { %v2684_v19 = vperm.slane %v2676_v48, %v8268_v16  ;;  %v2629_v17 = vrot.slane %v2612_v33, 4  ;;  %v2634_v3 = vsel %vm1797_vm7, 0.0, %v2633_v45  ;;  %v2685_v35 = vrot.slane %v2668_v4, 4 }
 0x360   : > { %v2687_v52 = vrot.slane %v2672_v29, 4  ;;  %v2632_v39 = vsel %vm1797_vm7, 0.0, %v2631_v55  ;;  %v3449_v62 = vsel %vm1797_vm7, %v2631_v55, %v2612_v33  ;;  %v2689_v31 = vrot.slane %v2680_v26, 4 }
 0x361   : > { %v2691_v5 = vrot.slane %v2684_v19, 4  ;;  %v2630_v44 = vsel %vm1797_vm7, 0.0, %v2629_v17  ;;  %v3453_v32 = vperm.slane %v3449_v62, %v8250_v30  ;;  %v3454_v12 = vrot.slane %v2632_v39, 4 }
 0x362   : > { %v2688_v20 = vsel %vm1797_vm7, 0.0, %v2687_v52  ;;  %v3460_v48 = vsel %vm1797_vm7, %v2635_v0, %v2624_v18  ;;  %v2686_v13 = vsel %vm1797_vm7, 0.0, %v2685_v35  ;;  %v2690_v29 = vsel %vm1797_vm7, 0.0, %v2689_v31 }
 0x363   : > { %v2692_v43 = vsel %vm1797_vm7, 0.0, %v2691_v5  ;;  %v3464_v33 = vperm.slane %v3460_v48, %v8250_v30  ;;  %v3455_v55 = vsel %vm1797_vm7, %v3454_v12, %v2630_v44  ;;  %v3465_v45 = vrot.slane %v2636_v1, 4 }
 0x364   : > { %v3473_v53 = vrot.slane %v3453_v32, 4  ;;  %v3503_v19 = vsel %vm1797_vm7, %v2687_v52, %v2668_v4  ;;  %v3459_v17 = vperm.slane %v3455_v55, %v8250_v30  ;;  %v3508_v18 = vrot.slane %v2688_v20, 4 }
 0x365   : > { %v3485_v62 = vrot.slane %v3464_v33, 4  ;;  %v3507_v39 = vperm.slane %v3503_v19, %v8250_v30  ;;  %v3466_v0 = vsel %vm1797_vm7, %v3465_v45, %v2634_v3  ;;  %v3514_v35 = vsel %vm1797_vm7, %v2691_v5, %v2680_v26 }
 0x366   : > { %v3519_v31 = vrot.slane %v2692_v43, 4  ;;  %v9537_v44 = vsel %vm1797_vm7, %v9465_v7, %v4600_v56  ;;  %v3470_v1 = vperm.slane %v3466_v0, %v8250_v30  ;;  %v3471_v4 = vrot.slane %v3459_v17, 4 }
 0x367   : > { %v3474_v52 = vsel %vm1797_vm7, %v3459_v17, %v3473_v53  ;;  %v3509_v12 = vsel %vm1797_vm7, %v3508_v18, %v2686_v13  ;;  %v3518_v26 = vperm.slane %v3514_v35, %v8250_v30  ;;  %v3527_v18 = vrot.slane %v3507_v39, 4 }
 0x368   : > { %v3482_v20 = vperm.slane %v3474_v52, %v8268_v16  ;;  %v3513_v3 = vperm.slane %v3509_v12, %v8250_v30  ;;  %v3520_v5 = vsel %vm1797_vm7, %v3519_v31, %v2690_v29  ;;  %v3472_v48 = vsel %vm1797_vm7, %v3471_v4, %v3453_v32 }
 0x369   : > { %v3483_v43 = vrot.slane %v3470_v1, 4  ;;  %v3486_v56 = vsel %vm1797_vm7, %v3470_v1, %v3485_v62  ;;  %v3524_v55 = vperm.slane %v3520_v5, %v8250_v30  ;;  %v3478_v45 = vperm.slane %v3472_v48, %v8268_v16 }
 0x36a   : > { %v3494_v53 = vperm.slane %v3486_v56, %v8268_v16  ;;  %v3501_v13 = vrot.slane %v3482_v20, 4  ;;  %v3525_v19 = vrot.slane %v3513_v3, 4  ;;  %v3539_v35 = vrot.slane %v3518_v26, 4 }
 0x36b   : > { %v3484_v17 = vsel %vm1797_vm7, %v3483_v43, %v3464_v33  ;;  %v3537_v0 = vrot.slane %v3524_v55, 4  ;;  %v3497_v31 = vrot.slane %v3478_v45, 4  ;;  %v3528_v1 = vsel %vm1797_vm7, %v3513_v3, %v3527_v18  ;;  %v9564_v3 = vpop.permute.xlu2 %7023 }
 0x36c   : > { %v3490_v29 = vperm.slane %v3484_v17, %v8268_v16  ;;  %v3499_v32 = vrot.slane %v3494_v53, 4  ;;  %v3502_v4 = vsel %vm1797_vm7, %v3494_v53, %v3501_v13  ;;  %v3526_v62 = vsel %vm1797_vm7, %v3525_v19, %v3507_v39 }
 0x36d   : > { %v3538_v52 = vsel %vm1797_vm7, %v3537_v0, %v3518_v26  ;;  %v3540_v12 = vsel %vm1797_vm7, %v3524_v55, %v3539_v35  ;;  %v3532_v43 = vperm.slane %v3526_v62, %v8268_v16  ;;  %v3536_v56 = vperm.slane %v3528_v1, %v8268_v16 }
 0x36e   : > { %v3495_v5 = vrot.slane %v3490_v29, 4  ;;  %v3498_v33 = vsel %vm1797_vm7, %v3490_v29, %v3497_v31  ;;  %v3500_v48 = vsel %vm1797_vm7, %v3499_v32, %v3482_v20  ;;  %v3544_v53 = vperm.slane %v3538_v52, %v8268_v16  ;;  %v1518_v29 = vpop.f32.mrf.mxu0  ;;  %v1567_v31 = vpop.f32.mrf.mxu1 }
 0x36f   : > { %v3548_v39 = vperm.slane %v3540_v12, %v8268_v16  ;;  %v3587_v13 = vpack.c.bf16 %v3498_v33, %v3498_v33  ;;  %v3551_v55 = vrot.slane %v3532_v43, 4  ;;  %v3603_v19 = vpack.c.bf16 %v3500_v48, %v3500_v48  ;;  %v1665_v52 = vpop.f32.mrf.mxu3 }
 0x370   : > { %v3496_v26 = vsel %vm1797_vm7, %v3495_v5, %v3478_v45  ;;  %v3619_v17 = vpack.c.bf16 %v3502_v4, %v3502_v4  ;;  %v3549_v18 = vrot.slane %v3544_v53, 4  ;;  %v3555_v20 = vrot.slane %v3536_v56, 4  ;;  %v1616_v4 = vpop.f32.mrf.mxu2 }
 0x371   : > { %v3553_v0 = vrot.slane %v3548_v39, 4  ;;  %v3571_v35 = vpack.c.bf16 %v3496_v26, %v3496_v26  ;;  %3652 = vst.msk [vmem:[%s8366_s4 + $0x78] sm:$0xf] %vm3621_vm2, %v3587_v13  ;;  %v3552_v1 = vsel %vm1797_vm7, %v3544_v53, %v3551_v55  ;;  %v7026_v45 = vunpack.i.h.bf16 %v9564_v3  ;;  %v7014_v13 = vpop.permute.xlu0 %7013  ;;  %v7019_v53 = vpop.permute.xlu1 %7018 }
 0x372   : > { %3668 = vst.msk [vmem:[%s8366_s4 + $0xb8] sm:$0xf] %vm3621_vm2, %v3603_v19  ;;  %v3550_v12 = vsel %vm1797_vm7, %v3549_v18, %v3532_v43  ;;  %v3556_v33 = vsel %vm1797_vm7, %v3548_v39, %v3555_v20  ;;  %v3588_v48 = vpack.c.bf16 %v3552_v1, %v3552_v1  ;;  %v1568_v39 = vadd.f32 %v1567_v31, %v1518_v29 }
 0x373   : > { %v3554_v5 = vsel %vm1797_vm7, %v3553_v0, %v3536_v56  ;;  %3636 = vst.msk [vmem:[%s8366_s4 + $0x38] sm:$0xf] %vm3621_vm2, %v3571_v35  ;;  %v3572_v55 = vpack.c.bf16 %v3550_v12, %v3550_v12  ;;  %v3620_v62 = vpack.c.bf16 %v3556_v33, %v3556_v33  ;;  %v7025_v56 = vunpack.i.l.bf16 %v9564_v3 }
 0x374   : > { %v3604_v19 = vpack.c.bf16 %v3554_v5, %v3554_v5  ;;  %3684 = vst.msk [vmem:[%s8366_s4 + $0xf8] sm:$0xf] %vm3621_vm2, %v3619_v17  ;;  %v1666_v18 = vadd.f32 %v1665_v52, %v1616_v4  ;;  %v7016_v0 = vunpack.i.h.bf16 %v7014_v13  ;;  %v7015_v20 = vunpack.i.l.bf16 %v7014_v13 }
 0x375   : > { %3653 = vst.msk [vmem:[%s8366_s4 + $0x7c] sm:$0xf] %vm3621_vm2, %v3588_v48  ;;  %v7021_v35 = vunpack.i.h.bf16 %v7019_v53  ;;  %v7020_v1 = vunpack.i.l.bf16 %v7019_v53  ;;  %v9593_v17 = vperm.slane %v9492_v54, %v8250_v30  ;;  %v4656_v12 = vrot.slane %v1568_v39, 4 }
 0x376   : > { %3637 = vst.msk [vmem:[%s8366_s4 + $0x3c] sm:$0xf] %vm3621_vm2, %v3572_v55  ;;  %v7072_v5 = vpack.i.bf16 %v1568_v39, %v9445_v11  ;;  %v4654_v33 = vrot.slane %v1666_v18, 4  ;;  %v9600_v29 = vperm.slane %v9537_v44, %v8250_v30  ;;  %v3828_v31 = vrot.slane %v7015_v20, 4 }
 0x377   : > { %3669 = vst.msk [vmem:[%s8366_s4 + $0xbc] sm:$0xf] %vm3621_vm2, %v3604_v19  ;;  %v7087_v4 = vpack.i.bf16 %v1666_v18, %v9465_v7  ;;  %v3882_v52 = vrot.slane %v7021_v35, 4  ;;  %v9606_v54 = vsel %vm1797_vm7, %v1666_v18, %v4656_v12  ;;  %v3884_v13 = vrot.slane %v7016_v0, 4 }
 0x378   : > { %3685 = vst.msk [vmem:[%s8366_s4 + $0xfc] sm:$0xf] %vm3621_vm2, %v3620_v62  ;;  %7073 = vrot.lane.b32.xlu2 %v7072_v5, %s7361_s3  ;;  %v4655_v48 = vsel %vm1797_vm7, %v4654_v33, %v1568_v39  ;;  %v3826_v11 = vrot.slane %v7020_v1, 4  ;;  %v9610_v62 = vrot.slane %v7026_v45, 4  ;;  %v9614_v44 = vrot.slane %v7025_v56, 4 }
 0x379   : > { %7088 = vrot.lane.b32.xlu0 %v7087_v4, %s7361_s3  ;;  %v3829_v7 = vsel %vm1797_vm7, %v7020_v1, %v3828_v31  ;;  %v3883_v53 = vsel %vm1797_vm7, %v3882_v52, %v7016_v0  ;;  %v3885_v39 = vsel %vm1797_vm7, %v7021_v35, %v3884_v13  ;;  %v9624_v12 = vperm.slane %v4655_v48, %v8250_v30 }
 0x37a   : > { %v3827_v55 = vsel %vm1797_vm7, %v3826_v11, %v7015_v20  ;;  %v3837_v19 = vperm.slane %v3829_v7, %v8250_v30  ;;  %v3889_v18 = vperm.slane %v3883_v53, %v8250_v30  ;;  %v3893_v33 = vperm.slane %v3885_v39, %v8250_v30 }
 0x37b   : > { %v3833_v5 = vperm.slane %v3827_v55, %v8250_v30  ;;  %v7077_v1 = vpack.i.bf16 %v9298_v24, %v9266_v22  ;;  %v10762_v0 = vrot.slane %v8959_v51, 4  ;;  %v10763_v35 = vrot.slane %v8964_v47, 4 }
 0x37c   : > { %v3850_v31 = vrot.slane %v3837_v19, 4  ;;  %v3894_v4 = vrot.slane %v3889_v18, 4  ;;  %v10764_v48 = vrot.slane %v8946_v49, 4 }
 0x37d   : > { %v3853_v20 = vsel %vm1797_vm7, %v3837_v19, %v10762_v0  ;;  %v3897_v52 = vsel %vm1797_vm7, %v3889_v18, %v10763_v35  ;;  %v3838_v13 = vrot.slane %v3833_v5, 4  ;;  %v3906_v19 = vrot.slane %v3893_v33, 4 }
 0x37e   : > { %v3841_v11 = vsel %vm1797_vm7, %v3833_v5, %v10764_v48  ;;  %v3861_v7 = vperm.slane %v3853_v20, %v8268_v16  ;;  %v3905_v53 = vperm.slane %v3897_v52, %v8268_v16  ;;  %v3851_v24 = vsel %vm1797_vm7, %v3850_v31, %v8959_v51 }
 0x37f   : > { %v3849_v22 = vperm.slane %v3841_v11, %v8268_v16  ;;  %v3895_v55 = vsel %vm1797_vm7, %v3894_v4, %v8964_v47  ;;  %v3839_v39 = vsel %vm1797_vm7, %v3838_v13, %v8946_v49  ;;  %v3857_v18 = vperm.slane %v3851_v24, %v8268_v16 }
 0x380   : > { %v3868_v0 = vrot.slane %v3861_v7, 4  ;;  %v3901_v5 = vperm.slane %v3895_v55, %v8268_v16  ;;  %v3845_v20 = vperm.slane %v3839_v39, %v8268_v16  ;;  %v3907_v52 = vsel %vm1797_vm7, %v3906_v19, %v8967_v2  ;;  %7078 = vrot.lane.b32.xlu2 %v7077_v1, %s7361_s3 }
 0x381   : > { %v3864_v35 = vrot.slane %v3849_v22, 4  ;;  %v10765_v51 = vrot.slane %v8967_v2, 4  ;;  %v3866_v47 = vrot.slane %v3857_v18, 4  ;;  %v3913_v4 = vperm.slane %v3907_v52, %v8268_v16 }
 0x382   : > { %v3869_v49 = vsel %vm1797_vm7, 0.0, %v3868_v0  ;;  %v3862_v48 = vrot.slane %v3845_v20, 4  ;;  %v3918_v7 = vrot.slane %v3901_v5, 4  ;;  %v3920_v22 = vrot.slane %v3905_v53, 4 }
 0x383   : > { %v3909_v31 = vsel %vm1797_vm7, %v3893_v33, %v10765_v51  ;;  %v3865_v11 = vsel %vm1797_vm7, 0.0, %v3864_v35  ;;  %v3867_v24 = vsel %vm1797_vm7, 0.0, %v3866_v47  ;;  %v3922_v55 = vrot.slane %v3913_v4, 4 }
 0x384   : > { %v3917_v13 = vperm.slane %v3909_v31, %v8268_v16  ;;  %v4710_v33 = vsel %vm1797_vm7, %v3864_v35, %v3845_v20  ;;  %v3863_v1 = vsel %vm1797_vm7, 0.0, %v3862_v48  ;;  %v3919_v19 = vsel %vm1797_vm7, 0.0, %v3918_v7 }
 0x385   : > { %v3921_v39 = vsel %vm1797_vm7, 0.0, %v3920_v22  ;;  %v4714_v52 = vperm.slane %v4710_v33, %v8250_v30  ;;  %v3923_v51 = vsel %vm1797_vm7, 0.0, %v3922_v55  ;;  %v4715_v26 = vrot.slane %v3865_v11, 4 }
 0x386   : > { %v3924_v2 = vrot.slane %v3917_v13, 4  ;;  %v4721_v53 = vsel %vm1797_vm7, %v3868_v0, %v3857_v18  ;;  %v4726_v13 = vrot.slane %v3869_v49, 4  ;;  %v4764_v20 = vsel %vm1797_vm7, %v3920_v22, %v3901_v5 }
 0x387   : > { %v4725_v47 = vperm.slane %v4721_v53, %v8250_v30  ;;  %v4734_v43 = vrot.slane %v4714_v52, 4  ;;  %v4716_v35 = vsel %vm1797_vm7, %v4715_v26, %v3863_v1  ;;  %v4768_v48 = vperm.slane %v4764_v20, %v8250_v30 }
 0x388   : > { %v3925_v31 = vsel %vm1797_vm7, 0.0, %v3924_v2  ;;  %v4769_v7 = vrot.slane %v3921_v39, 4  ;;  %v4775_v33 = vsel %vm1797_vm7, %v3924_v2, %v3913_v4  ;;  %v4720_v55 = vperm.slane %v4716_v35, %v8250_v30 }
 0x389   : > { %v4727_v32 = vsel %vm1797_vm7, %v4726_v13, %v3867_v24  ;;  %v4746_v11 = vrot.slane %v4725_v47, 4  ;;  %v4779_v18 = vperm.slane %v4775_v33, %v8250_v30  ;;  %v4780_v53 = vrot.slane %v3925_v31, 4 }
 0x38a   : > { %v4731_v0 = vperm.slane %v4727_v32, %v8250_v30  ;;  %v4770_v49 = vsel %vm1797_vm7, %v4769_v7, %v3919_v19  ;;  %v4788_v5 = vrot.slane %v4768_v48, 4  ;;  %v4732_v22 = vrot.slane %v4720_v55, 4 }
 0x38b   : > { %v4735_v26 = vsel %vm1797_vm7, %v4720_v55, %v4734_v43  ;;  %v4774_v1 = vperm.slane %v4770_v49, %v8250_v30  ;;  %v4800_v39 = vrot.slane %v4779_v18, 4  ;;  %v4781_v13 = vsel %vm1797_vm7, %v4780_v53, %v3923_v51 }
 0x38c   : > { %v4743_v4 = vperm.slane %v4735_v26, %v8268_v16  ;;  %v4744_v2 = vrot.slane %v4731_v0, 4  ;;  %v4747_v24 = vsel %vm1797_vm7, %v4731_v0, %v4746_v11  ;;  %v4733_v20 = vsel %vm1797_vm7, %v4732_v22, %v4714_v52 }
 0x38d   : > { %v4755_v32 = vperm.slane %v4747_v24, %v8268_v16  ;;  %v4785_v19 = vperm.slane %v4781_v13, %v8250_v30  ;;  %v4786_v31 = vrot.slane %v4774_v1, 4  ;;  %v4739_v35 = vperm.slane %v4733_v20, %v8268_v16  ;;  %v9701_v20 = vpop.permute.xlu2 %7038 }
 0x38e   : > { %v4745_v43 = vsel %vm1797_vm7, %v4744_v2, %v4725_v47  ;;  %v4762_v7 = vrot.slane %v4743_v4, 4  ;;  %v4789_v33 = vsel %vm1797_vm7, %v4774_v1, %v4788_v5 }
 0x38f   : > { %v4751_v55 = vperm.slane %v4745_v43, %v8268_v16  ;;  %v4760_v49 = vrot.slane %v4755_v32, 4  ;;  %v4787_v11 = vsel %vm1797_vm7, %v4786_v31, %v4768_v48  ;;  %v4797_v51 = vperm.slane %v4789_v33, %v8268_v16 }
 0x390   : > { %v4758_v52 = vrot.slane %v4739_v35, 4  ;;  %v4763_v0 = vsel %vm1797_vm7, %v4755_v32, %v4762_v7  ;;  %v4793_v53 = vperm.slane %v4787_v11, %v8268_v16  ;;  %v4798_v22 = vrot.slane %v4785_v19, 4 }
 0x391   : > { %v4756_v26 = vrot.slane %v4751_v55, 4  ;;  %v4761_v24 = vsel %vm1797_vm7, %v4760_v49, %v4743_v4  ;;  %v4801_v47 = vsel %vm1797_vm7, %v4785_v19, %v4800_v39  ;;  %v4816_v2 = vrot.slane %v4797_v51, 4  ;;  %v7029_v4 = vpop.permute.xlu0 %7028 }
 0x392   : > { %v4759_v5 = vsel %vm1797_vm7, %v4751_v55, %v4758_v52  ;;  %v4799_v1 = vsel %vm1797_vm7, %v4798_v22, %v4779_v18  ;;  %v4809_v48 = vperm.slane %v4801_v47, %v8268_v16  ;;  %v4812_v13 = vrot.slane %v4793_v53, 4 }
 0x393   : > { %v4757_v32 = vsel %vm1797_vm7, %v4756_v26, %v4739_v35  ;;  %v4805_v31 = vperm.slane %v4799_v1, %v8268_v16  ;;  %v5590_v43 = vpack.c.bf16 %v4759_v5, %v4759_v5  ;;  %v5606_v7 = vpack.c.bf16 %v4761_v24, %v4761_v24  ;;  %v9724_v5 = vpop.permute.xlu1 %7033 }
 0x394   : > { %v9707_v39 = vperm.slane %v9606_v54, %v8250_v30  ;;  %v4814_v19 = vrot.slane %v4809_v48, 4  ;;  %v4817_v18 = vsel %vm1797_vm7, %v4809_v48, %v4816_v2  ;;  %v5574_v33 = vpack.c.bf16 %v4757_v32, %v4757_v32 }
 0x395   : > { %v4810_v55 = vrot.slane %v4805_v31, 4  ;;  %v4813_v49 = vsel %vm1797_vm7, %v4805_v31, %v4812_v13  ;;  %v5622_v11 = vpack.c.bf16 %v4763_v0, %v4763_v0  ;;  %5654 = vst.msk [vmem:[%s9712_s6 + $0x40] sm:$0xf] %vm3621_vm2, %v5590_v43  ;;  %v7041_v35 = vunpack.i.h.bf16 %v9701_v20 }
 0x396   : > { %v4815_v54 = vsel %vm1797_vm7, %v4814_v19, %v4797_v51  ;;  %v5591_v52 = vpack.c.bf16 %v4813_v49, %v4813_v49  ;;  %5638 = vst.msk [vmem:[%s9712_s6] sm:$0xf] %vm3621_vm2, %v5574_v33  ;;  %v7040_v22 = vunpack.i.l.bf16 %v9701_v20  ;;  %v7031_v26 = vunpack.i.h.bf16 %v7029_v4 }
 0x397   : > { %v4811_v0 = vsel %vm1797_vm7, %v4810_v55, %v4793_v53  ;;  %v5607_v24 = vpack.c.bf16 %v4815_v54, %v4815_v54  ;;  %v5623_v47 = vpack.c.bf16 %v4817_v18, %v4817_v18  ;;  %5670 = vst.msk [vmem:[%s9712_s6 + $0x80] sm:$0xf] %vm3621_vm2, %v5606_v7  ;;  %v7030_v2 = vunpack.i.l.bf16 %v7029_v4 }
 0x398   : > { %v5575_v1 = vpack.c.bf16 %v4811_v0, %v4811_v0  ;;  %5655 = vst.msk [vmem:[%s9712_s6 + $0x44] sm:$0xf] %vm3621_vm2, %v5591_v52  ;;  %v9730_v51 = vrot.slane %v7041_v35, 4  ;;  %v3994_v48 = vrot.slane %v7031_v26, 4  ;;  %v3997_v53 = vsel %vm1797_vm7, %v7031_v26, %v9610_v62 }
 0x399   : > { %5671 = vst.msk [vmem:[%s9712_s6 + $0x84] sm:$0xf] %vm3621_vm2, %v5607_v24  ;;  %v9738_v13 = vrot.slane %v7040_v22, 4  ;;  %v4005_v32 = vperm.slane %v3997_v53, %v8250_v30  ;;  %v3938_v31 = vrot.slane %v7030_v2, 4  ;;  %v3941_v43 = vsel %vm1797_vm7, %v7030_v2, %v9614_v44 }
 0x39a   : > { %5639 = vst.msk [vmem:[%s9712_s6 + $0x4] sm:$0xf] %vm3621_vm2, %v5575_v1  ;;  %v3995_v7 = vsel %vm1797_vm7, %v3994_v48, %v7026_v45  ;;  %v3949_v62 = vperm.slane %v3941_v43, %v8250_v30  ;;  %v7036_v4 = vunpack.i.h.bf16 %v9724_v5  ;;  %v7035_v19 = vunpack.i.l.bf16 %v9724_v5 }
 0x39b   : > { %5686 = vst.msk [vmem:[%s9712_s6 + $0xc0] sm:$0xf] %vm3621_vm2, %v5622_v11  ;;  %v4001_v18 = vperm.slane %v3995_v7, %v8250_v30  ;;  %v4018_v33 = vrot.slane %v4005_v32, 4  ;;  %v10766_v55 = vrot.slane %v8976_v6, 4  ;;  %v3939_v49 = vsel %vm1797_vm7, %v3938_v31, %v7025_v56 }
 0x39c   : > { %5687 = vst.msk [vmem:[%s9712_s6 + $0xc4] sm:$0xf] %vm3621_vm2, %v5623_v47  ;;  %v3945_v54 = vperm.slane %v3939_v49, %v8250_v30  ;;  %v3962_v52 = vrot.slane %v3949_v62, 4  ;;  %v10767_v11 = vrot.slane %v8970_v46, 4  ;;  %v10768_v24 = vrot.slane %v8979_v9, 4 }
 0x39d   : > { %v4021_v44 = vsel %vm1797_vm7, %v4005_v32, %v10766_v55  ;;  %v4006_v0 = vrot.slane %v4001_v18, 4  ;;  %v4019_v3 = vsel %vm1797_vm7, %v4018_v33, %v8976_v6  ;;  %v10769_v31 = vrot.slane %v8973_v28, 4 }
 0x39e   : > { %v4029_v45 = vperm.slane %v4021_v44, %v8268_v16  ;;  %v3965_v26 = vsel %vm1797_vm7, %v3949_v62, %v10767_v11  ;;  %v4009_v2 = vsel %vm1797_vm7, %v4001_v18, %v10768_v24  ;;  %v4025_v1 = vperm.slane %v4019_v3, %v8268_v16 }
 0x39f   : > { %v3973_v56 = vperm.slane %v3965_v26, %v8268_v16  ;;  %v4017_v47 = vperm.slane %v4009_v2, %v8268_v16  ;;  %v3950_v53 = vrot.slane %v3945_v54, 4  ;;  %v4007_v32 = vsel %vm1797_vm7, %v4006_v0, %v8979_v9 }
 0x3a0   : > { %v4036_v48 = vrot.slane %v4029_v45, 4  ;;  %v3953_v43 = vsel %vm1797_vm7, %v3945_v54, %v10769_v31  ;;  %v3963_v7 = vsel %vm1797_vm7, %v3962_v52, %v8970_v46  ;;  %v4013_v6 = vperm.slane %v4007_v32, %v8268_v16 }
 0x3a1   : > { %v3980_v62 = vrot.slane %v3973_v56, 4  ;;  %v4032_v18 = vrot.slane %v4017_v47, 4  ;;  %v4034_v33 = vrot.slane %v4025_v1, 4  ;;  %v3951_v9 = vsel %vm1797_vm7, %v3950_v53, %v8973_v28 }
 0x3a2   : > { %v4037_v55 = vsel %vm1797_vm7, 0.0, %v4036_v48  ;;  %v4883_v44 = vsel %vm1797_vm7, %v4036_v48, %v4025_v1  ;;  %v3961_v45 = vperm.slane %v3953_v43, %v8268_v16  ;;  %v4030_v11 = vrot.slane %v4013_v6, 4 }
 0x3a3   : > { %v4888_v49 = vrot.slane %v4037_v55, 4  ;;  %v4033_v54 = vsel %vm1797_vm7, 0.0, %v4032_v18  ;;  %v4035_v46 = vsel %vm1797_vm7, 0.0, %v4034_v33  ;;  %v4872_v52 = vsel %vm1797_vm7, %v4032_v18, %v4013_v6 }
 0x3a4   : > { %v4876_v26 = vperm.slane %v4872_v52, %v8250_v30  ;;  %v4877_v0 = vrot.slane %v4033_v54, 4  ;;  %v4887_v24 = vperm.slane %v4883_v44, %v8250_v30  ;;  %v4031_v3 = vsel %vm1797_vm7, 0.0, %v4030_v11 }
 0x3a5   : > { %v4889_v2 = vsel %vm1797_vm7, %v4888_v49, %v4035_v46  ;;  %v3957_v56 = vperm.slane %v3951_v9, %v8268_v16  ;;  %v3969_v47 = vperm.slane %v3963_v7, %v8268_v16  ;;  %v3976_v32 = vrot.slane %v3961_v45, 4 }
 0x3a6   : > { %v4893_v28 = vperm.slane %v4889_v2, %v8250_v30  ;;  %v4878_v1 = vsel %vm1797_vm7, %v4877_v0, %v4031_v3  ;;  %v4896_v48 = vrot.slane %v4876_v26, 4  ;;  %v4908_v53 = vrot.slane %v4887_v24, 4 }
 0x3a7   : > { %v4882_v31 = vperm.slane %v4878_v1, %v8250_v30  ;;  %v3974_v6 = vrot.slane %v3957_v56, 4  ;;  %v3978_v18 = vrot.slane %v3969_v47, 4  ;;  %v3977_v55 = vsel %vm1797_vm7, 0.0, %v3976_v32 }
 0x3a8   : > { %v4906_v43 = vrot.slane %v4893_v28, 4  ;;  %v4909_v33 = vsel %vm1797_vm7, %v4893_v28, %v4908_v53  ;;  %v3981_v44 = vsel %vm1797_vm7, 0.0, %v3980_v62  ;;  %v4818_v49 = vsel %vm1797_vm7, %v3976_v32, %v3957_v56 }
 0x3a9   : > { %v4894_v9 = vrot.slane %v4882_v31, 4  ;;  %v4897_v7 = vsel %vm1797_vm7, %v4882_v31, %v4896_v48  ;;  %v4917_v45 = vperm.slane %v4909_v33, %v8268_v16  ;;  %v3975_v52 = vsel %vm1797_vm7, 0.0, %v3974_v6 }
 0x3aa   : > { %v4907_v11 = vsel %vm1797_vm7, %v4906_v43, %v4887_v24  ;;  %v4905_v54 = vperm.slane %v4897_v7, %v8268_v16  ;;  %v3979_v0 = vsel %vm1797_vm7, 0.0, %v3978_v18  ;;  %v4822_v28 = vperm.slane %v4818_v49, %v8250_v30 }
 0x3ab   : > { %v4913_v46 = vperm.slane %v4907_v11, %v8268_v16  ;;  %v4895_v2 = vsel %vm1797_vm7, %v4894_v9, %v4876_v26  ;;  %v4922_v3 = vrot.slane %v4917_v45, 4  ;;  %v4823_v56 = vrot.slane %v3977_v55, 4 }
 0x3ac   : > { %v4901_v1 = vperm.slane %v4895_v2, %v8268_v16  ;;  %v4924_v24 = vrot.slane %v4905_v54, 4  ;;  %v4829_v53 = vsel %vm1797_vm7, %v3980_v62, %v3969_v47  ;;  %v4834_v6 = vrot.slane %v3981_v44, 4 }
 0x3ad   : > { %v4918_v48 = vrot.slane %v4913_v46, 4  ;;  %v4923_v32 = vsel %vm1797_vm7, %v4922_v3, %v4905_v54  ;;  %v4824_v31 = vsel %vm1797_vm7, %v4823_v56, %v3975_v52  ;;  %v4833_v43 = vperm.slane %v4829_v53, %v8250_v30 }
 0x3ae   : > { %v4920_v18 = vrot.slane %v4901_v1, 4  ;;  %v4925_v33 = vsel %vm1797_vm7, %v4917_v45, %v4924_v24  ;;  %v5609_v55 = vpack.c.bf16 %v4923_v32, %v4923_v32  ;;  %v4828_v7 = vperm.slane %v4824_v31, %v8250_v30 }
 0x3af   : > { %v4919_v26 = vsel %vm1797_vm7, %v4918_v48, %v4901_v1  ;;  %v5625_v9 = vpack.c.bf16 %v4925_v33, %v4925_v33  ;;  %v4835_v62 = vsel %vm1797_vm7, %v4834_v6, %v3979_v0  ;;  %v4842_v11 = vrot.slane %v4822_v28, 4 }
 0x3b0   : > { %v5577_v49 = vpack.c.bf16 %v4919_v26, %v4919_v26  ;;  %v4921_v47 = vsel %vm1797_vm7, %v4913_v46, %v4920_v18  ;;  %5673 = vst.msk [vmem:[%s9712_s6 + $0x8c] sm:$0xf] %vm3621_vm2, %v5609_v55  ;;  %v4839_v44 = vperm.slane %v4835_v62, %v8250_v30  ;;  %v4854_v54 = vrot.slane %v4833_v43, 4 }
 0x3b1   : > { %v5593_v52 = vpack.c.bf16 %v4921_v47, %v4921_v47  ;;  %v4840_v45 = vrot.slane %v4828_v7, 4  ;;  %v4107_v2 = vsel %vm1797_vm7, %v9730_v51, %v7036_v4  ;;  %v4108_v0 = vrot.slane %v7036_v4, 4  ;;  %5689 = vst.msk [vmem:[%s9712_s6 + $0xcc] sm:$0xf] %vm3621_vm2, %v5625_v9 }
 0x3b2   : > { %5641 = vst.msk [vmem:[%s9712_s6 + $0xc] sm:$0xf] %vm3621_vm2, %v5577_v49  ;;  %v4843_v46 = vsel %vm1797_vm7, %v4828_v7, %v4842_v11  ;;  %v4852_v3 = vrot.slane %v4839_v44, 4  ;;  %v4855_v56 = vsel %vm1797_vm7, %v4839_v44, %v4854_v54  ;;  %v4113_v1 = vperm.slane %v4107_v2, %v8250_v30 }
 0x3b3   : > { %5657 = vst.msk [vmem:[%s9712_s6 + $0x4c] sm:$0xf] %vm3621_vm2, %v5593_v52  ;;  %v4841_v48 = vsel %vm1797_vm7, %v4840_v45, %v4822_v28  ;;  %v4851_v24 = vperm.slane %v4843_v46, %v8268_v16  ;;  %v4863_v51 = vperm.slane %v4855_v56, %v8268_v16  ;;  %v4109_v4 = vsel %vm1797_vm7, %v7041_v35, %v4108_v0 }
 0x3b4   : > { %v4847_v53 = vperm.slane %v4841_v48, %v8268_v16  ;;  %v4853_v32 = vsel %vm1797_vm7, %v4852_v3, %v4833_v43  ;;  %v4117_v31 = vperm.slane %v4109_v4, %v8250_v30  ;;  %v4118_v6 = vrot.slane %v4113_v1, 4 }
 0x3b5   : > { %v4859_v26 = vperm.slane %v4853_v32, %v8268_v16  ;;  %v4868_v18 = vrot.slane %v4863_v51, 4  ;;  %v4870_v33 = vrot.slane %v4851_v24, 4  ;;  %v4051_v28 = vsel %vm1797_vm7, %v9738_v13, %v7035_v19 }
 0x3b6   : > { %v4866_v55 = vrot.slane %v4847_v53, 4  ;;  %v4130_v49 = vrot.slane %v4117_v31, 4  ;;  %v4052_v35 = vrot.slane %v7035_v19, 4  ;;  %v4057_v43 = vperm.slane %v4051_v28, %v8250_v30 }
 0x3b7   : > { %v4864_v9 = vrot.slane %v4859_v26, 4  ;;  %v4869_v7 = vsel %vm1797_vm7, %v4868_v18, %v4851_v24  ;;  %v4871_v62 = vsel %vm1797_vm7, %v4863_v51, %v4870_v33  ;;  %v4119_v47 = vsel %vm1797_vm7, %v4118_v6, %v9044_v21 }
 0x3b8   : > { %v4867_v44 = vsel %vm1797_vm7, %v4859_v26, %v4866_v55  ;;  %v5608_v13 = vpack.c.bf16 %v4869_v7, %v4869_v7  ;;  %v5624_v11 = vpack.c.bf16 %v4871_v62, %v4871_v62  ;;  %v4053_v5 = vsel %vm1797_vm7, %v7040_v22, %v4052_v35 }
 0x3b9   : > { %v4865_v19 = vsel %vm1797_vm7, %v4864_v9, %v4847_v53  ;;  %v5592_v54 = vpack.c.bf16 %v4867_v44, %v4867_v44  ;;  %v4061_v52 = vperm.slane %v4053_v5, %v8250_v30  ;;  %v4062_v45 = vrot.slane %v4057_v43, 4 }
 0x3ba   : > { %v5576_v2 = vpack.c.bf16 %v4865_v19, %v4865_v19  ;;  %5672 = vst.msk [vmem:[%s9712_s6 + $0x88] sm:$0xf] %vm3621_vm2, %v5608_v13  ;;  %v10770_v0 = vrot.slane %v9003_v37, 4  ;;  %v10771_v3 = vrot.slane %v9044_v21, 4  ;;  %v4125_v22 = vperm.slane %v4119_v47, %v8268_v16 }
 0x3bb   : > { %5656 = vst.msk [vmem:[%s9712_s6 + $0x48] sm:$0xf] %vm3621_vm2, %v5592_v54  ;;  %v4063_v56 = vsel %vm1797_vm7, %v4062_v45, %v9003_v37  ;;  %v4074_v24 = vrot.slane %v4061_v52, 4  ;;  %v10772_v51 = vrot.slane %v8998_v14, 4  ;;  %v4131_v32 = vsel %vm1797_vm7, %v4130_v49, %v9019_v23 }
 0x3bc   : > { %v4065_v46 = vsel %vm1797_vm7, %v4057_v43, %v10770_v0  ;;  %v4121_v20 = vsel %vm1797_vm7, %v4113_v1, %v10771_v3  ;;  %5640 = vst.msk [vmem:[%s9712_s6 + $0x8] sm:$0xf] %vm3621_vm2, %v5576_v2  ;;  %v4069_v21 = vperm.slane %v4063_v56, %v8268_v16  ;;  %v10773_v26 = vrot.slane %v9019_v23, 4 }
 0x3bd   : > { %v4073_v48 = vperm.slane %v4065_v46, %v8268_v16  ;;  %v4077_v4 = vsel %vm1797_vm7, %v4061_v52, %v10772_v51  ;;  %v4129_v53 = vperm.slane %v4121_v20, %v8268_v16  ;;  %5688 = vst.msk [vmem:[%s9712_s6 + $0xc8] sm:$0xf] %vm3621_vm2, %v5624_v11  ;;  %v4075_v37 = vsel %vm1797_vm7, %v4074_v24, %v8998_v14 }
 0x3be   : > { %v4085_v1 = vperm.slane %v4077_v4, %v8268_v16  ;;  %v4133_v18 = vsel %vm1797_vm7, %v4117_v31, %v10773_v26  ;;  %v4137_v33 = vperm.slane %v4131_v32, %v8268_v16  ;;  %v4081_v28 = vperm.slane %v4075_v37, %v8268_v16 }
 0x3bf   : > { %v4088_v6 = vrot.slane %v4073_v48, 4  ;;  %v4086_v55 = vrot.slane %v4069_v21, 4  ;;  %v4141_v43 = vperm.slane %v4133_v18, %v8268_v16  ;;  %v4142_v9 = vrot.slane %v4125_v22, 4 }
 0x3c0   : > { %v4092_v35 = vrot.slane %v4085_v1, 4  ;;  %v4144_v7 = vrot.slane %v4129_v53, 4  ;;  %v4146_v62 = vrot.slane %v4137_v33, 4  ;;  %v4090_v47 = vrot.slane %v4081_v28, 4 }
 0x3c1   : > { %v4089_v49 = vsel %vm1797_vm7, 0.0, %v4088_v6  ;;  %v4087_v14 = vsel %vm1797_vm7, 0.0, %v4086_v55  ;;  %v4148_v44 = vrot.slane %v4141_v43, 4  ;;  %v4143_v31 = vsel %vm1797_vm7, 0.0, %v4142_v9 }
 0x3c2   : > { %v4093_v23 = vsel %vm1797_vm7, 0.0, %v4092_v35  ;;  %v4145_v13 = vsel %vm1797_vm7, 0.0, %v4144_v7  ;;  %v4147_v11 = vsel %vm1797_vm7, 0.0, %v4146_v62  ;;  %v4926_v5 = vsel %vm1797_vm7, %v4088_v6, %v4069_v21 }
 0x3c3   : > { %v4091_v19 = vsel %vm1797_vm7, 0.0, %v4090_v47  ;;  %v4149_v54 = vsel %vm1797_vm7, 0.0, %v4148_v44  ;;  %v4930_v52 = vperm.slane %v4926_v5, %v8250_v30  ;;  %v4931_v45 = vrot.slane %v4089_v49, 4 }
 0x3c4   : > { %v4937_v2 = vsel %vm1797_vm7, %v4092_v35, %v4081_v28  ;;  %v4942_v0 = vrot.slane %v4093_v23, 4  ;;  %v4980_v46 = vsel %vm1797_vm7, %v4144_v7, %v4125_v22  ;;  %v4985_v3 = vrot.slane %v4145_v13, 4 }
 0x3c5   : > { %v4932_v20 = vsel %vm1797_vm7, %v4931_v45, %v4087_v14  ;;  %v4941_v56 = vperm.slane %v4937_v2, %v8250_v30  ;;  %v4950_v48 = vrot.slane %v4930_v52, 4  ;;  %v4984_v24 = vperm.slane %v4980_v46, %v8250_v30 }
 0x3c6   : > { %v4936_v51 = vperm.slane %v4932_v20, %v8250_v30  ;;  %v4943_v4 = vsel %vm1797_vm7, %v4942_v0, %v4091_v19  ;;  %v4986_v21 = vsel %vm1797_vm7, %v4985_v3, %v4143_v31  ;;  %v4991_v1 = vsel %vm1797_vm7, %v4148_v44, %v4137_v33  ;;  %v9934_v31 = vpop.permute.xlu0 %7043 }
 0x3c7   : > { %v4947_v53 = vperm.slane %v4943_v4, %v8250_v30  ;;  %v4962_v32 = vrot.slane %v4941_v56, 4  ;;  %v4990_v22 = vperm.slane %v4986_v21, %v8250_v30  ;;  %v4995_v37 = vperm.slane %v4991_v1, %v8250_v30 }
 0x3c8   : > { %v4948_v6 = vrot.slane %v4936_v51, 4  ;;  %v4951_v26 = vsel %vm1797_vm7, %v4936_v51, %v4950_v48  ;;  %v4996_v18 = vrot.slane %v4149_v54, 4  ;;  %v5004_v28 = vrot.slane %v4984_v24, 4 }
 0x3c9   : > { %v4959_v55 = vperm.slane %v4951_v26, %v8268_v16  ;;  %v4960_v35 = vrot.slane %v4947_v53, 4  ;;  %v4963_v43 = vsel %vm1797_vm7, %v4947_v53, %v4962_v32  ;;  %v5002_v49 = vrot.slane %v4990_v22, 4 }
 0x3ca   : > { %v4949_v33 = vsel %vm1797_vm7, %v4948_v6, %v4930_v52  ;;  %v4971_v9 = vperm.slane %v4963_v43, %v8268_v16  ;;  %v4997_v7 = vsel %vm1797_vm7, %v4996_v18, %v4147_v11  ;;  %v5005_v62 = vsel %vm1797_vm7, %v4990_v22, %v5004_v28  ;;  %v7049_v43 = vpop.permute.xlu1 %7048 }
 0x3cb   : > { %v4955_v14 = vperm.slane %v4949_v33, %v8268_v16  ;;  %v4961_v47 = vsel %vm1797_vm7, %v4960_v35, %v4941_v56  ;;  %v4978_v23 = vrot.slane %v4959_v55, 4  ;;  %v5001_v44 = vperm.slane %v4997_v7, %v8250_v30  ;;  %v9942_v56 = vpop.permute.xlu2 %7053 }
 0x3cc   : > { %v4967_v13 = vperm.slane %v4961_v47, %v8268_v16  ;;  %v4976_v5 = vrot.slane %v4971_v9, 4  ;;  %v5003_v19 = vsel %vm1797_vm7, %v5002_v49, %v4984_v24  ;;  %v5013_v54 = vperm.slane %v5005_v62, %v8268_v16 }
 0x3cd   : > { %v4974_v52 = vrot.slane %v4955_v14, 4  ;;  %v4979_v11 = vsel %vm1797_vm7, %v4971_v9, %v4978_v23  ;;  %v5009_v45 = vperm.slane %v5003_v19, %v8268_v16  ;;  %v5014_v2 = vrot.slane %v5001_v44, 4 }
 0x3ce   : > { %v4972_v0 = vrot.slane %v4967_v13, 4  ;;  %v4977_v46 = vsel %vm1797_vm7, %v4976_v5, %v4959_v55  ;;  %v5016_v3 = vrot.slane %v4995_v37, 4  ;;  %v5032_v20 = vrot.slane %v5013_v54, 4  ;;  %v9962_v62 = vpop.permute.xlu0 %7058 }
 0x3cf   : > { %v4975_v48 = vsel %vm1797_vm7, %v4967_v13, %v4974_v52  ;;  %v5015_v24 = vsel %vm1797_vm7, %v5014_v2, %v4995_v37  ;;  %v5028_v51 = vrot.slane %v5009_v45, 4  ;;  %v5610_v4 = vpack.c.bf16 %v4977_v46, %v4977_v46 }
 0x3d0   : > { %v4973_v21 = vsel %vm1797_vm7, %v4972_v0, %v4955_v14  ;;  %v5017_v1 = vsel %vm1797_vm7, %v5001_v44, %v5016_v3  ;;  %v5021_v53 = vperm.slane %v5015_v24, %v8268_v16  ;;  %v5594_v32 = vpack.c.bf16 %v4975_v48, %v4975_v48 }
 0x3d1   : > { %v5025_v22 = vperm.slane %v5017_v1, %v8268_v16  ;;  %v5578_v6 = vpack.c.bf16 %v4973_v21, %v4973_v21  ;;  %v5626_v26 = vpack.c.bf16 %v4979_v11, %v4979_v11  ;;  %5674 = vst.msk [vmem:[%s9712_s6 + $0x90] sm:$0xf] %vm3621_vm2, %v5610_v4  ;;  %v7056_v18 = vunpack.i.h.bf16 %v9942_v56 }
 0x3d2   : > { %v4680_v37 = vrot.slane %v9624_v12, 4  ;;  %v5026_v28 = vrot.slane %v5021_v53, 4  ;;  %v5029_v55 = vsel %vm1797_vm7, %v5021_v53, %v5028_v51  ;;  %5658 = vst.msk [vmem:[%s9712_s6 + $0x50] sm:$0xf] %vm3621_vm2, %v5594_v32  ;;  %v7046_v35 = vunpack.i.h.bf16 %v9934_v31 }
 0x3d3   : > { %v5030_v49 = vrot.slane %v5025_v22, 4  ;;  %v5033_v33 = vsel %vm1797_vm7, %v5025_v22, %v5032_v20  ;;  %v5595_v9 = vpack.c.bf16 %v5029_v55, %v5029_v55  ;;  %5642 = vst.msk [vmem:[%s9712_s6 + $0x10] sm:$0xf] %vm3621_vm2, %v5578_v6  ;;  %v7055_v7 = vunpack.i.l.bf16 %v9942_v56 }
 0x3d4   : > { %v5027_v14 = vsel %vm1797_vm7, %v5026_v28, %v5009_v45  ;;  %v5627_v47 = vpack.c.bf16 %v5033_v33, %v5033_v33  ;;  %5690 = vst.msk [vmem:[%s9712_s6 + $0xd0] sm:$0xf] %vm3621_vm2, %v5626_v26  ;;  %v4332_v23 = vrot.slane %v7056_v18, 4  ;;  %v4220_v44 = vrot.slane %v7046_v35, 4 }
 0x3d5   : > { %v5031_v13 = vsel %vm1797_vm7, %v5030_v49, %v5013_v54  ;;  %v5579_v5 = vpack.c.bf16 %v5027_v14, %v5027_v14  ;;  %5659 = vst.msk [vmem:[%s9712_s6 + $0x54] sm:$0xf] %vm3621_vm2, %v5595_v9  ;;  %v7045_v19 = vunpack.i.l.bf16 %v9934_v31  ;;  %v7051_v52 = vunpack.i.h.bf16 %v7049_v43 }
 0x3d6   : > { %v5611_v11 = vpack.c.bf16 %v5031_v13, %v5031_v13  ;;  %5691 = vst.msk [vmem:[%s9712_s6 + $0xd4] sm:$0xf] %vm3621_vm2, %v5627_v47  ;;  %v7050_v2 = vunpack.i.l.bf16 %v7049_v43  ;;  %v7061_v45 = vunpack.i.h.bf16 %v9962_v62  ;;  %v7060_v0 = vunpack.i.l.bf16 %v9962_v62 }
 0x3d7   : > { %5643 = vst.msk [vmem:[%s9712_s6 + $0x14] sm:$0xf] %vm3621_vm2, %v5579_v5  ;;  %v9979_v46 = vrot.slane %v7055_v7, 4  ;;  %v4164_v54 = vrot.slane %v7045_v19, 4  ;;  %v4218_v3 = vrot.slane %v7051_v52, 4  ;;  %v4221_v20 = vsel %vm1797_vm7, %v7051_v52, %v4220_v44 }
 0x3d8   : > { %5675 = vst.msk [vmem:[%s9712_s6 + $0x94] sm:$0xf] %vm3621_vm2, %v5611_v11  ;;  %v4162_v31 = vrot.slane %v7050_v2, 4  ;;  %v4229_v48 = vperm.slane %v4221_v20, %v8250_v30  ;;  %v4330_v24 = vrot.slane %v7061_v45, 4  ;;  %v4333_v51 = vsel %vm1797_vm7, %v7061_v45, %v4332_v23 }
 0x3d9   : > { %v4165_v4 = vsel %vm1797_vm7, %v7050_v2, %v4164_v54  ;;  %v4219_v21 = vsel %vm1797_vm7, %v4218_v3, %v7046_v35  ;;  %v9989_v1 = vperm.slane %v4333_v51, %v8250_v30  ;;  %v9993_v53 = vrot.slane %v7060_v0, 4 }
 0x3da   : > { %v4163_v32 = vsel %vm1797_vm7, %v4162_v31, %v7045_v19  ;;  %v4173_v22 = vperm.slane %v4165_v4, %v8250_v30  ;;  %v4225_v6 = vperm.slane %v4219_v21, %v8250_v30  ;;  %v4242_v26 = vrot.slane %v4229_v48, 4 }
 0x3db   : > { %v4169_v28 = vperm.slane %v4163_v32, %v8250_v30  ;;  %v10774_v55 = vrot.slane %v9092_v36, 4  ;;  %v10003_v43 = vsel %vm1797_vm7, %v4330_v24, %v7056_v18  ;;  %v4354_v49 = vrot.slane %v9989_v1, 4 }
 0x3dc   : > { %v4186_v33 = vrot.slane %v4173_v22, 4  ;;  %v10775_v9 = vrot.slane %v9066_v10, 4  ;;  %v4230_v47 = vrot.slane %v4225_v6, 4  ;;  %v10776_v23 = vrot.slane %v9141_v38, 4 }
 0x3dd   : > { %v4245_v35 = vsel %vm1797_vm7, %v4229_v48, %v10774_v55  ;;  %v4174_v13 = vrot.slane %v4169_v28, 4  ;;  %v10777_v5 = vrot.slane %v9071_v41, 4  ;;  %v4243_v54 = vsel %vm1797_vm7, %v4242_v26, %v9092_v36 }
 0x3de   : > { %v4189_v14 = vsel %vm1797_vm7, %v4173_v22, %v10775_v9  ;;  %v4233_v44 = vsel %vm1797_vm7, %v4225_v6, %v10776_v23  ;;  %v4187_v2 = vsel %vm1797_vm7, %v4186_v33, %v9066_v10  ;;  %v4231_v45 = vsel %vm1797_vm7, %v4230_v47, %v9141_v38 }
 0x3df   : > { %v4177_v19 = vsel %vm1797_vm7, %v4169_v28, %v10777_v5  ;;  %v4197_v18 = vperm.slane %v4189_v14, %v8268_v16  ;;  %v4241_v52 = vperm.slane %v4233_v44, %v8268_v16  ;;  %v4175_v3 = vsel %vm1797_vm7, %v4174_v13, %v9071_v41 }
 0x3e0   : > { %v4185_v11 = vperm.slane %v4177_v19, %v8268_v16  ;;  %v4193_v20 = vperm.slane %v4187_v2, %v8268_v16  ;;  %v4237_v48 = vperm.slane %v4231_v45, %v8268_v16  ;;  %v4181_v24 = vperm.slane %v4175_v3, %v8268_v16 }
 0x3e1   : > { %v4204_v31 = vrot.slane %v4197_v18, 4  ;;  %v4249_v4 = vperm.slane %v4243_v54, %v8268_v16  ;;  %v4253_v10 = vperm.slane %v4245_v35, %v8268_v16  ;;  %v4256_v36 = vrot.slane %v4241_v52, 4 }
 0x3e2   : > { %v4200_v51 = vrot.slane %v4185_v11, 4  ;;  %v4202_v21 = vrot.slane %v4193_v20, 4  ;;  %v4254_v32 = vrot.slane %v4237_v48, 4  ;;  %v4198_v22 = vrot.slane %v4181_v24, 4 }
 0x3e3   : > { %v4205_v38 = vsel %vm1797_vm7, 0.0, %v4204_v31  ;;  %v4258_v6 = vrot.slane %v4249_v4, 4  ;;  %v4260_v26 = vrot.slane %v4253_v10, 4  ;;  %v4257_v33 = vsel %vm1797_vm7, 0.0, %v4256_v36 }
 0x3e4   : > { %v4201_v41 = vsel %vm1797_vm7, 0.0, %v4200_v51  ;;  %v4203_v28 = vsel %vm1797_vm7, 0.0, %v4202_v21  ;;  %v4255_v55 = vsel %vm1797_vm7, 0.0, %v4254_v32  ;;  %v5034_v9 = vsel %vm1797_vm7, %v4200_v51, %v4181_v24 }
 0x3e5   : > { %v4199_v35 = vsel %vm1797_vm7, 0.0, %v4198_v22  ;;  %v4259_v14 = vsel %vm1797_vm7, 0.0, %v4258_v6  ;;  %v4261_v47 = vsel %vm1797_vm7, 0.0, %v4260_v26  ;;  %v5038_v23 = vperm.slane %v5034_v9, %v8250_v30 }
 0x3e6   : > { %v5039_v44 = vrot.slane %v4201_v41, 4  ;;  %v5045_v13 = vsel %vm1797_vm7, %v4204_v31, %v4193_v20  ;;  %v5050_v5 = vrot.slane %v4205_v38, 4  ;;  %v5088_v19 = vsel %vm1797_vm7, %v4256_v36, %v4237_v48 }
 0x3e7   : > { %v5049_v18 = vperm.slane %v5045_v13, %v8250_v30  ;;  %v5058_v52 = vrot.slane %v5038_v23, 4  ;;  %v5092_v11 = vperm.slane %v5088_v19, %v8250_v30  ;;  %v5093_v2 = vrot.slane %v4257_v33, 4 }
 0x3e8   : > { %v5040_v45 = vsel %vm1797_vm7, %v5039_v44, %v4199_v35  ;;  %v5051_v54 = vsel %vm1797_vm7, %v5050_v5, %v4203_v28  ;;  %v5099_v3 = vsel %vm1797_vm7, %v4260_v26, %v4249_v4  ;;  %v5104_v24 = vrot.slane %v4261_v47, 4 }
 0x3e9   : > { %v5044_v51 = vperm.slane %v5040_v45, %v8250_v30  ;;  %v5055_v20 = vperm.slane %v5051_v54, %v8250_v30  ;;  %v5070_v31 = vrot.slane %v5049_v18, 4  ;;  %v5094_v48 = vsel %vm1797_vm7, %v5093_v2, %v4255_v55 }
 0x3ea   : > { %v5098_v10 = vperm.slane %v5094_v48, %v8250_v30  ;;  %v5103_v21 = vperm.slane %v5099_v3, %v8250_v30  ;;  %v5105_v38 = vsel %vm1797_vm7, %v5104_v24, %v4259_v14  ;;  %v5112_v32 = vrot.slane %v5092_v11, 4 }
 0x3eb   : > { %v5056_v36 = vrot.slane %v5044_v51, 4  ;;  %v5059_v22 = vsel %vm1797_vm7, %v5044_v51, %v5058_v52  ;;  %v5068_v41 = vrot.slane %v5055_v20, 4  ;;  %v5071_v4 = vsel %vm1797_vm7, %v5055_v20, %v5070_v31 }
 0x3ec   : > { %v5067_v6 = vperm.slane %v5059_v22, %v8268_v16  ;;  %v5079_v26 = vperm.slane %v5071_v4, %v8268_v16  ;;  %v5109_v28 = vperm.slane %v5105_v38, %v8250_v30  ;;  %v5110_v55 = vrot.slane %v5098_v10, 4 }
 0x3ed   : > { %v5057_v33 = vsel %vm1797_vm7, %v5056_v36, %v5038_v23  ;;  %v5069_v9 = vsel %vm1797_vm7, %v5068_v41, %v5049_v18  ;;  %v5113_v35 = vsel %vm1797_vm7, %v5098_v10, %v5112_v32  ;;  %v5124_v14 = vrot.slane %v5103_v21, 4 }
 0x3ee   : > { %v5063_v47 = vperm.slane %v5057_v33, %v8268_v16  ;;  %v5075_v44 = vperm.slane %v5069_v9, %v8268_v16  ;;  %v5084_v13 = vrot.slane %v5079_v26, 4  ;;  %v5086_v5 = vrot.slane %v5067_v6, 4 }
 0x3ef   : > { %v5111_v19 = vsel %vm1797_vm7, %v5110_v55, %v5092_v11  ;;  %v5121_v52 = vperm.slane %v5113_v35, %v8268_v16  ;;  %v5122_v2 = vrot.slane %v5109_v28, 4  ;;  %v5125_v45 = vsel %vm1797_vm7, %v5109_v28, %v5124_v14 }
 0x3f0   : > { %v5080_v54 = vrot.slane %v5075_v44, 4  ;;  %v5082_v23 = vrot.slane %v5063_v47, 4  ;;  %v5085_v18 = vsel %vm1797_vm7, %v5084_v13, %v5067_v6  ;;  %v5087_v3 = vsel %vm1797_vm7, %v5079_v26, %v5086_v5 }
 0x3f1   : > { %v5117_v24 = vperm.slane %v5111_v19, %v8268_v16  ;;  %v5123_v51 = vsel %vm1797_vm7, %v5122_v2, %v5103_v21  ;;  %v5133_v20 = vperm.slane %v5125_v45, %v8268_v16  ;;  %v5140_v31 = vrot.slane %v5121_v52, 4  ;;  %v10101_v2 = vpop.permute.xlu1 %7063 }
 0x3f2   : > { %v5081_v11 = vsel %vm1797_vm7, %v5080_v54, %v5063_v47  ;;  %v5083_v48 = vsel %vm1797_vm7, %v5075_v44, %v5082_v23  ;;  %v5129_v10 = vperm.slane %v5123_v51, %v8268_v16  ;;  %v5612_v38 = vpack.c.bf16 %v5085_v18, %v5085_v18 }
 0x3f3   : > { %v5136_v32 = vrot.slane %v5117_v24, 4  ;;  %v5138_v36 = vrot.slane %v5133_v20, 4  ;;  %v5141_v22 = vsel %vm1797_vm7, %v5133_v20, %v5140_v31  ;;  %v5580_v41 = vpack.c.bf16 %v5081_v11, %v5081_v11 }
 0x3f4   : > { %v5134_v4 = vrot.slane %v5129_v10, 4  ;;  %v5596_v21 = vpack.c.bf16 %v5083_v48, %v5083_v48  ;;  %v5628_v6 = vpack.c.bf16 %v5087_v3, %v5087_v3  ;;  %v5629_v26 = vpack.c.bf16 %v5141_v22, %v5141_v22  ;;  %5676 = vst.msk [vmem:[%s9712_s6 + $0x98] sm:$0xf] %vm3621_vm2, %v5612_v38 }
 0x3f5   : > { %v5137_v28 = vsel %vm1797_vm7, %v5129_v10, %v5136_v32  ;;  %v5139_v55 = vsel %vm1797_vm7, %v5138_v36, %v5121_v52  ;;  %5644 = vst.msk [vmem:[%s9712_s6 + $0x18] sm:$0xf] %vm3621_vm2, %v5580_v41  ;;  %v4337_v33 = vperm.slane %v10003_v43, %v8250_v30  ;;  %v4355_v9 = vsel %vm1797_vm7, %v4354_v49, %v9192_v59 }
 0x3f6   : > { %v5135_v35 = vsel %vm1797_vm7, %v5134_v4, %v5117_v24  ;;  %v5597_v14 = vpack.c.bf16 %v5137_v28, %v5137_v28  ;;  %v5613_v47 = vpack.c.bf16 %v5139_v55, %v5139_v55  ;;  %5660 = vst.msk [vmem:[%s9712_s6 + $0x58] sm:$0xf] %vm3621_vm2, %v5596_v21  ;;  %v10778_v44 = vrot.slane %v9192_v59, 4 }
 0x3f7   : > { %v5581_v5 = vpack.c.bf16 %v5135_v35, %v5135_v35  ;;  %5692 = vst.msk [vmem:[%s9712_s6 + $0xd8] sm:$0xf] %vm3621_vm2, %v5628_v6  ;;  %v4342_v43 = vrot.slane %v4337_v33, 4  ;;  %v10779_v19 = vrot.slane %v9257_v60, 4  ;;  %v4361_v52 = vperm.slane %v4355_v9, %v8268_v16 }
 0x3f8   : > { %v4357_v13 = vsel %vm1797_vm7, %v9989_v1, %v10778_v44  ;;  %5661 = vst.msk [vmem:[%s9712_s6 + $0x5c] sm:$0xf] %vm3621_vm2, %v5597_v14  ;;  %v4275_v45 = vsel %vm1797_vm7, %v9993_v53, %v7055_v7  ;;  %v4277_v54 = vsel %vm1797_vm7, %v7060_v0, %v9979_v46  ;;  %v7066_v62 = vunpack.i.h.bf16 %v10101_v2  ;;  %v10148_v44 = vpop.permute.xlu2 %7073 }
 0x3f9   : > { %v4345_v49 = vsel %vm1797_vm7, %v4337_v33, %v10779_v19  ;;  %v4365_v1 = vperm.slane %v4357_v13, %v8268_v16  ;;  %5645 = vst.msk [vmem:[%s9712_s6 + $0x1c] sm:$0xf] %vm3621_vm2, %v5581_v5  ;;  %v4343_v23 = vsel %vm1797_vm7, %v4342_v43, %v9257_v60  ;;  %v4370_v18 = vrot.slane %v4361_v52, 4 }
 0x3fa   : > { %v4353_v59 = vperm.slane %v4345_v49, %v8268_v16  ;;  %v4281_v3 = vperm.slane %v4275_v45, %v8250_v30  ;;  %v4285_v24 = vperm.slane %v4277_v54, %v8250_v30  ;;  %5677 = vst.msk [vmem:[%s9712_s6 + $0x9c] sm:$0xf] %vm3621_vm2, %v5613_v47  ;;  %v4349_v56 = vperm.slane %v4343_v23, %v8268_v16 }
 0x3fb   : > { %v4372_v53 = vrot.slane %v4365_v1, 4  ;;  %5693 = vst.msk [vmem:[%s9712_s6 + $0xdc] sm:$0xf] %vm3621_vm2, %v5629_v26  ;;  %v4371_v0 = vsel %vm1797_vm7, 0.0, %v4370_v18  ;;  %v10780_v60 = vrot.slane %v9164_v8, 4 }
 0x3fc   : > { %v4368_v7 = vrot.slane %v4353_v59, 4  ;;  %v4286_v46 = vrot.slane %v4281_v3, 4  ;;  %v4298_v20 = vrot.slane %v4285_v24, 4  ;;  %v4366_v31 = vrot.slane %v4349_v56, 4 }
 0x3fd   : > { %v4289_v51 = vsel %vm1797_vm7, %v4281_v3, %v10780_v60  ;;  %v4373_v48 = vsel %vm1797_vm7, 0.0, %v4372_v53  ;;  %v5207_v36 = vsel %vm1797_vm7, %v4372_v53, %v4361_v52 }
 0x3fe   : > { %v4369_v11 = vsel %vm1797_vm7, 0.0, %v4368_v7  ;;  %v5196_v10 = vsel %vm1797_vm7, %v4368_v7, %v4349_v56  ;;  %v5212_v22 = vrot.slane %v4373_v48, 4  ;;  %v4367_v41 = vsel %vm1797_vm7, 0.0, %v4366_v31 }
 0x3ff   : > { %v5200_v38 = vperm.slane %v5196_v10, %v8250_v30  ;;  %v5201_v32 = vrot.slane %v4369_v11, 4  ;;  %v5211_v4 = vperm.slane %v5207_v36, %v8250_v30  ;;  %v4287_v21 = vsel %vm1797_vm7, %v4286_v46, %v9164_v8 }
 0x400   : > { %v4297_v6 = vperm.slane %v4289_v51, %v8268_v16  ;;  %v5213_v28 = vsel %vm1797_vm7, %v5212_v22, %v4371_v0  ;;  %v4293_v33 = vperm.slane %v4287_v21, %v8268_v16  ;;  %v4299_v47 = vsel %vm1797_vm7, %v4298_v20, %v9153_v50 }
 0x401   : > { %v5202_v26 = vsel %vm1797_vm7, %v5201_v32, %v4367_v41  ;;  %v5220_v55 = vrot.slane %v5200_v38, 4  ;;  %v5217_v35 = vperm.slane %v5213_v28, %v8250_v30  ;;  %v5232_v14 = vrot.slane %v5211_v4, 4 }
 0x402   : > { %v5206_v9 = vperm.slane %v5202_v26, %v8250_v30  ;;  %v10781_v8 = vrot.slane %v9153_v50, 4  ;;  %v4305_v5 = vperm.slane %v4299_v47, %v8268_v16  ;;  %v4310_v43 = vrot.slane %v4293_v33, 4 }
 0x403   : > { %v4312_v19 = vrot.slane %v4297_v6, 4  ;;  %v5230_v59 = vrot.slane %v5217_v35, 4  ;;  %v5233_v1 = vsel %vm1797_vm7, %v5217_v35, %v5232_v14  ;;  %v10179_v35 = vpop.permute.xlu2 %7078  ;;  %v4692_v14 = vrot.slane %v9707_v39, 4 }
 0x404   : > { %v4301_v13 = vsel %vm1797_vm7, %v4285_v24, %v10781_v8  ;;  %v5218_v49 = vrot.slane %v5206_v9, 4  ;;  %v5221_v52 = vsel %vm1797_vm7, %v5206_v9, %v5220_v55  ;;  %v5241_v54 = vperm.slane %v5233_v1, %v8268_v16 }
 0x405   : > { %v5229_v45 = vperm.slane %v5221_v52, %v8268_v16  ;;  %v4309_v23 = vperm.slane %v4301_v13, %v8268_v16  ;;  %v4311_v50 = vsel %vm1797_vm7, 0.0, %v4310_v43  ;;  %v5231_v3 = vsel %vm1797_vm7, %v5230_v59, %v5211_v4 }
 0x406   : > { %v5219_v18 = vsel %vm1797_vm7, %v5218_v49, %v5200_v38  ;;  %v4313_v24 = vsel %vm1797_vm7, 0.0, %v4312_v19  ;;  %v4314_v56 = vrot.slane %v4305_v5, 4  ;;  %v5237_v53 = vperm.slane %v5231_v3, %v8268_v16 }
 0x407   : > { %v5225_v7 = vperm.slane %v5219_v18, %v8268_v16  ;;  %v5246_v0 = vrot.slane %v5241_v54, 4  ;;  %v5248_v46 = vrot.slane %v5229_v45, 4  ;;  %v4316_v51 = vrot.slane %v4309_v23, 4 }
 0x408   : > { %v4315_v60 = vsel %vm1797_vm7, 0.0, %v4314_v56  ;;  %v5142_v20 = vsel %vm1797_vm7, %v4312_v19, %v4293_v33  ;;  %v5147_v31 = vrot.slane %v4313_v24, 4  ;;  %v5242_v11 = vrot.slane %v5237_v53, 4 }
 0x409   : > { %v5244_v48 = vrot.slane %v5225_v7, 4  ;;  %v5247_v10 = vsel %vm1797_vm7, %v5246_v0, %v5229_v45  ;;  %v5249_v38 = vsel %vm1797_vm7, %v5241_v54, %v5248_v46  ;;  %v4317_v22 = vsel %vm1797_vm7, 0.0, %v4316_v51 }
 0x40a   : > { %v5615_v32 = vpack.c.bf16 %v5247_v10, %v5247_v10  ;;  %v5631_v36 = vpack.c.bf16 %v5249_v38, %v5249_v38  ;;  %v5146_v41 = vperm.slane %v5142_v20, %v8250_v30  ;;  %v5243_v4 = vsel %vm1797_vm7, %v5242_v11, %v5225_v7 }
 0x40b   : > { %v5245_v21 = vsel %vm1797_vm7, %v5237_v53, %v5244_v48  ;;  %v5148_v6 = vsel %vm1797_vm7, %v5147_v31, %v4311_v50  ;;  %v5153_v26 = vsel %vm1797_vm7, %v4316_v51, %v4305_v5  ;;  %v5583_v28 = vpack.c.bf16 %v5243_v4, %v5243_v4 }
 0x40c   : > { %v5599_v55 = vpack.c.bf16 %v5245_v21, %v5245_v21  ;;  %5679 = vst.msk [vmem:[%s9712_s6 + $0xa4] sm:$0xf] %vm3621_vm2, %v5615_v32  ;;  %v5152_v33 = vperm.slane %v5148_v6, %v8250_v30  ;;  %v5157_v9 = vperm.slane %v5153_v26, %v8250_v30  ;;  %v5158_v47 = vrot.slane %v4317_v22, 4 }
 0x40d   : > { %5695 = vst.msk [vmem:[%s9712_s6 + $0xe4] sm:$0xf] %vm3621_vm2, %v5631_v36  ;;  %v5166_v8 = vrot.slane %v5146_v41, 4  ;;  %v7065_v13 = vunpack.i.l.bf16 %v10101_v2  ;;  %v4444_v19 = vrot.slane %v7066_v62, 4  ;;  %v7076_v49 = vunpack.i.h.bf16 %v10148_v44 }
 0x40e   : > { %5647 = vst.msk [vmem:[%s9712_s6 + $0x24] sm:$0xf] %vm3621_vm2, %v5583_v28  ;;  %v5164_v5 = vrot.slane %v5152_v33, 4  ;;  %v5178_v43 = vrot.slane %v5157_v9, 4  ;;  %v5159_v52 = vsel %vm1797_vm7, %v5158_v47, %v4315_v60  ;;  %v7075_v1 = vunpack.i.l.bf16 %v10148_v44 }
 0x40f   : > { %5663 = vst.msk [vmem:[%s9712_s6 + $0x64] sm:$0xf] %vm3621_vm2, %v5599_v55  ;;  %v5167_v59 = vsel %vm1797_vm7, %v5152_v33, %v5166_v8  ;;  %v7081_v45 = vunpack.i.h.bf16 %v10179_v35  ;;  %v5163_v54 = vperm.slane %v5159_v52, %v8250_v30  ;;  %v4388_v18 = vrot.slane %v7065_v13, 4 }
 0x410   : > { %v5165_v23 = vsel %vm1797_vm7, %v5164_v5, %v5146_v41  ;;  %v5175_v50 = vperm.slane %v5167_v59, %v8268_v16  ;;  %v10204_v24 = vrot.slane %v7076_v49, 4  ;;  %v7080_v11 = vunpack.i.l.bf16 %v10179_v35 }
 0x411   : > { %v5171_v3 = vperm.slane %v5165_v23, %v8268_v16  ;;  %v4442_v56 = vrot.slane %v7081_v45, 4  ;;  %v4445_v7 = vsel %vm1797_vm7, %v7081_v45, %v4444_v19  ;;  %v5176_v53 = vrot.slane %v5163_v54, 4 }
 0x412   : > { %v5179_v0 = vsel %vm1797_vm7, %v5163_v54, %v5178_v43  ;;  %v5194_v46 = vrot.slane %v5175_v50, 4  ;;  %v4453_v60 = vperm.slane %v4445_v7, %v8250_v30  ;;  %v4386_v59 = vrot.slane %v7080_v11, 4 }
 0x413   : > { %v5187_v51 = vperm.slane %v5179_v0, %v8268_v16  ;;  %v5190_v20 = vrot.slane %v5171_v3, 4  ;;  %v4443_v31 = vsel %vm1797_vm7, %v4442_v56, %v7066_v62  ;;  %v5177_v48 = vsel %vm1797_vm7, %v5176_v53, %v5157_v9  ;;  %v10250_v0 = vpop.permute.xlu0 %7068 }
 0x414   : > { %v4449_v10 = vperm.slane %v4443_v31, %v8250_v30  ;;  %v4466_v38 = vrot.slane %v4453_v60, 4  ;;  %v4469_v32 = vsel %vm1797_vm7, %v4453_v60, %v4468_v25  ;;  %v5183_v36 = vperm.slane %v5177_v48, %v8268_v16 }
 0x415   : > { %v5192_v22 = vrot.slane %v5187_v51, 4  ;;  %v5195_v41 = vsel %vm1797_vm7, %v5187_v51, %v5194_v46  ;;  %v4477_v4 = vperm.slane %v4469_v32, %v8268_v16  ;;  %v4389_v45 = vsel %vm1797_vm7, %v7080_v11, %v4388_v18 }
 0x416   : > { %v5630_v62 = vpack.c.bf16 %v5195_v41, %v5195_v41  ;;  %v4454_v21 = vrot.slane %v4449_v10, 4  ;;  %v4457_v6 = vsel %vm1797_vm7, %v4449_v10, %v4456_v61  ;;  %v4467_v26 = vsel %vm1797_vm7, %v4466_v38, %v9416_v27 }
 0x417   : > { %v5188_v28 = vrot.slane %v5183_v36, 4  ;;  %v5191_v25 = vsel %vm1797_vm7, %v5183_v36, %v5190_v20  ;;  %v5193_v55 = vsel %vm1797_vm7, %v5192_v22, %v5175_v50  ;;  %v4465_v33 = vperm.slane %v4457_v6, %v8268_v16 }
 0x418   : > { %v5598_v9 = vpack.c.bf16 %v5191_v25, %v5191_v25  ;;  %v5614_v35 = vpack.c.bf16 %v5193_v55, %v5193_v55  ;;  %5694 = vst.msk [vmem:[%s9712_s6 + $0xe0] sm:$0xf] %vm3621_vm2, %v5630_v62  ;;  %v4455_v47 = vsel %vm1797_vm7, %v4454_v21, %v9431_v34  ;;  %v4473_v61 = vperm.slane %v4467_v26, %v8268_v16 }
 0x419   : > { %v5189_v27 = vsel %vm1797_vm7, %v5188_v28, %v5171_v3  ;;  %v4461_v8 = vperm.slane %v4455_v47, %v8268_v16  ;;  %v4480_v5 = vrot.slane %v4465_v33, 4  ;;  %v4484_v43 = vrot.slane %v4477_v4, 4 }
 0x41a   : > { %v5582_v19 = vpack.c.bf16 %v5189_v27, %v5189_v27  ;;  %5662 = vst.msk [vmem:[%s9712_s6 + $0x60] sm:$0xf] %vm3621_vm2, %v5598_v9  ;;  %v4482_v52 = vrot.slane %v4473_v61, 4  ;;  %v4387_v51 = vsel %vm1797_vm7, %v4386_v59, %v7065_v13  ;;  %v4397_v48 = vperm.slane %v4389_v45, %v8250_v30 }
 0x41b   : > { %5678 = vst.msk [vmem:[%s9712_s6 + $0xa0] sm:$0xf] %vm3621_vm2, %v5614_v35  ;;  %v4478_v54 = vrot.slane %v4461_v8, 4  ;;  %v4481_v34 = vsel %vm1797_vm7, 0.0, %v4480_v5  ;;  %v4485_v23 = vsel %vm1797_vm7, 0.0, %v4484_v43  ;;  %v5304_v50 = vsel %vm1797_vm7, %v4480_v5, %v4461_v8 }
 0x41c   : > { %5646 = vst.msk [vmem:[%s9712_s6 + $0x20] sm:$0xf] %vm3621_vm2, %v5582_v19  ;;  %v4483_v3 = vsel %vm1797_vm7, 0.0, %v4482_v52  ;;  %v5308_v56 = vperm.slane %v5304_v50, %v8250_v30  ;;  %v5309_v7 = vrot.slane %v4481_v34, 4  ;;  %v5315_v53 = vsel %vm1797_vm7, %v4484_v43, %v4473_v61 }
 0x41d   : > { %v4479_v18 = vsel %vm1797_vm7, 0.0, %v4478_v54  ;;  %v5319_v46 = vperm.slane %v5315_v53, %v8250_v30  ;;  %v5320_v60 = vrot.slane %v4485_v23, 4  ;;  %v4393_v11 = vperm.slane %v4387_v51, %v8250_v30  ;;  %v7084_v51 = vpop.permute.xlu1 %7083 }
 0x41e   : > { %v5310_v20 = vsel %vm1797_vm7, %v5309_v7, %v4479_v18  ;;  %v5328_v31 = vrot.slane %v5308_v56, 4  ;;  %v7071_v36 = vunpack.i.h.bf16 %v10250_v0  ;;  %v10782_v2 = vrot.slane %v9310_v58, 4 }
 0x41f   : > { %v5314_v10 = vperm.slane %v5310_v20, %v8250_v30  ;;  %v5321_v38 = vsel %vm1797_vm7, %v5320_v60, %v4483_v3  ;;  %v5340_v32 = vrot.slane %v5319_v46, 4  ;;  %v4398_v41 = vrot.slane %v4393_v11, 4 }
 0x420   : > { %v5325_v22 = vperm.slane %v5321_v38, %v8250_v30  ;;  %v4401_v13 = vsel %vm1797_vm7, %v4393_v11, %v10782_v2  ;;  %v4410_v4 = vrot.slane %v4397_v48, 4  ;;  %v10783_v26 = vrot.slane %v9295_v15, 4 }
 0x421   : > { %v5326_v62 = vrot.slane %v5314_v10, 4  ;;  %v5329_v21 = vsel %vm1797_vm7, %v5314_v10, %v5328_v31  ;;  %v4409_v6 = vperm.slane %v4401_v13, %v8268_v16  ;;  %v4399_v9 = vsel %vm1797_vm7, %v4398_v41, %v9310_v58 }
 0x422   : > { %v4413_v28 = vsel %vm1797_vm7, %v4397_v48, %v10783_v26  ;;  %v5337_v25 = vperm.slane %v5329_v21, %v8268_v16  ;;  %v5338_v55 = vrot.slane %v5325_v22, 4  ;;  %v5341_v33 = vsel %vm1797_vm7, %v5325_v22, %v5340_v32 }
 0x423   : > { %v5327_v35 = vsel %vm1797_vm7, %v5326_v62, %v5308_v56  ;;  %v5349_v47 = vperm.slane %v5341_v33, %v8268_v16  ;;  %v4405_v61 = vperm.slane %v4399_v9, %v8268_v16  ;;  %v4411_v27 = vsel %vm1797_vm7, %v4410_v4, %v9295_v15  ;;  %v10306_v62 = vpop.permute.xlu0 %7088 }
 0x424   : > { %v5333_v8 = vperm.slane %v5327_v35, %v8268_v16  ;;  %v5339_v5 = vsel %vm1797_vm7, %v5338_v55, %v5319_v46  ;;  %v5356_v43 = vrot.slane %v5337_v25, 4  ;;  %v4417_v19 = vperm.slane %v4411_v27, %v8268_v16 }
 0x425   : > { %v5345_v52 = vperm.slane %v5339_v5, %v8268_v16  ;;  %v5354_v59 = vrot.slane %v5349_v47, 4  ;;  %v4421_v58 = vperm.slane %v4413_v28, %v8268_v16  ;;  %v4422_v45 = vrot.slane %v4405_v61, 4 }
 0x426   : > { %v5352_v54 = vrot.slane %v5333_v8, 4  ;;  %v5357_v34 = vsel %vm1797_vm7, %v5349_v47, %v5356_v43  ;;  %v4424_v23 = vrot.slane %v4409_v6, 4  ;;  %v4426_v50 = vrot.slane %v4417_v19, 4 }
 0x427   : > { %v5350_v15 = vrot.slane %v5345_v52, 4  ;;  %v5355_v3 = vsel %vm1797_vm7, %v5354_v59, %v5337_v25  ;;  %v5633_v56 = vpack.c.bf16 %v5357_v34, %v5357_v34  ;;  %v4423_v7 = vsel %vm1797_vm7, 0.0, %v4422_v45 }
 0x428   : > { %v5353_v53 = vsel %vm1797_vm7, %v5345_v52, %v5352_v54  ;;  %v5617_v18 = vpack.c.bf16 %v5355_v3, %v5355_v3  ;;  %v4425_v46 = vsel %vm1797_vm7, 0.0, %v4424_v23  ;;  %v4427_v60 = vsel %vm1797_vm7, 0.0, %v4426_v50 }
 0x429   : > { %v5351_v20 = vsel %vm1797_vm7, %v5350_v15, %v5333_v8  ;;  %v5601_v31 = vpack.c.bf16 %v5353_v53, %v5353_v53  ;;  %5697 = vst.msk [vmem:[%s9712_s6 + $0xec] sm:$0xf] %vm3621_vm2, %v5633_v56  ;;  %v4428_v11 = vrot.slane %v4421_v58, 4  ;;  %v5250_v48 = vsel %vm1797_vm7, %v4424_v23, %v4405_v61 }
 0x42a   : > { %v5585_v10 = vpack.c.bf16 %v5351_v20, %v5351_v20  ;;  %5681 = vst.msk [vmem:[%s9712_s6 + $0xac] sm:$0xf] %vm3621_vm2, %v5617_v18  ;;  %v5254_v38 = vperm.slane %v5250_v48, %v8250_v30  ;;  %v5255_v32 = vrot.slane %v4425_v46, 4  ;;  %v4556_v22 = vrot.slane %v7071_v36, 4 }
 0x42b   : > { %5665 = vst.msk [vmem:[%s9712_s6 + $0x6c] sm:$0xf] %vm3621_vm2, %v5601_v31  ;;  %v4429_v41 = vsel %vm1797_vm7, 0.0, %v4428_v11  ;;  %v5261_v2 = vsel %vm1797_vm7, %v4428_v11, %v4417_v19  ;;  %v7070_v13 = vunpack.i.l.bf16 %v10250_v0  ;;  %v7086_v4 = vunpack.i.h.bf16 %v7084_v51 }
 0x42c   : > { %5649 = vst.msk [vmem:[%s9712_s6 + $0x2c] sm:$0xf] %vm3621_vm2, %v5585_v10  ;;  %v5256_v21 = vsel %vm1797_vm7, %v5255_v32, %v4423_v7  ;;  %v5265_v6 = vperm.slane %v5261_v2, %v8250_v30  ;;  %v5266_v26 = vrot.slane %v4429_v41, 4  ;;  %v5274_v28 = vrot.slane %v5254_v38, 4 }
 0x42d   : > { %v5260_v25 = vperm.slane %v5256_v21, %v8250_v30  ;;  %v4500_v55 = vrot.slane %v7070_v13, 4  ;;  %v4554_v33 = vrot.slane %v7086_v4, 4  ;;  %v7085_v9 = vunpack.i.l.bf16 %v7084_v51 }
 0x42e   : > { %v5267_v35 = vsel %vm1797_vm7, %v5266_v26, %v4427_v60  ;;  %v5286_v47 = vrot.slane %v5265_v6, 4  ;;  %v4557_v61 = vsel %vm1797_vm7, %v7086_v4, %v4556_v22  ;;  %v7091_v27 = vunpack.i.h.bf16 %v10306_v62 }
 0x42f   : > { %v5271_v8 = vperm.slane %v5267_v35, %v8250_v30  ;;  %v5272_v5 = vrot.slane %v5260_v25, 4  ;;  %v5275_v43 = vsel %vm1797_vm7, %v5260_v25, %v5274_v28  ;;  %v4498_v19 = vrot.slane %v7085_v9, 4 }
 0x430   : > { %v5283_v52 = vperm.slane %v5275_v43, %v8268_v16  ;;  %v4501_v59 = vsel %vm1797_vm7, %v7085_v9, %v4500_v55  ;;  %v4555_v58 = vsel %vm1797_vm7, %v4554_v33, %v7071_v36  ;;  %v4565_v45 = vperm.slane %v4557_v61, %v8250_v30 }
 0x431   : > { %v5273_v54 = vsel %vm1797_vm7, %v5272_v5, %v5254_v38  ;;  %v5284_v34 = vrot.slane %v5271_v8, 4  ;;  %v5287_v23 = vsel %vm1797_vm7, %v5271_v8, %v5286_v47  ;;  %v4499_v50 = vsel %vm1797_vm7, %v4498_v19, %v7070_v13 }
 0x432   : > { %v5279_v15 = vperm.slane %v5273_v54, %v8268_v16  ;;  %v5295_v3 = vperm.slane %v5287_v23, %v8268_v16  ;;  %v5302_v56 = vrot.slane %v5283_v52, 4  ;;  %v4505_v7 = vperm.slane %v4499_v50, %v8250_v30 }
 0x433   : > { %v5285_v0 = vsel %vm1797_vm7, %v5284_v34, %v5265_v6  ;;  %v4509_v36 = vperm.slane %v4501_v59, %v8250_v30  ;;  %v4561_v53 = vperm.slane %v4555_v58, %v8250_v30  ;;  %v4578_v18 = vrot.slane %v4565_v45, 4 }
 0x434   : > { %v5291_v46 = vperm.slane %v5285_v0, %v8268_v16  ;;  %v5298_v60 = vrot.slane %v5279_v15, 4  ;;  %v5300_v51 = vrot.slane %v5295_v3, 4  ;;  %v5303_v20 = vsel %vm1797_vm7, %v5295_v3, %v5302_v56 }
 0x435   : > { %v5632_v31 = vpack.c.bf16 %v5303_v20, %v5303_v20  ;;  %v4510_v11 = vrot.slane %v4505_v7, 4  ;;  %v10784_v48 = vrot.slane %v9451_v63, 4  ;;  %v4522_v38 = vrot.slane %v4509_v36, 4 }
 0x436   : > { %v5296_v32 = vrot.slane %v5291_v46, 4  ;;  %v5299_v22 = vsel %vm1797_vm7, %v5291_v46, %v5298_v60  ;;  %v5301_v41 = vsel %vm1797_vm7, %v5300_v51, %v5283_v52  ;;  %v10785_v25 = vrot.slane %v9461_v57, 4 }
 0x437   : > { %v4513_v10 = vsel %vm1797_vm7, %v4505_v7, %v10784_v48  ;;  %v5600_v13 = vpack.c.bf16 %v5299_v22, %v5299_v22  ;;  %v5616_v4 = vpack.c.bf16 %v5301_v41, %v5301_v41  ;;  %5696 = vst.msk [vmem:[%s9712_s6 + $0xe8] sm:$0xf] %vm3621_vm2, %v5632_v31  ;;  %v4511_v21 = vsel %vm1797_vm7, %v4510_v11, %v9451_v63 }
 0x438   : > { %v4521_v2 = vperm.slane %v4513_v10, %v8268_v16  ;;  %v4523_v6 = vsel %vm1797_vm7, %v4522_v38, %v9461_v57  ;;  %v5297_v26 = vsel %vm1797_vm7, %v5296_v32, %v5279_v15  ;;  %v4517_v28 = vperm.slane %v4511_v21, %v8268_v16 }
 0x439   : > { %v4525_v55 = vsel %vm1797_vm7, %v4509_v36, %v10785_v25  ;;  %v4529_v33 = vperm.slane %v4523_v6, %v8268_v16  ;;  %v5584_v9 = vpack.c.bf16 %v5297_v26, %v5297_v26  ;;  %5664 = vst.msk [vmem:[%s9712_s6 + $0x68] sm:$0xf] %vm3621_vm2, %v5600_v13  ;;  %v4566_v47 = vrot.slane %v4561_v53, 4 }
 0x43a   : > { %v4533_v35 = vperm.slane %v4525_v55, %v8268_v16  ;;  %v4536_v63 = vrot.slane %v4521_v2, 4  ;;  %5680 = vst.msk [vmem:[%s9712_s6 + $0xa8] sm:$0xf] %vm3621_vm2, %v5616_v4  ;;  %v4534_v61 = vrot.slane %v4517_v28, 4  ;;  %v10786_v5 = vrot.slane %v9476_v40, 4 }
 0x43b   : > { %v4538_v8 = vrot.slane %v4529_v33, 4  ;;  %v4579_v57 = vsel %vm1797_vm7, %v4578_v18, %v9470_v42  ;;  %5648 = vst.msk [vmem:[%s9712_s6 + $0x28] sm:$0xf] %vm3621_vm2, %v5584_v9  ;;  %v4567_v59 = vsel %vm1797_vm7, %v4566_v47, %v9476_v40  ;;  %v10787_v50 = vrot.slane %v9470_v42, 4 }
 0x43c   : > { %v4569_v43 = vsel %vm1797_vm7, %v4561_v53, %v10786_v5  ;;  %v4537_v19 = vsel %vm1797_vm7, 0.0, %v4536_v63  ;;  %v4540_v52 = vrot.slane %v4533_v35, 4  ;;  %v4535_v54 = vsel %vm1797_vm7, 0.0, %v4534_v61 }
 0x43d   : > { %v4577_v58 = vperm.slane %v4569_v43, %v8268_v16  ;;  %v4539_v34 = vsel %vm1797_vm7, 0.0, %v4538_v8  ;;  %v4573_v23 = vperm.slane %v4567_v59, %v8268_v16  ;;  %v4581_v15 = vsel %vm1797_vm7, %v4565_v45, %v10787_v50 }
 0x43e   : > { %v4541_v3 = vsel %vm1797_vm7, 0.0, %v4540_v52  ;;  %v4585_v56 = vperm.slane %v4579_v57, %v8268_v16  ;;  %v4589_v7 = vperm.slane %v4581_v15, %v8268_v16  ;;  %v5358_v36 = vsel %vm1797_vm7, %v4536_v63, %v4517_v28 }
 0x43f   : > { %v4592_v0 = vrot.slane %v4577_v58, 4  ;;  %v4590_v40 = vrot.slane %v4573_v23, 4  ;;  %v5363_v53 = vrot.slane %v4537_v19, 4  ;;  %v5369_v18 = vsel %vm1797_vm7, %v4540_v52, %v4529_v33 }
 0x440   : > { %v4594_v60 = vrot.slane %v4585_v56, 4  ;;  %v4596_v51 = vrot.slane %v4589_v7, 4  ;;  %v5362_v42 = vperm.slane %v5358_v36, %v8250_v30  ;;  %v5373_v31 = vperm.slane %v5369_v18, %v8250_v30 }
 0x441   : > { %v4593_v46 = vsel %vm1797_vm7, 0.0, %v4592_v0  ;;  %v4591_v45 = vsel %vm1797_vm7, 0.0, %v4590_v40  ;;  %v5364_v20 = vsel %vm1797_vm7, %v5363_v53, %v4535_v54  ;;  %v5374_v11 = vrot.slane %v4541_v3, 4 }
 0x442   : > { %v4595_v48 = vsel %vm1797_vm7, 0.0, %v4594_v60  ;;  %v4597_v10 = vsel %vm1797_vm7, 0.0, %v4596_v51  ;;  %v5368_v38 = vperm.slane %v5364_v20, %v8250_v30  ;;  %v5382_v32 = vrot.slane %v5362_v42, 4 }
 0x443   : > { %v5375_v22 = vsel %vm1797_vm7, %v5374_v11, %v4539_v34  ;;  %v5394_v41 = vrot.slane %v5373_v31, 4  ;;  %v5412_v2 = vsel %vm1797_vm7, %v4592_v0, %v4573_v23  ;;  %v5417_v13 = vrot.slane %v4593_v46, 4 }
 0x444   : > { %v5379_v4 = vperm.slane %v5375_v22, %v8250_v30  ;;  %v5380_v21 = vrot.slane %v5368_v38, 4  ;;  %v5383_v6 = vsel %vm1797_vm7, %v5368_v38, %v5382_v32  ;;  %v5416_v26 = vperm.slane %v5412_v2, %v8250_v30 }
 0x445   : > { %v5391_v28 = vperm.slane %v5383_v6, %v8268_v16  ;;  %v5418_v25 = vsel %vm1797_vm7, %v5417_v13, %v4591_v45  ;;  %v5423_v55 = vsel %vm1797_vm7, %v4596_v51, %v4585_v56  ;;  %v5428_v33 = vrot.slane %v4597_v10, 4 }
 0x446   : > { %v5381_v9 = vsel %vm1797_vm7, %v5380_v21, %v5362_v42  ;;  %v5392_v35 = vrot.slane %v5379_v4, 4  ;;  %v5395_v63 = vsel %vm1797_vm7, %v5379_v4, %v5394_v41  ;;  %v5422_v47 = vperm.slane %v5418_v25, %v8250_v30 }
 0x447   : > { %v5387_v61 = vperm.slane %v5381_v9, %v8268_v16  ;;  %v5403_v8 = vperm.slane %v5395_v63, %v8268_v16  ;;  %v5410_v5 = vrot.slane %v5391_v28, 4  ;;  %v5427_v43 = vperm.slane %v5423_v55, %v8250_v30 }
 0x448   : > { %v5393_v57 = vsel %vm1797_vm7, %v5392_v35, %v5373_v31  ;;  %v5429_v19 = vsel %vm1797_vm7, %v5428_v33, %v4595_v48  ;;  %v5434_v52 = vrot.slane %v5422_v47, 4  ;;  %v5436_v59 = vrot.slane %v5416_v26, 4 }
 0x449   : > { %v5399_v58 = vperm.slane %v5393_v57, %v8268_v16  ;;  %v5406_v54 = vrot.slane %v5387_v61, 4  ;;  %v5408_v34 = vrot.slane %v5403_v8, 4  ;;  %v5411_v23 = vsel %vm1797_vm7, %v5403_v8, %v5410_v5 }
 0x44a   : > { %v5433_v50 = vperm.slane %v5429_v19, %v8250_v30  ;;  %v5435_v15 = vsel %vm1797_vm7, %v5434_v52, %v5416_v26  ;;  %v5437_v3 = vsel %vm1797_vm7, %v5422_v47, %v5436_v59  ;;  %v5448_v56 = vrot.slane %v5427_v43, 4 }
 0x44b   : > { %v5404_v7 = vrot.slane %v5399_v58, 4  ;;  %v5407_v0 = vsel %vm1797_vm7, %v5399_v58, %v5406_v54  ;;  %v5409_v40 = vsel %vm1797_vm7, %v5408_v34, %v5391_v28  ;;  %v5441_v36 = vperm.slane %v5435_v15, %v8268_v16 }
 0x44c   : > { %v5445_v53 = vperm.slane %v5437_v3, %v8268_v16  ;;  %v5446_v18 = vrot.slane %v5433_v50, 4  ;;  %v5449_v46 = vsel %vm1797_vm7, %v5433_v50, %v5448_v56  ;;  %v5602_v60 = vpack.c.bf16 %v5407_v0, %v5407_v0 }
 0x44d   : > { %v5405_v51 = vsel %vm1797_vm7, %v5404_v7, %v5387_v61  ;;  %v5457_v42 = vperm.slane %v5449_v46, %v8268_v16  ;;  %v5460_v45 = vrot.slane %v5441_v36, 4  ;;  %v5618_v20 = vpack.c.bf16 %v5409_v40, %v5409_v40 }
 0x44e   : > { %v5447_v31 = vsel %vm1797_vm7, %v5446_v18, %v5427_v43  ;;  %v5464_v11 = vrot.slane %v5445_v53, 4  ;;  %v5586_v48 = vpack.c.bf16 %v5405_v51, %v5405_v51  ;;  %v5634_v10 = vpack.c.bf16 %v5411_v23, %v5411_v23  ;;  %5666 = vst.msk [vmem:[%s9712_s6 + $0x70] sm:$0xf] %vm3621_vm2, %v5602_v60 }
 0x44f   : > { %v5453_v38 = vperm.slane %v5447_v31, %v8268_v16  ;;  %v5462_v32 = vrot.slane %v5457_v42, 4  ;;  %5682 = vst.msk [vmem:[%s9712_s6 + $0xb0] sm:$0xf] %vm3621_vm2, %v5618_v20  ;;  %v4666_v22 = vrot.slane %v7091_v27, 4  ;;  %v4669_v41 = vsel %vm1797_vm7, %v7091_v27, %v10204_v24 }
 0x450   : > { %v4612_v2 = vrot.slane %v7075_v1, 4  ;;  %v5465_v13 = vsel %vm1797_vm7, %v5457_v42, %v5464_v11  ;;  %5650 = vst.msk [vmem:[%s9712_s6 + $0x30] sm:$0xf] %vm3621_vm2, %v5586_v48  ;;  %v4677_v4 = vperm.slane %v4669_v41, %v8250_v30  ;;  %v7090_v21 = vunpack.i.l.bf16 %v10306_v62 }
 0x451   : > { %v5458_v6 = vrot.slane %v5453_v38, 4  ;;  %v5461_v26 = vsel %vm1797_vm7, %v5453_v38, %v5460_v45  ;;  %v5463_v28 = vsel %vm1797_vm7, %v5462_v32, %v5445_v53  ;;  %v5635_v25 = vpack.c.bf16 %v5465_v13, %v5465_v13  ;;  %5698 = vst.msk [vmem:[%s9712_s6 + $0xf0] sm:$0xf] %vm3621_vm2, %v5634_v10 }
 0x452   : > { %v5603_v24 = vpack.c.bf16 %v5461_v26, %v5461_v26  ;;  %v5619_v27 = vpack.c.bf16 %v5463_v28, %v5463_v28  ;;  %v4667_v55 = vsel %vm1797_vm7, %v4666_v22, %v7076_v49  ;;  %v4690_v33 = vrot.slane %v4677_v4, 4 }
 0x453   : > { %v5459_v9 = vsel %vm1797_vm7, %v5458_v6, %v5441_v36  ;;  %5699 = vst.msk [vmem:[%s9712_s6 + $0xf4] sm:$0xf] %vm3621_vm2, %v5635_v25  ;;  %v4673_v62 = vperm.slane %v4667_v55, %v8250_v30  ;;  %v4693_v35 = vsel %vm1797_vm7, %v4677_v4, %v4692_v14  ;;  %v4610_v63 = vrot.slane %v7090_v21, 4 }
 0x454   : > { %v5587_v47 = vpack.c.bf16 %v5459_v9, %v5459_v9  ;;  %5667 = vst.msk [vmem:[%s9712_s6 + $0x74] sm:$0xf] %vm3621_vm2, %v5603_v24  ;;  %v4691_v61 = vsel %vm1797_vm7, %v4690_v33, %v9707_v39  ;;  %v4701_v49 = vperm.slane %v4693_v35, %v8268_v16  ;;  %v4613_v8 = vsel %vm1797_vm7, %v7090_v21, %v4612_v2 }
 0x455   : > { %5683 = vst.msk [vmem:[%s9712_s6 + $0xb4] sm:$0xf] %vm3621_vm2, %v5619_v27  ;;  %v4678_v5 = vrot.slane %v4673_v62, 4  ;;  %v4681_v43 = vsel %vm1797_vm7, %v4673_v62, %v4680_v37  ;;  %v4697_v14 = vperm.slane %v4691_v61, %v8268_v16  ;;  %v4611_v57 = vsel %vm1797_vm7, %v4610_v63, %v7075_v1 }
 0x456   : > { %v4624_v19 = vrot.slane %v9593_v17, 4  ;;  %5651 = vst.msk [vmem:[%s9712_s6 + $0x34] sm:$0xf] %vm3621_vm2, %v5587_v47  ;;  %v4689_v39 = vperm.slane %v4681_v43, %v8268_v16  ;;  %v4708_v52 = vrot.slane %v4701_v49, 4  ;;  %v4617_v59 = vperm.slane %v4611_v57, %v8250_v30 }
 0x457   : > { %v4636_v58 = vrot.slane %v9600_v29, 4  ;;  %v4679_v37 = vsel %vm1797_vm7, %v4678_v5, %v9624_v12  ;;  %v4706_v54 = vrot.slane %v4697_v14, 4  ;;  %v4621_v34 = vperm.slane %v4613_v8, %v8250_v30 }
 0x458   : > { %v4685_v44 = vperm.slane %v4679_v37, %v8268_v16  ;;  %v4704_v1 = vrot.slane %v4689_v39, 4  ;;  %v4709_v23 = vsel %vm1797_vm7, 0.0, %v4708_v52  ;;  %v5531_v50 = vsel %vm1797_vm7, %v4708_v52, %v4697_v14 }
 0x459   : > { %v4707_v15 = vsel %vm1797_vm7, 0.0, %v4706_v54  ;;  %v5535_v3 = vperm.slane %v5531_v50, %v8250_v30  ;;  %v5536_v56 = vrot.slane %v4709_v23, 4  ;;  %v4622_v7 = vrot.slane %v4617_v59, 4 }
 0x45a   : > { %v4702_v0 = vrot.slane %v4685_v44, 4  ;;  %v4705_v40 = vsel %vm1797_vm7, 0.0, %v4704_v1  ;;  %v5520_v12 = vsel %vm1797_vm7, %v4704_v1, %v4685_v44  ;;  %v4625_v36 = vsel %vm1797_vm7, %v4617_v59, %v4624_v19 }
 0x45b   : > { %v5524_v53 = vperm.slane %v5520_v12, %v8250_v30  ;;  %v5525_v18 = vrot.slane %v4705_v40, 4  ;;  %v5537_v46 = vsel %vm1797_vm7, %v5536_v56, %v4707_v15  ;;  %v5556_v60 = vrot.slane %v5535_v3, 4 }
 0x45c   : > { %v4703_v51 = vsel %vm1797_vm7, 0.0, %v4702_v0  ;;  %v5541_v42 = vperm.slane %v5537_v46, %v8250_v30  ;;  %v4623_v45 = vsel %vm1797_vm7, %v4622_v7, %v9593_v17  ;;  %v4633_v20 = vperm.slane %v4625_v36, %v8268_v16 }
 0x45d   : > { %v5526_v31 = vsel %vm1797_vm7, %v5525_v18, %v4703_v51  ;;  %v5544_v11 = vrot.slane %v5524_v53, 4  ;;  %v4629_v48 = vperm.slane %v4623_v45, %v8268_v16  ;;  %v4634_v10 = vrot.slane %v4621_v34, 4 }
 0x45e   : > { %v5530_v38 = vperm.slane %v5526_v31, %v8250_v30  ;;  %v5554_v32 = vrot.slane %v5541_v42, 4  ;;  %v5557_v22 = vsel %vm1797_vm7, %v5541_v42, %v5556_v60  ;;  %v4637_v41 = vsel %vm1797_vm7, %v4621_v34, %v4636_v58 }
 0x45f   : > { %v5565_v2 = vperm.slane %v5557_v22, %v8268_v16  ;;  %v4635_v17 = vsel %vm1797_vm7, %v4634_v10, %v9600_v29  ;;  %v4645_v13 = vperm.slane %v4637_v41, %v8268_v16  ;;  %v4646_v4 = vrot.slane %v4629_v48, 4 }
 0x460   : > { %v5542_v21 = vrot.slane %v5530_v38, 4  ;;  %v5545_v6 = vsel %vm1797_vm7, %v5530_v38, %v5544_v11  ;;  %v5555_v26 = vsel %vm1797_vm7, %v5554_v32, %v5535_v3  ;;  %v4641_v28 = vperm.slane %v4635_v17, %v8268_v16 }
 0x461   : > { %v5553_v25 = vperm.slane %v5545_v6, %v8268_v16  ;;  %v5561_v24 = vperm.slane %v5555_v26, %v8268_v16  ;;  %v5570_v27 = vrot.slane %v5565_v2, 4  ;;  %v4647_v55 = vsel %vm1797_vm7, 0.0, %v4646_v4  ;;  %v5742_v4 = vld [vmem:[%s8366_s4 + $0x10] sm:$0xff] (%p7500_p13)   ;;  %v5750_v6 = vld [vmem:[%s8366_s4 + $0x20] sm:$0xff] (%p7500_p13)   ;;  %v5754_v26 = vld [vmem:[%s8366_s4 + $0x28] sm:$0xff] (%p7500_p13)  }
 0x462   : > { %v5543_v33 = vsel %vm1797_vm7, %v5542_v21, %v5524_v53  ;;  %v4648_v29 = vrot.slane %v4633_v20, 4  ;;  %v4650_v9 = vrot.slane %v4641_v28, 4  ;;  %v4652_v62 = vrot.slane %v4645_v13, 4  ;;  %v5738_v13 = vld [vmem:[%s8366_s4 + $0x8] sm:$0xff] (%p7500_p13)   ;;  %v5746_v21 = vld [vmem:[%s8366_s4 + $0x18] sm:$0xff] (%p7500_p13)   ;;  %5743 = vst [vmem:[%s10557_s19 + $0x10] sm:$0xff] (%p7500_p13), %v5742_v4  }
 0x463   : > { %v5549_v35 = vperm.slane %v5543_v33, %v8268_v16  ;;  %v5566_v63 = vrot.slane %v5561_v24, 4  ;;  %v5571_v47 = vsel %vm1797_vm7, %v5570_v27, %v5553_v25  ;;  %v5572_v61 = vrot.slane %v5553_v25, 4  ;;  %5739 = vst [vmem:[%s10557_s19 + $0x8] sm:$0xff] (%p7500_p13), %v5738_v13   ;;  %v5762_v25 = vld [vmem:[%s8366_s4 + $0x38] sm:$0xff] (%p7500_p13)   ;;  %v5770_v27 = vld [vmem:[%s8366_s4 + $0x48] sm:$0xff] (%p7500_p13)  }
 0x464   : > { %v5621_v49 = vpack.c.bf16 %v5571_v47, %v5571_v47  ;;  %v4649_v8 = vsel %vm1797_vm7, 0.0, %v4648_v29  ;;  %v4651_v5 = vsel %vm1797_vm7, 0.0, %v4650_v9  ;;  %v4653_v43 = vsel %vm1797_vm7, 0.0, %v4652_v62  ;;  %5747 = vst [vmem:[%s10557_s19 + $0x18] sm:$0xff] (%p7500_p13), %v5746_v21   ;;  %v5778_v33 = vld [vmem:[%s8366_s4 + $0x58] sm:$0xff] (%p7500_p13)   ;;  %v5786_v9 = vld [vmem:[%s8366_s4 + $0x68] sm:$0xff] (%p7500_p13)  }
 0x465   : > { %v5567_v14 = vsel %vm1797_vm7, %v5566_v63, %v5549_v35  ;;  %v5568_v57 = vrot.slane %v5549_v35, 4  ;;  %v5573_v19 = vsel %vm1797_vm7, %v5565_v2, %v5572_v61  ;;  %v5466_v39 = vsel %vm1797_vm7, %v4648_v29, %v4629_v48  ;;  %5751 = vst [vmem:[%s10557_s19 + $0x20] sm:$0xff] (%p7500_p13), %v5750_v6   ;;  %v5782_v29 = vld [vmem:[%s8366_s4 + $0x60] sm:$0xff] (%p7500_p13)   ;;  %v5794_v35 = vld [vmem:[%s8366_s4 + $0x78] sm:$0xff] (%p7500_p13)   ;;  %v5802_v47 = vld [vmem:[%s8366_s4 + $0x88] sm:$0xff] (%p7500_p13)  }
 0x466   : > { %v5589_v52 = vpack.c.bf16 %v5567_v14, %v5567_v14  ;;  %v5637_v59 = vpack.c.bf16 %v5573_v19, %v5573_v19  ;;  %5685 = vst.msk [vmem:[%s9712_s6 + $0xbc] sm:$0xf] %vm3621_vm2, %v5621_v49  ;;  %v5470_v58 = vperm.slane %v5466_v39, %v8250_v30  ;;  %v5471_v37 = vrot.slane %v4649_v8, 4  ;;  %v5798_v63 = vld [vmem:[%s8366_s4 + $0x80] sm:$0xff] (%p7500_p13)   ;;  %v5806_v61 = vld [vmem:[%s8366_s4 + $0x90] sm:$0xff] (%p7500_p13)   ;;  %v5810_v49 = vld [vmem:[%s8366_s4 + $0x98] sm:$0xff] (%p7500_p13)  }
 0x467   : > { %v5569_v54 = vsel %vm1797_vm7, %v5561_v24, %v5568_v57  ;;  %v5477_v34 = vsel %vm1797_vm7, %v4652_v62, %v4641_v28  ;;  %v5482_v44 = vrot.slane %v4653_v43, 4  ;;  %v5758_v28 = vld [vmem:[%s8366_s4 + $0x30] sm:$0xff] (%p7500_p13)   ;;  %5755 = vst [vmem:[%s10557_s19 + $0x28] sm:$0xff] (%p7500_p13), %v5754_v26   ;;  %v5766_v24 = vld [vmem:[%s8366_s4 + $0x40] sm:$0xff] (%p7500_p13)   ;;  %v5826_v14 = vld [vmem:[%s8366_s4 + $0xb8] sm:$0xff] (%p7500_p13)  }
 0x468   : > { %v5605_v1 = vpack.c.bf16 %v5569_v54, %v5569_v54  ;;  %5653 = vst.msk [vmem:[%s9712_s6 + $0x3c] sm:$0xf] %vm3621_vm2, %v5589_v52  ;;  %v5472_v23 = vsel %vm1797_vm7, %v5471_v37, %v4647_v55  ;;  %v5481_v50 = vperm.slane %v5477_v34, %v8250_v30  ;;  %v5490_v15 = vrot.slane %v5470_v58, 4  ;;  %v5774_v55 = vld [vmem:[%s8366_s4 + $0x50] sm:$0xff] (%p7500_p13)   ;;  %v5814_v8 = vld [vmem:[%s8366_s4 + $0xa0] sm:$0xff] (%p7500_p13)   ;;  %v5834_v19 = vld [vmem:[%s8366_s4 + $0xc8] sm:$0xff] (%p7500_p13)  }
 0x469   : > { %5701 = vst.msk [vmem:[%s9712_s6 + $0xfc] sm:$0xf] %vm3621_vm2, %v5637_v59  ;;  %v5476_v3 = vperm.slane %v5472_v23, %v8250_v30  ;;  %v5483_v56 = vsel %vm1797_vm7, %v5482_v44, %v4651_v5  ;;  %v5790_v62 = vld [vmem:[%s8366_s4 + $0x70] sm:$0xff] (%p7500_p13)   ;;  %v5818_v5 = vld [vmem:[%s8366_s4 + $0xa8] sm:$0xff] (%p7500_p13)   ;;  %v5830_v57 = vld [vmem:[%s8366_s4 + $0xc0] sm:$0xff] (%p7500_p13)  }
 0x46a   : > { %5669 = vst.msk [vmem:[%s9712_s6 + $0x7c] sm:$0xf] %vm3621_vm2, %v5605_v1  ;;  %v5487_v7 = vperm.slane %v5483_v56, %v8250_v30  ;;  %v5502_v0 = vrot.slane %v5481_v50, 4  ;;  %v5822_v43 = vld [vmem:[%s8366_s4 + $0xb0] sm:$0xff] (%p7500_p13)   ;;  %v5842_v52 = vld [vmem:[%s8366_s4 + $0xd8] sm:$0xff] (%p7500_p13)   ;;  %v5846_v59 = vld [vmem:[%s8366_s4 + $0xe0] sm:$0xff] (%p7500_p13)  }
 0x46b   : > { %v5488_v40 = vrot.slane %v5476_v3, 4  ;;  %v5491_v12 = vsel %vm1797_vm7, %v5476_v3, %v5490_v15  ;;  %5759 = vst [vmem:[%s10557_s19 + $0x30] sm:$0xff] (%p7500_p13), %v5758_v28   ;;  %v5838_v39 = vld [vmem:[%s8366_s4 + $0xd0] sm:$0xff] (%p7500_p13)   ;;  %v5858_v54 = vld [vmem:[%s8366_s4 + $0xf8] sm:$0xff] (%p7500_p13)  }
 0x46c   : > { %v5499_v36 = vperm.slane %v5491_v12, %v8268_v16  ;;  %v5500_v53 = vrot.slane %v5487_v7, 4  ;;  %v5503_v18 = vsel %vm1797_vm7, %v5487_v7, %v5502_v0  ;;  %5763 = vst [vmem:[%s10557_s19 + $0x38] sm:$0xff] (%p7500_p13), %v5762_v25   ;;  %v5854_v37 = vld [vmem:[%s8366_s4 + $0xf0] sm:$0xff] (%p7500_p13)  }
 0x46d   : > { %v5489_v46 = vsel %vm1797_vm7, %v5488_v40, %v5470_v58  ;;  %v5511_v60 = vperm.slane %v5503_v18, %v8268_v16  ;;  %5767 = vst [vmem:[%s10557_s19 + $0x80] sm:$0xff] (%p7500_p13), %v5766_v24   ;;  %v5850_v58 = vld [vmem:[%s8366_s4 + $0xe8] sm:$0xff] (%p7500_p13)  }
 0x46e   : > { %v5495_v51 = vperm.slane %v5489_v46, %v8268_v16  ;;  %v5501_v42 = vsel %vm1797_vm7, %v5500_v53, %v5481_v50  ;;  %v5518_v30 = vrot.slane %v5499_v36, 4  ;;  %5771 = vst [vmem:[%s10557_s19 + $0x88] sm:$0xff] (%p7500_p13), %v5770_v27  }
 0x46f   : > { %v5507_v45 = vperm.slane %v5501_v42, %v8268_v16  ;;  %v5516_v20 = vrot.slane %v5511_v60, 4  ;;  %v5734_v16 = vld [vmem:[%s8366_s4] sm:$0xff] (%p7500_p13)   ;;  %5775 = vst [vmem:[%s10557_s19 + $0x90] sm:$0xff] (%p7500_p13), %v5774_v55  }
 0x470   : > { %v5514_v31 = vrot.slane %v5495_v51, 4  ;;  %v5519_v11 = vsel %vm1797_vm7, %v5511_v60, %v5518_v30  ;;  %5735 = vst [vmem:[%s10557_s19] sm:$0xff] (%p7500_p13), %v5734_v16  }
 0x471   : > { %v5512_v48 = vrot.slane %v5507_v45, 4  ;;  %v5517_v10 = vsel %vm1797_vm7, %v5516_v20, %v5499_v36  ;;  %v5636_v38 = vpack.c.bf16 %v5519_v11, %v5519_v11  ;;  %5779 = vst [vmem:[%s10557_s19 + $0x98] sm:$0xff] (%p7500_p13), %v5778_v33  }
 0x472   : > { %v5515_v32 = vsel %vm1797_vm7, %v5507_v45, %v5514_v31  ;;  %v5620_v22 = vpack.c.bf16 %v5517_v10, %v5517_v10  ;;  %5712 = sbr.rel (!%p7500_p13) target bundleno = 1162 (0x48a), region = 64  ;;  %5783 = vst [vmem:[%s10557_s19 + $0xa0] sm:$0xff] (%p7500_p13), %v5782_v29  }
 0x473   : > { %v5513_v41 = vsel %vm1797_vm7, %v5512_v48, %v5495_v51  ;;  %v5604_v2 = vpack.c.bf16 %v5515_v32, %v5515_v32  ;;  %5700 = vst.msk [vmem:[%s9712_s6 + $0xf8] sm:$0xf] %vm3621_vm2, %v5636_v38 }
 0x474   : > { %v5588_v17 = vpack.c.bf16 %v5513_v41, %v5513_v41  ;;  %5684 = vst.msk [vmem:[%s9712_s6 + $0xb8] sm:$0xf] %vm3621_vm2, %v5620_v22 }
 0x475   : > { %5668 = vst.msk [vmem:[%s9712_s6 + $0x78] sm:$0xf] %vm3621_vm2, %v5604_v2 }
 0x476   : > { %5652 = vst.msk [vmem:[%s9712_s6 + $0x38] sm:$0xf] %vm3621_vm2, %v5588_v17 }
 0x477   : > { %5787 = vst [vmem:[%s10557_s19 + $0xa8] sm:$0xff] %v5786_v9  }
 0x478   : > { %5791 = vst [vmem:[%s10557_s19 + $0xb0] sm:$0xff] %v5790_v62  }
 0x479   : > { %5795 = vst [vmem:[%s10557_s19 + $0xb8] sm:$0xff] %v5794_v35  }
 0x47a   : > { %5799 = vst [vmem:[%s10557_s19 + $0x100] sm:$0xff] %v5798_v63  }
 0x47b   : > { %5803 = vst [vmem:[%s10557_s19 + $0x108] sm:$0xff] %v5802_v47  }
 0x47c   : > { %5807 = vst [vmem:[%s10557_s19 + $0x110] sm:$0xff] %v5806_v61  }
 0x47d   : > { %5811 = vst [vmem:[%s10557_s19 + $0x118] sm:$0xff] %v5810_v49  }
 0x47e   : > { %5815 = vst [vmem:[%s10557_s19 + $0x120] sm:$0xff] %v5814_v8  }
 0x47f   : > { %5819 = vst [vmem:[%s10557_s19 + $0x128] sm:$0xff] %v5818_v5  }
 0x480   : > { %5823 = vst [vmem:[%s10557_s19 + $0x130] sm:$0xff] %v5822_v43  }
 0x481   : > { %5827 = vst [vmem:[%s10557_s19 + $0x138] sm:$0xff] %v5826_v14  }
 0x482   : > { %5831 = vst [vmem:[%s10557_s19 + $0x180] sm:$0xff] %v5830_v57  }
 0x483   : > { %5835 = vst [vmem:[%s10557_s19 + $0x188] sm:$0xff] %v5834_v19  }
 0x484   : > { %5839 = vst [vmem:[%s10557_s19 + $0x190] sm:$0xff] %v5838_v39  }
 0x485   : > { %5843 = vst [vmem:[%s10557_s19 + $0x198] sm:$0xff] %v5842_v52  }
 0x486   : > { %5847 = vst [vmem:[%s10557_s19 + $0x1a0] sm:$0xff] %v5846_v59  }
 0x487   : > { %5851 = vst [vmem:[%s10557_s19 + $0x1a8] sm:$0xff] %v5850_v58  }
 0x488   : > { %5855 = vst [vmem:[%s10557_s19 + $0x1b0] sm:$0xff] %v5854_v37  }
 0x489   : > { %5859 = vst [vmem:[%s10557_s19 + $0x1b8] sm:$0xff] %v5858_v54  }
 0x48a PF: > { %6013 = sbr.rel (!%p7500_p13) target bundleno = 1202 (0x4b2), region = 105  ;;  %s6742_s7 = sshll.u32 (%p7500_p13), %s7334_s24, 4  ;;  %v6035_v34 = vld [vmem:[%s9712_s6] sm:$0xff] (%p7500_p13)   ;;  %v6039_v44 = vld [vmem:[%s9712_s6 + $0x8] sm:$0xff] (%p7500_p13)   ;;  %v6043_v1 = vld [vmem:[%s9712_s6 + $0x10] sm:$0xff] (%p7500_p13)  }
 0x48b   : > { %s6743_s21 = sshll.u32 (%p7500_p13), %s7338_s25, 7  ;;  %s10788_s14 = sld [smem:[#allocation21_spill]] (%p7500_p13)  ;;  %v6047_v23 = vld [vmem:[%s9712_s6 + $0x18] sm:$0xff] (%p7500_p13)   ;;  %v6051_v50 = vld [vmem:[%s9712_s6 + $0x20] sm:$0xff] (%p7500_p13)   ;;  %v6055_v15 = vld [vmem:[%s9712_s6 + $0x28] sm:$0xff] (%p7500_p13)  }
 0x48c   : > { %s6016_s18 = sadd.s32 (%p7500_p13), %s6743_s21, %s6742_s7  ;;  %v6059_v3 = vld [vmem:[%s9712_s6 + $0x30] sm:$0xff] (%p7500_p13)   ;;  %v6067_v7 = vld [vmem:[%s9712_s6 + $0x40] sm:$0xff] (%p7500_p13)   ;;  %v6071_v0 = vld [vmem:[%s9712_s6 + $0x48] sm:$0xff] (%p7500_p13)  }
 0x48d   : > { %s6744_s10 = sshll.u32 (%p7500_p13), %s6016_s18, 2  ;;  %v6075_v40 = vld [vmem:[%s9712_s6 + $0x50] sm:$0xff] (%p7500_p13)   ;;  %v6079_v12 = vld [vmem:[%s9712_s6 + $0x58] sm:$0xff] (%p7500_p13)   ;;  %v6083_v36 = vld [vmem:[%s9712_s6 + $0x60] sm:$0xff] (%p7500_p13)  }
 0x48e   : > { %v6087_v53 = vld [vmem:[%s9712_s6 + $0x68] sm:$0xff] (%p7500_p13)   ;;  %v6091_v18 = vld [vmem:[%s9712_s6 + $0x70] sm:$0xff] (%p7500_p13)   ;;  %v6099_v60 = vld [vmem:[%s9712_s6 + $0x80] sm:$0xff] (%p7500_p13)  }
 0x48f   : > { %v6095_v46 = vld [vmem:[%s9712_s6 + $0x78] sm:$0xff]   ;;  %v6103_v51 = vld [vmem:[%s9712_s6 + $0x88] sm:$0xff]   ;;  %v6107_v42 = vld [vmem:[%s9712_s6 + $0x90] sm:$0xff]  }
 0x490   : > { %v6063_v56 = vld [vmem:[%s9712_s6 + $0x38] sm:$0xff]   ;;  %v6115_v45 = vld [vmem:[%s9712_s6 + $0xa0] sm:$0xff]   ;;  %v6119_v20 = vld [vmem:[%s9712_s6 + $0xa8] sm:$0xff]  }
 0x491   : > { %s10630_s16 = scalar_lea.vmem %s10788_s14, %s6744_s10  ;;  %v6111_v30 = vld [vmem:[%s9712_s6 + $0x98] sm:$0xff]   ;;  %v6123_v31 = vld [vmem:[%s9712_s6 + $0xb0] sm:$0xff]   ;;  %v6131_v48 = vld [vmem:[%s9712_s6 + $0xc0] sm:$0xff]  }
 0x492   : > { %6036 = vst [vmem:[%s10630_s16] sm:$0xff] %v6035_v34   ;;  %v6127_v11 = vld [vmem:[%s9712_s6 + $0xb8] sm:$0xff]   ;;  %v6135_v10 = vld [vmem:[%s9712_s6 + $0xc8] sm:$0xff]   ;;  %v6139_v38 = vld [vmem:[%s9712_s6 + $0xd0] sm:$0xff]  }
 0x493   : > { %6040 = vst [vmem:[%s10630_s16 + $0x8] sm:$0xff] %v6039_v44   ;;  %v6143_v32 = vld [vmem:[%s9712_s6 + $0xd8] sm:$0xff]   ;;  %v6147_v22 = vld [vmem:[%s9712_s6 + $0xe0] sm:$0xff]   ;;  %v6151_v41 = vld [vmem:[%s9712_s6 + $0xe8] sm:$0xff]  }
 0x494   : > { %6044 = vst [vmem:[%s10630_s16 + $0x10] sm:$0xff] %v6043_v1   ;;  %v6155_v2 = vld [vmem:[%s9712_s6 + $0xf0] sm:$0xff]   ;;  %v6159_v17 = vld [vmem:[%s9712_s6 + $0xf8] sm:$0xff]  }
 0x495   : > { %6048 = vst [vmem:[%s10630_s16 + $0x18] sm:$0xff] %v6047_v23  }
 0x496   : > { %6052 = vst [vmem:[%s10630_s16 + $0x20] sm:$0xff] %v6051_v50  }
 0x497   : > { %6056 = vst [vmem:[%s10630_s16 + $0x28] sm:$0xff] %v6055_v15  }
 0x498   : > { %6060 = vst [vmem:[%s10630_s16 + $0x30] sm:$0xff] %v6059_v3  }
 0x499   : > { %6064 = vst [vmem:[%s10630_s16 + $0x38] sm:$0xff] %v6063_v56  }
 0x49a   : > { %6068 = vst [vmem:[%s10630_s16 + $0x80] sm:$0xff] %v6067_v7  }
 0x49b   : > { %6072 = vst [vmem:[%s10630_s16 + $0x88] sm:$0xff] %v6071_v0  }
 0x49c   : > { %6076 = vst [vmem:[%s10630_s16 + $0x90] sm:$0xff] %v6075_v40  }
 0x49d   : > { %6080 = vst [vmem:[%s10630_s16 + $0x98] sm:$0xff] %v6079_v12  }
 0x49e   : > { %6084 = vst [vmem:[%s10630_s16 + $0xa0] sm:$0xff] %v6083_v36  }
 0x49f   : > { %6088 = vst [vmem:[%s10630_s16 + $0xa8] sm:$0xff] %v6087_v53  }
 0x4a0   : > { %6092 = vst [vmem:[%s10630_s16 + $0xb0] sm:$0xff] %v6091_v18  }
 0x4a1   : > { %6096 = vst [vmem:[%s10630_s16 + $0xb8] sm:$0xff] %v6095_v46  }
 0x4a2   : > { %6100 = vst [vmem:[%s10630_s16 + $0x100] sm:$0xff] %v6099_v60  }
 0x4a3   : > { %6104 = vst [vmem:[%s10630_s16 + $0x108] sm:$0xff] %v6103_v51  }
 0x4a4   : > { %6108 = vst [vmem:[%s10630_s16 + $0x110] sm:$0xff] %v6107_v42  }
 0x4a5   : > { %6112 = vst [vmem:[%s10630_s16 + $0x118] sm:$0xff] %v6111_v30  }
 0x4a6   : > { %6116 = vst [vmem:[%s10630_s16 + $0x120] sm:$0xff] %v6115_v45  }
 0x4a7   : > { %6120 = vst [vmem:[%s10630_s16 + $0x128] sm:$0xff] %v6119_v20  }
 0x4a8   : > { %6124 = vst [vmem:[%s10630_s16 + $0x130] sm:$0xff] %v6123_v31  }
 0x4a9   : > { %6128 = vst [vmem:[%s10630_s16 + $0x138] sm:$0xff] %v6127_v11  }
 0x4aa   : > { %6132 = vst [vmem:[%s10630_s16 + $0x180] sm:$0xff] %v6131_v48  }
 0x4ab   : > { %6136 = vst [vmem:[%s10630_s16 + $0x188] sm:$0xff] %v6135_v10  }
 0x4ac   : > { %6140 = vst [vmem:[%s10630_s16 + $0x190] sm:$0xff] %v6139_v38  }
 0x4ad   : > { %6144 = vst [vmem:[%s10630_s16 + $0x198] sm:$0xff] %v6143_v32  }
 0x4ae   : > { %6148 = vst [vmem:[%s10630_s16 + $0x1a0] sm:$0xff] %v6147_v22  }
 0x4af   : > { %6152 = vst [vmem:[%s10630_s16 + $0x1a8] sm:$0xff] %v6151_v41  }
 0x4b0   : > { %6156 = vst [vmem:[%s10630_s16 + $0x1b0] sm:$0xff] %v6155_v2  }
 0x4b1   : > { %6160 = vst [vmem:[%s10630_s16 + $0x1b8] sm:$0xff] %v6159_v17  }
 0x4b2 PF: > { %s22_s28 = sadd.s32 1, %s7350_s28   ;;  %s10789_s24 = sld [smem:[#allocation15_spill]] }
 0x4b3   : > { %p19_p1 = scmp.ge.s32.totalorder %s22_s28, 6   ;;  %s10790_s26 = sld [smem:[#allocation16_spill]] }
 0x4b4   : > { %s10791_s21 = smov %s7326_s22  ;;  %s10792_s22 = smov %s7330_s23 }
 0x4b5   : > { %s10793_s23 = smov %s7517_s1  ;;  %s10794_s25 = smov %s7346_s27 }
 0x4b6   : > { %s10795_s27 = smov %s10801_s29  ;;  %21 = sbr.rel (!%p19_p1) target bundleno = 13 (0xd), region = 190 }
 0x4bb   :  { %6331 = vsyncpa [#allocation3], 1 }
 0x4bc   :  { %6333 = vsyncpa [#allocation3 + $0x1], 1 }
 0x4bd   :  { %6334 = vsyncpa [#allocation5], 1 }
 0x4be   :  { %6335 = vsyncpa [#allocation8], 1 }

</bundles_post_ra>
